<compile_context>
chip_gen: v7x
topology: tpu7x:2x2x1
jax: 0.10.0
libtpu: 0.0.40
codegen_flags: <defaults>
</compile_context>

<pallas_src>
import functools

import jax
import jax.numpy as jnp
from jax import lax
from jax.experimental import pallas as pl
from jax.experimental.pallas import tpu as pltpu


def _conv_block_kernel(x_ref, mask_ref, w3_ref, b3_ref, w1_ref, b1_ref, o_ref, xcol_ref, *, W):
    """One batch image per grid step.

    x_ref:    (1, H*W, Cin)   image, flattened over (H, W)
    mask_ref: (H*W, 9)        per-tap composite edge masks (f32; center tap column is all-ones)
    w3_ref:   (9*Cin, Cout)   im2col 3x3 weight slab (BN scale folded in), tap-major rows
    b3_ref:   (1, Cout)       folded BN bias, main path
    w1_ref:   (Cin, Cout)     1x1 residual-projection weight (BN scale folded in)
    b1_ref:   (1, Cout)       folded BN bias, residual path
    o_ref:    (1, H*W, Cout)
    xcol_ref: (H*W, 9*Cin)    VMEM scratch: in-kernel im2col tile
    """
    HW, Cin = x_ref.shape[1], x_ref.shape[2]
    x = x_ref[0]                                     # (HW, Cin)

    # In-VMEM im2col: 9 rolled + edge-masked copies of the NARROW input, packed tap-major.
    # Rolling/masking x (width Cin) instead of the post-matmul tensor (width Cout) is
    # algebraically identical since the edge mask is a per-pixel scalar.
    for t in range(9):
        oy, ox = t // 3 - 1, t % 3 - 1               # tap offsets in {-1, 0, 1}
        s = oy * W + ox                              # flat source offset for this tap
        # want xt[p] = x[p + s]; wrapped values are zeroed by the mask below
        xt = x if s == 0 else pltpu.roll(x, shift=(-s) % HW, axis=0)
        if t != 4:                                   # center tap never leaves the image
            xt = xt * mask_ref[:, t:t + 1]
        xcol_ref[:, t * Cin:(t + 1) * Cin] = xt

    # Main path: single fused MXU matmul (K = 9*Cin) + folded-BN bias + LeakyReLU(0.1).
    y = jnp.dot(xcol_ref[...], w3_ref[...], preferred_element_type=jnp.float32)
    y = y + b3_ref[...]
    y = jnp.maximum(y, 0.1 * y)

    # Residual path: 1x1 projection (+ folded BN), one small matmul, added after the activation.
    y = y + jnp.dot(x, w1_ref[...], preferred_element_type=jnp.float32) + b1_ref[...]

    o_ref[0] = y.astype(o_ref.dtype)


@jax.jit
def conv_block_pallas(x_nhwc, w3_hwio, s3, b3, w1_io, s1, b1):
    """x_nhwc: (N, H, W, Cin) f32; s*/b*: (Cout,) folded BN scale/bias. Returns (N, H, W, Cout)."""
    N, H, W, Cin = x_nhwc.shape
    Cout = w3_hwio.shape[-1]
    HW = H * W

    # Fold BN scales into the conv weights. The 3x3 weight becomes a (9*Cin, Cout) im2col slab
    # whose row order (tap-major, then input channel) matches the in-kernel im2col columns.
    w3_slab = (w3_hwio * s3.reshape(1, 1, 1, Cout)).reshape(9 * Cin, Cout)
    w1 = w1_io * s1.reshape(1, Cout)
    b3_r = b3.reshape(1, Cout)
    b1_r = b1.reshape(1, Cout)

    # Flattened image.
    x_flat = x_nhwc.reshape(N, HW, Cin)

    # Precomputed per-tap composite edge masks (replaces zero padding; no in-kernel div/mod
    # and no per-tap mask composition).
    hh = jnp.arange(HW, dtype=jnp.int32) // W
    ww = jnp.arange(HW, dtype=jnp.int32) % W
    tap_masks = []
    for t in range(9):
        oy, ox = t // 3 - 1, t % 3 - 1
        m = jnp.ones((HW,), jnp.float32)
        if oy == -1:
            m = m * (hh >= 1).astype(jnp.float32)
        elif oy == 1:
            m = m * (hh <= H - 2).astype(jnp.float32)
        if ox == -1:
            m = m * (ww >= 1).astype(jnp.float32)
        elif ox == 1:
            m = m * (ww <= W - 2).astype(jnp.float32)
        tap_masks.append(m)
    mask = jnp.stack(tap_masks, axis=1)              # (HW, 9) f32

    # Explicit VMEM budget: double-buffered blocks + weights + im2col scratch + temporaries.
    itemsize = 4
    vmem_bytes = itemsize * (
        2 * HW * (Cin + Cout)                        # double-buffered input / output blocks
        + 2 * HW * 9                                 # mask block
        + 2 * ((9 * Cin + Cin) * Cout + 2 * Cout)    # weight slabs + biases
        + HW * 9 * Cin                               # im2col scratch
        + 4 * HW * Cout + 2 * HW * Cin               # in-kernel temporaries (margin)
    ) + (8 << 20)
    vmem_limit = int(min(max(vmem_bytes, 32 << 20), 100 << 20))

    out = pl.pallas_call(
        functools.partial(_conv_block_kernel, W=W),
        out_shape=jax.ShapeDtypeStruct((N, HW, Cout), jnp.float32),
        grid=(N,),
        in_specs=[
            pl.BlockSpec((1, HW, Cin), lambda n: (n, 0, 0)),
            pl.BlockSpec((HW, 9), lambda n: (0, 0)),
            pl.BlockSpec((9 * Cin, Cout), lambda n: (0, 0)),
            pl.BlockSpec((1, Cout), lambda n: (0, 0)),
            pl.BlockSpec((Cin, Cout), lambda n: (0, 0)),
            pl.BlockSpec((1, Cout), lambda n: (0, 0)),
        ],
        out_specs=pl.BlockSpec((1, HW, Cout), lambda n: (n, 0, 0)),
        scratch_shapes=[pltpu.VMEM((HW, 9 * Cin), jnp.float32)],
        compiler_params=pltpu.CompilerParams(
            dimension_semantics=("parallel",),
            vmem_limit_bytes=vmem_limit),
    )(x_flat, mask, w3_slab, b3_r, w1, b1_r)

    return out.reshape(N, H, W, Cout)


def _reference(x_nhwc, w3_hwio, w1_hwio, g3, be3, rm3, rv3, g1, be1, rm1, rv1, eps):
    """Pure-JAX reference matching the PyTorch forward (eval-mode BN)."""
    dn = ("NHWC", "HWIO", "NHWC")
    y = lax.conv_general_dilated(x_nhwc, w3_hwio, (1, 1), ((1, 1), (1, 1)),
                                 dimension_numbers=dn)
    y = (y - rm3) / jnp.sqrt(rv3 + eps) * g3 + be3
    y = jnp.where(y > 0, y, 0.1 * y)
    r = lax.conv_general_dilated(x_nhwc, w1_hwio, (1, 1), ((0, 0), (0, 0)),
                                 dimension_numbers=dn)
    r = (r - rm1) / jnp.sqrt(rv1 + eps) * g1 + be1
    return y + r


if __name__ == "__main__":
    # Small shapes consistent with the module: in_channels != out_channels so the
    # residual 1x1 projection branch is exercised.
    N, Cin, Cout, H, W = 2, 4, 8, 16, 16
    eps = 1e-5

    key = jax.random.PRNGKey(0)
    kx, kw3, kw1, kg3, kb3, km3, kv3, kg1, kb1, km1, kv1 = jax.random.split(key, 11)

    # Input in PyTorch NCHW convention, transposed to NHWC for the kernel.
    x_nchw = jax.random.normal(kx, (N, Cin, H, W), jnp.float32)
    x_nhwc = jnp.transpose(x_nchw, (0, 2, 3, 1))

    # Conv weights built in PyTorch OIHW convention, transposed to HWIO.
    w3_oihw = 0.1 * jax.random.normal(kw3, (Cout, Cin, 3, 3), jnp.float32)
    w1_oihw = 0.1 * jax.random.normal(kw1, (Cout, Cin, 1, 1), jnp.float32)
    w3_hwio = jnp.transpose(w3_oihw, (2, 3, 1, 0))            # (3, 3, Cin, Cout)
    w1_hwio = jnp.transpose(w1_oihw, (2, 3, 1, 0))            # (1, 1, Cin, Cout)
    w1_io = w1_hwio.reshape(Cin, Cout)

    # Deterministic (non-trivial) BatchNorm parameters / running stats.
    g3 = 1.0 + 0.1 * jax.random.normal(kg3, (Cout,), jnp.float32)
    be3 = 0.1 * jax.random.normal(kb3, (Cout,), jnp.float32)
    rm3 = 0.1 * jax.random.normal(km3, (Cout,), jnp.float32)
    rv3 = 1.0 + 0.1 * jnp.abs(jax.random.normal(kv3, (Cout,), jnp.float32))
    g1 = 1.0 + 0.1 * jax.random.normal(kg1, (Cout,), jnp.float32)
    be1 = 0.1 * jax.random.normal(kb1, (Cout,), jnp.float32)
    rm1 = 0.1 * jax.random.normal(km1, (Cout,), jnp.float32)
    rv1 = 1.0 + 0.1 * jnp.abs(jax.random.normal(kv1, (Cout,), jnp.float32))

    # Fold BN into per-channel scale/bias (eval mode).
    s3 = g3 / jnp.sqrt(rv3 + eps)
    b3 = be3 - rm3 * s3
    s1 = g1 / jnp.sqrt(rv1 + eps)
    b1 = be1 - rm1 * s1

    out = conv_block_pallas(x_nhwc, w3_hwio, s3, b3, w1_io, s1, b1)
    out = jax.block_until_ready(out)

    ref = _reference(x_nhwc, w3_hwio, w1_hwio, g3, be3, rm3, rv3, g1, be1, rm1, rv1, eps)
    ref = jax.block_until_ready(ref)

    assert out.shape == (N, H, W, Cout)
    assert jnp.allclose(out, ref, rtol=1e-4, atol=1e-4), float(jnp.max(jnp.abs(out - ref)))
    print("KERNEL_OK")
</pallas_src>

<mosaic_0001>
module attributes {stable_mosaic.version = 11 : i64} {
  func.func @_conv_block_kernel(%arg0: i32, %arg1: memref<1x256x4xf32, #tpu.memory_space<vmem>>, %arg2: memref<256x9xf32, #tpu.memory_space<vmem>>, %arg3: memref<36x8xf32, #tpu.memory_space<vmem>>, %arg4: memref<1x8xf32, #tpu.memory_space<vmem>>, %arg5: memref<4x8xf32, #tpu.memory_space<vmem>>, %arg6: memref<1x8xf32, #tpu.memory_space<vmem>>, %arg7: memref<1x256x8xf32, #tpu.memory_space<vmem>>, %arg8: memref<256x36xf32, #tpu.memory_space<vmem>>) attributes {dimension_semantics = [#tpu.dimension_semantics<parallel>], iteration_bounds = array<i64: 2>, scalar_prefetch = 0 : i64, scratch_operands = 1 : i64, tpu.core_type = #tpu.core_type<tc>, window_params = [{transform_indices = @transform_0, window_bounds = array<i64: 1, 256, 4>}, {pipeline_mode = #tpu.pipeline_mode<synchronous>, transform_indices = @transform_1, window_bounds = array<i64: 256, 9>}, {pipeline_mode = #tpu.pipeline_mode<synchronous>, transform_indices = @transform_2, window_bounds = array<i64: 36, 8>}, {pipeline_mode = #tpu.pipeline_mode<synchronous>, transform_indices = @transform_3, window_bounds = array<i64: 1, 8>}, {pipeline_mode = #tpu.pipeline_mode<synchronous>, transform_indices = @transform_4, window_bounds = array<i64: 4, 8>}, {pipeline_mode = #tpu.pipeline_mode<synchronous>, transform_indices = @transform_5, window_bounds = array<i64: 1, 8>}, {transform_indices = @transform_6, window_bounds = array<i64: 1, 256, 8>}]} {
    %c0 = arith.constant 0 : index
    %c0_0 = arith.constant 0 : index
    %c0_1 = arith.constant 0 : index
    %0 = vector.load %arg1[%c0, %c0_0, %c0_1] : memref<1x256x4xf32, #tpu.memory_space<vmem>>, vector<1x256x4xf32>
    %1 = vector.shape_cast %0 : vector<1x256x4xf32> to vector<256x4xf32>
    %c17_i32 = arith.constant 17 : i32
    %2 = tpu.dynamic_rotate %1 by %c17_i32 dim 0 : vector<256x4xf32>, i32 -> vector<256x4xf32>
    %c0_2 = arith.constant 0 : index
    %c0_3 = arith.constant 0 : index
    %3 = vector.load %arg2[%c0_2, %c0_3] : memref<256x9xf32, #tpu.memory_space<vmem>>, vector<256x1xf32>
    %4 = vector.broadcast %3 : vector<256x1xf32> to vector<256x4xf32>
    %5 = arith.mulf %2, %4 : vector<256x4xf32>
    %c0_4 = arith.constant 0 : index
    %c0_5 = arith.constant 0 : index
    %6 = vector.load %arg8[%c0_4, %c0_5] : memref<256x36xf32, #tpu.memory_space<vmem>>, vector<256x4xf32>
    tpu.vector_store %arg8[%c0_4, %c0_5], %5 {strides = array<i32>} : memref<256x36xf32, #tpu.memory_space<vmem>>, vector<256x4xf32>,
    %c16_i32 = arith.constant 16 : i32
    %7 = tpu.dynamic_rotate %1 by %c16_i32 dim 0 : vector<256x4xf32>, i32 -> vector<256x4xf32>
    %c0_6 = arith.constant 0 : index
    %c1 = arith.constant 1 : index
    %8 = vector.load %arg2[%c0_6, %c1] : memref<256x9xf32, #tpu.memory_space<vmem>>, vector<256x1xf32>
    %9 = vector.broadcast %8 : vector<256x1xf32> to vector<256x4xf32>
    %10 = arith.mulf %7, %9 : vector<256x4xf32>
    %c0_7 = arith.constant 0 : index
    %c4 = arith.constant 4 : index
    %11 = vector.load %arg8[%c0_7, %c4] : memref<256x36xf32, #tpu.memory_space<vmem>>, vector<256x4xf32>
    tpu.vector_store %arg8[%c0_7, %c4], %10 {strides = array<i32>} : memref<256x36xf32, #tpu.memory_space<vmem>>, vector<256x4xf32>,
    %c15_i32 = arith.constant 15 : i32
    %12 = tpu.dynamic_rotate %1 by %c15_i32 dim 0 : vector<256x4xf32>, i32 -> vector<256x4xf32>
    %c0_8 = arith.constant 0 : index
    %c2 = arith.constant 2 : index
    %13 = vector.load %arg2[%c0_8, %c2] : memref<256x9xf32, #tpu.memory_space<vmem>>, vector<256x1xf32>
    %14 = vector.broadcast %13 : vector<256x1xf32> to vector<256x4xf32>
    %15 = arith.mulf %12, %14 : vector<256x4xf32>
    %c0_9 = arith.constant 0 : index
    %c8 = arith.constant 8 : index
    %16 = vector.load %arg8[%c0_9, %c8] : memref<256x36xf32, #tpu.memory_space<vmem>>, vector<256x4xf32>
    tpu.vector_store %arg8[%c0_9, %c8], %15 {strides = array<i32>} : memref<256x36xf32, #tpu.memory_space<vmem>>, vector<256x4xf32>,
    %c1_i32 = arith.constant 1 : i32
    %17 = tpu.dynamic_rotate %1 by %c1_i32 dim 0 : vector<256x4xf32>, i32 -> vector<256x4xf32>
    %c0_10 = arith.constant 0 : index
    %c3 = arith.constant 3 : index
    %18 = vector.load %arg2[%c0_10, %c3] : memref<256x9xf32, #tpu.memory_space<vmem>>, vector<256x1xf32>
    %19 = vector.broadcast %18 : vector<256x1xf32> to vector<256x4xf32>
    %20 = arith.mulf %17, %19 : vector<256x4xf32>
    %c0_11 = arith.constant 0 : index
    %c12 = arith.constant 12 : index
    %21 = vector.load %arg8[%c0_11, %c12] : memref<256x36xf32, #tpu.memory_space<vmem>>, vector<256x4xf32>
    tpu.vector_store %arg8[%c0_11, %c12], %20 {strides = array<i32>} : memref<256x36xf32, #tpu.memory_space<vmem>>, vector<256x4xf32>,
    %c0_12 = arith.constant 0 : index
    %c16 = arith.constant 16 : index
    %22 = vector.load %arg8[%c0_12, %c16] : memref<256x36xf32, #tpu.memory_space<vmem>>, vector<256x4xf32>
    tpu.vector_store %arg8[%c0_12, %c16], %1 {strides = array<i32>} : memref<256x36xf32, #tpu.memory_space<vmem>>, vector<256x4xf32>,
    %c255_i32 = arith.constant 255 : i32
    %23 = tpu.dynamic_rotate %1 by %c255_i32 dim 0 : vector<256x4xf32>, i32 -> vector<256x4xf32>
    %c0_13 = arith.constant 0 : index
    %c5 = arith.constant 5 : index
    %24 = vector.load %arg2[%c0_13, %c5] : memref<256x9xf32, #tpu.memory_space<vmem>>, vector<256x1xf32>
    %25 = vector.broadcast %24 : vector<256x1xf32> to vector<256x4xf32>
    %26 = arith.mulf %23, %25 : vector<256x4xf32>
    %c0_14 = arith.constant 0 : index
    %c20 = arith.constant 20 : index
    %27 = vector.load %arg8[%c0_14, %c20] : memref<256x36xf32, #tpu.memory_space<vmem>>, vector<256x4xf32>
    tpu.vector_store %arg8[%c0_14, %c20], %26 {strides = array<i32>} : memref<256x36xf32, #tpu.memory_space<vmem>>, vector<256x4xf32>,
    %c241_i32 = arith.constant 241 : i32
    %28 = tpu.dynamic_rotate %1 by %c241_i32 dim 0 : vector<256x4xf32>, i32 -> vector<256x4xf32>
    %c0_15 = arith.constant 0 : index
    %c6 = arith.constant 6 : index
    %29 = vector.load %arg2[%c0_15, %c6] : memref<256x9xf32, #tpu.memory_space<vmem>>, vector<256x1xf32>
    %30 = vector.broadcast %29 : vector<256x1xf32> to vector<256x4xf32>
    %31 = arith.mulf %28, %30 : vector<256x4xf32>
    %c0_16 = arith.constant 0 : index
    %c24 = arith.constant 24 : index
    %32 = vector.load %arg8[%c0_16, %c24] : memref<256x36xf32, #tpu.memory_space<vmem>>, vector<256x4xf32>
    tpu.vector_store %arg8[%c0_16, %c24], %31 {strides = array<i32>} : memref<256x36xf32, #tpu.memory_space<vmem>>, vector<256x4xf32>,
    %c240_i32 = arith.constant 240 : i32
    %33 = tpu.dynamic_rotate %1 by %c240_i32 dim 0 : vector<256x4xf32>, i32 -> vector<256x4xf32>
    %c0_17 = arith.constant 0 : index
    %c7 = arith.constant 7 : index
    %34 = vector.load %arg2[%c0_17, %c7] : memref<256x9xf32, #tpu.memory_space<vmem>>, vector<256x1xf32>
    %35 = vector.broadcast %34 : vector<256x1xf32> to vector<256x4xf32>
    %36 = arith.mulf %33, %35 : vector<256x4xf32>
    %c0_18 = arith.constant 0 : index
    %c28 = arith.constant 28 : index
    %37 = vector.load %arg8[%c0_18, %c28] : memref<256x36xf32, #tpu.memory_space<vmem>>, vector<256x4xf32>
    tpu.vector_store %arg8[%c0_18, %c28], %36 {strides = array<i32>} : memref<256x36xf32, #tpu.memory_space<vmem>>, vector<256x4xf32>,
    %c239_i32 = arith.constant 239 : i32
    %38 = tpu.dynamic_rotate %1 by %c239_i32 dim 0 : vector<256x4xf32>, i32 -> vector<256x4xf32>
    %c0_19 = arith.constant 0 : index
    %c8_20 = arith.constant 8 : index
    %39 = vector.load %arg2[%c0_19, %c8_20] : memref<256x9xf32, #tpu.memory_space<vmem>>, vector<256x1xf32>
    %40 = vector.broadcast %39 : vector<256x1xf32> to vector<256x4xf32>
    %41 = arith.mulf %38, %40 : vector<256x4xf32>
    %c0_21 = arith.constant 0 : index
    %c32 = arith.constant 32 : index
    %42 = vector.load %arg8[%c0_21, %c32] : memref<256x36xf32, #tpu.memory_space<vmem>>, vector<256x4xf32>
    tpu.vector_store %arg8[%c0_21, %c32], %41 {strides = array<i32>} : memref<256x36xf32, #tpu.memory_space<vmem>>, vector<256x4xf32>,
    %c0_22 = arith.constant 0 : index
    %c0_23 = arith.constant 0 : index
    %43 = vector.load %arg8[%c0_22, %c0_23] : memref<256x36xf32, #tpu.memory_space<vmem>>, vector<256x36xf32>
    %c0_24 = arith.constant 0 : index
    %c0_25 = arith.constant 0 : index
    %44 = vector.load %arg3[%c0_24, %c0_25] : memref<36x8xf32, #tpu.memory_space<vmem>>, vector<36x8xf32>
    %cst = arith.constant dense<0.000000e+00> : vector<256x8xf32>
    %45 = tpu.matmul %43, %44, %cst {dimension_numbers = #tpu.dot_dimension_numbers<[1], [0], [0], [1], [0, 0, 1, 1], [], []>} : vector<256x36xf32>, vector<36x8xf32>, vector<256x8xf32> -> vector<256x8xf32>
    %c0_26 = arith.constant 0 : index
    %c0_27 = arith.constant 0 : index
    %46 = vector.load %arg4[%c0_26, %c0_27] : memref<1x8xf32, #tpu.memory_space<vmem>>, vector<1x8xf32>
    %47 = vector.broadcast %46 : vector<1x8xf32> to vector<256x8xf32>
    %48 = arith.addf %45, %47 : vector<256x8xf32>
    %cst_28 = arith.constant 1.000000e-01 : f32
    %49 = vector.broadcast %cst_28 : f32 to vector<256x8xf32>
    %50 = arith.mulf %49, %48 : vector<256x8xf32>
    %51 = arith.maximumf %48, %50 : vector<256x8xf32>
    %c0_29 = arith.constant 0 : index
    %c0_30 = arith.constant 0 : index
    %52 = vector.load %arg5[%c0_29, %c0_30] : memref<4x8xf32, #tpu.memory_space<vmem>>, vector<4x8xf32>
    %cst_31 = arith.constant dense<0.000000e+00> : vector<256x8xf32>
    %53 = tpu.matmul %1, %52, %cst_31 {dimension_numbers = #tpu.dot_dimension_numbers<[1], [0], [0], [1], [0, 0, 1, 1], [], []>} : vector<256x4xf32>, vector<4x8xf32>, vector<256x8xf32> -> vector<256x8xf32>
    %54 = arith.addf %51, %53 : vector<256x8xf32>
    %c0_32 = arith.constant 0 : index
    %c0_33 = arith.constant 0 : index
    %55 = vector.load %arg6[%c0_32, %c0_33] : memref<1x8xf32, #tpu.memory_space<vmem>>, vector<1x8xf32>
    %56 = vector.broadcast %55 : vector<1x8xf32> to vector<256x8xf32>
    %57 = arith.addf %54, %56 : vector<256x8xf32>
    %c0_34 = arith.constant 0 : index
    %c0_35 = arith.constant 0 : index
    %c0_36 = arith.constant 0 : index
    %58 = vector.load %arg7[%c0_34, %c0_35, %c0_36] : memref<1x256x8xf32, #tpu.memory_space<vmem>>, vector<1x256x8xf32>
    %59 = vector.shape_cast %58 : vector<1x256x8xf32> to vector<256x8xf32>
    %60 = vector.shape_cast %57 : vector<256x8xf32> to vector<1x256x8xf32>
    tpu.vector_store %arg7[%c0_34, %c0_35, %c0_36], %60 {strides = array<i32>} : memref<1x256x8xf32, #tpu.memory_space<vmem>>, vector<1x256x8xf32>,
    return
  }
  func.func @transform_0(%arg0: i32) -> (i32, i32, i32) {
    %c0_i32 = arith.constant 0 : i32
    %c0_i32_0 = arith.constant 0 : i32
    %c0_i32_1 = arith.constant 0 : i32
    return %arg0, %c0_i32, %c0_i32_0 : i32, i32, i32
  }
  func.func @transform_1(%arg0: i32) -> (i32, i32) {
    %c0_i32 = arith.constant 0 : i32
    %c0_i32_0 = arith.constant 0 : i32
    %c0_i32_1 = arith.constant 0 : i32
    return %c0_i32, %c0_i32_0 : i32, i32
  }
  func.func @transform_2(%arg0: i32) -> (i32, i32) {
    %c0_i32 = arith.constant 0 : i32
    %c0_i32_0 = arith.constant 0 : i32
    %c0_i32_1 = arith.constant 0 : i32
    return %c0_i32, %c0_i32_0 : i32, i32
  }
  func.func @transform_3(%arg0: i32) -> (i32, i32) {
    %c0_i32 = arith.constant 0 : i32
    %c0_i32_0 = arith.constant 0 : i32
    %c0_i32_1 = arith.constant 0 : i32
    return %c0_i32, %c0_i32_0 : i32, i32
  }
  func.func @transform_4(%arg0: i32) -> (i32, i32) {
    %c0_i32 = arith.constant 0 : i32
    %c0_i32_0 = arith.constant 0 : i32
    %c0_i32_1 = arith.constant 0 : i32
    return %c0_i32, %c0_i32_0 : i32, i32
  }
  func.func @transform_5(%arg0: i32) -> (i32, i32) {
    %c0_i32 = arith.constant 0 : i32
    %c0_i32_0 = arith.constant 0 : i32
    %c0_i32_1 = arith.constant 0 : i32
    return %c0_i32, %c0_i32_0 : i32, i32
  }
  func.func @transform_6(%arg0: i32) -> (i32, i32, i32) {
    %c0_i32 = arith.constant 0 : i32
    %c0_i32_0 = arith.constant 0 : i32
    %c0_i32_1 = arith.constant 0 : i32
    return %arg0, %c0_i32, %c0_i32_0 : i32, i32, i32
  }
}

</mosaic_0001>

<bundles_post_ra>
// kernel: conv_block_pallas.1
= control target key start
LH: loop header
LB: loop body
LE: loop exit
PB: predicated region body
PF: predicated region fallthrough
CT: control target
= control target key end

     0   :  { %s4875_s21 = smov 0   ;;  %s7456_s0 = inlined_call_operand.vmem [shape: f32[2,256,4], index: 0, kind: input, shape index: {}]   ;;  %s7457_s1 = inlined_call_operand.vmem [shape: f32[256,9], index: 1, kind: input, shape index: {}]   ;;  %s7458_s2 = inlined_call_operand.vmem [shape: f32[36,8], index: 2, kind: input, shape index: {}]   ;;  %s7459_s3 = inlined_call_operand.vmem [shape: f32[1,8], index: 3, kind: input, shape index: {}]   ;;  %s7460_s4 = inlined_call_operand.vmem [shape: f32[4,8], index: 4, kind: input, shape index: {}]   ;;  %s7461_s5 = inlined_call_operand.vmem [shape: f32[1,8], index: 5, kind: input, shape index: {}]   ;;  %s7462_s6 = inlined_call_operand.vmem [shape: f32[2,256,8], index: 6, kind: output, shape index: {}]  }
   0x1 LB: > { %s4415_s22 = sadd.s32 4294967295, %s4822_s21   ;;  %p4419_p0 = scmp.ge.s32.totalorder %s4822_s21, 1  ;;  %s4822_s21 = sphi %s4875_s21, %s16_s21  }
   0x2   : > { %p212_p1 = scmp.lt.s32.totalorder %s4822_s21, 3 }
   0x4   : > { %p213_p2 = pnand %p4419_p0, %p212_p1 }
   0x6   : > { %216 = sbr.rel (%p213_p2) target bundleno = 1798 (0x706), region = 44 }
   0xd   : > { %v4886_v0 = vld [vmem:[%s7457_s1 + $0x10] sm:$0xff]  ;;  %v4891_v1 = vld [vmem:[%s7457_s1] sm:$0xff]  ;;  %v4824_v2 = vmov 0   ;;  %p242_p3 = scmp.lt.s32.totalorder %s4415_s22, 1  ;;  %v4898_v3 = vld [vmem:[%s7457_s1 + $0x18] sm:$0xff]  ;;  %vm575_vm0 = vcmask 31744   ;;  %v316_v35 = vlaneseq }
   0xe   : > { %4707 = vset.pattern.permute.xlu1 %v4824_v2  ;;  %4706 = vset.pattern.permute.xlu0 %v4824_v2  ;;  %v4903_v4 = vld [vmem:[%s7457_s1 + $0x8] sm:$0xff]  ;;  %v4918_v6 = vld [vmem:[%s7457_s1 + $0x20] sm:$0xff]  ;;  %v4935_v8 = vld [vmem:[%s7457_s1 + $0x38] sm:$0xff]  ;;  %v4825_v34 = vmov 1   ;;  %v4826_v58 = vmov 2   ;;  %s4827_s29 = smov 4  }
   0xf   : > { %395 = vperm.xlu1 %4707, %v4886_v0   ;;  %385 = vperm.xlu0 %4706, %v4891_v1   ;;  %s7764_s22 = smov (!%p242_p3, %s4415_s22), 1  ;;  %v4913_v5 = vld [vmem:[%s7457_s1 + $0x28] sm:$0xff]  ;;  %v4940_v9 = vld [vmem:[%s7457_s1 + $0x30] sm:$0xff]  ;;  %v4954_v11 = vld [vmem:[%s7457_s1 + $0x40] sm:$0xff]  ;;  %v5121_v37 = vshrl.u32 %v316_v35, 7  ;;  %vm960_vm2 = vcmask 64544  }
  0x10   : > { %s4494_s7 = sshll.u32 %s7764_s22, 8  ;;  %v4949_v10 = vld [vmem:[%s7457_s1 + $0x48] sm:$0xff]  ;;  %v4961_v12 = vld [vmem:[%s7457_s1 + $0x58] sm:$0xff]  ;;  %v4966_v13 = vld [vmem:[%s7457_s1 + $0x50] sm:$0xff]  ;;  %s4829_s30 = smov 8   ;;  %vm1410_vm4 = vcmask 97344  }
  0x11   : > { %s4925_s14 = scalar_lea.vmem %s7456_s0, %s4494_s7  ;;  %v4973_v14 = vld [vmem:[%s7457_s1 + $0x68] sm:$0xff]  ;;  %v4978_v15 = vld [vmem:[%s7457_s1 + $0x60] sm:$0xff]  ;;  %v4985_v16 = vld [vmem:[%s7457_s1 + $0x78] sm:$0xff]  ;;  %vm318_vm1 = vcmp.lt.s32.totalorder %v5121_v37, 1  ;;  %vm1025_vm3 = vcmp.lt.s32.totalorder %v5121_v37, 7  ;;  %s4830_s12 = smov 12  }
  0x12   : > { %v4930_v7 = vld [vmem:[%s4925_s14] sm:$0xff]  ;;  %7582 = vst [vmem:[#allocation3_spill] sm:$0xff] %v4985_v16  ;;  %v4990_v17 = vld [vmem:[%s7457_s1 + $0x70] sm:$0xff]  ;;  %v4997_v18 = vld [vmem:[%s7457_s1 + $0x88] sm:$0xff]  ;;  %s4832_s13 = smov 16   ;;  %vm1795_vm5 = vcmask 130144  }
  0x13   : > { %400 = vperm.xlu1 %4707, %v4898_v3   ;;  %390 = vperm.xlu0 %4706, %v4903_v4   ;;  %7583 = vst [vmem:[#allocation4_spill] sm:$0xff] %v4997_v18  ;;  %v5002_v19 = vld [vmem:[%s7457_s1 + $0x80] sm:$0xff]  ;;  %v5009_v20 = vld [vmem:[%s7457_s1 + $0x98] sm:$0xff]  ;;  %v5014_v21 = vld [vmem:[%s7457_s1 + $0x90] sm:$0xff]  ;;  %v284_v40 = vrot.slane %v4930_v7, 7  ;;  %vm1956_vm6 = vcmask 162944  }
  0x14   : > { %4626 = vmatprep.mubr.msk.f32.mxu1 %vm575_vm0, %v4930_v7  ;;  %7584 = vst [vmem:[#allocation5_spill] sm:$0xff] %v5009_v20  ;;  %v5021_v22 = vld [vmem:[%s7457_s1 + $0xa8] sm:$0xff]  ;;  %v5026_v23 = vld [vmem:[%s7457_s1 + $0xa0] sm:$0xff]  ;;  %v5033_v24 = vld [vmem:[%s7457_s1 + $0xb8] sm:$0xff]  ;;  %s4834_s15 = smov 20   ;;  %vm2341_vm7 = vcmask 195744  }
  0x15   : > { %7585 = vst [vmem:[#allocation6_spill] sm:$0xff] %v5021_v22  ;;  %7586 = vst [vmem:[#allocation7_spill] sm:$0xff] %v5026_v23  ;;  %v5038_v25 = vld [vmem:[%s7457_s1 + $0xb0] sm:$0xff]  ;;  %v5045_v26 = vld [vmem:[%s7457_s1 + $0xc8] sm:$0xff]  ;;  %s4836_s20 = smov 24   ;;  %vm2726_vm8 = vcmask 228544  }
  0x16   : > { %7587 = vst [vmem:[#allocation8_spill] sm:$0xff] %v5033_v24  ;;  %7588 = vst [vmem:[#allocation9_spill] sm:$0xff] %v5038_v25  ;;  %v5050_v27 = vld [vmem:[%s7457_s1 + $0xc0] sm:$0xff]  ;;  %v5057_v28 = vld [vmem:[%s7457_s1 + $0xd8] sm:$0xff]  ;;  %s4838_s23 = smov 28   ;;  %s4839_s24 = smov 32  }
  0x17   : > { %410 = vperm.xlu1 %4707, %v4913_v5   ;;  %405 = vperm.xlu0 %4706, %v4918_v6   ;;  %7589 = vst [vmem:[#allocation10_spill] sm:$0xff] %v5045_v26  ;;  %7590 = vst [vmem:[#allocation11_spill] sm:$0xff] %v5050_v27  ;;  %v5062_v29 = vld [vmem:[%s7457_s1 + $0xd0] sm:$0xff]  ;;  %v5069_v30 = vld [vmem:[%s7457_s1 + $0xe8] sm:$0xff]  ;;  %vm3670_vm9 = vcmask 1043456   ;;  %vm3111_vm10 = vcmask 261344  }
  0x18   : > { %7591 = vst [vmem:[#allocation12_spill] sm:$0xff] %v5057_v28  ;;  %7592 = vst [vmem:[#allocation13_spill] sm:$0xff] %v5062_v29  ;;  %v5074_v31 = vld [vmem:[%s7457_s1 + $0xe0] sm:$0xff]  ;;  %v5081_v32 = vld [vmem:[%s7457_s1 + $0xf8] sm:$0xff]  ;;  %vm3496_vm11 = vcmask 294144   ;;  %vm3573_vm12 = vcmask 293888  }
  0x19   : > { %7593 = vst [vmem:[#allocation14_spill] sm:$0xff] %v5069_v30  ;;  %7594 = vst [vmem:[#allocation15_spill] sm:$0xff] %v5074_v31  ;;  %v5086_v33 = vld [vmem:[%s7457_s1 + $0xf0] sm:$0xff]  ;;  %v5119_v36 = vld [vmem:[%s4925_s14 + $0xf8] sm:$0xff]  ;;  %vm4327_vm13 = vcmask 64512  }
  0x1a   : > { %7595 = vst [vmem:[#allocation16_spill] sm:$0xff] %v5081_v32  ;;  %7596 = vst [vmem:[#allocation17_spill] sm:$0xff] %v5086_v33  ;;  %v5124_v38 = vld [vmem:[%s4925_s14 + $0xe8] sm:$0xff]  ;;  %v5127_v39 = vld [vmem:[%s4925_s14 + $0xf0] sm:$0xff]  ;;  %v315_v41 = vrot.slane %v5119_v36, 7 }
  0x1b   : > { %420 = vperm.xlu1 %4707, %v4935_v8   ;;  %415 = vperm.xlu0 %4706, %v4940_v9   ;;  %v7463_v42 = vrot.slane %v5124_v38, 7  ;;  %v314_v43 = vrot.slane %v5127_v39, 7  ;;  %v5137_v44 = vld [vmem:[%s4925_s14 + $0x8] sm:$0xff]  ;;  %v5153_v48 = vld [vmem:[%s4925_s14 + $0x10] sm:$0xff]  ;;  %v5156_v49 = vld [vmem:[%s4925_s14 + $0x18] sm:$0xff] }
  0x1c   : > { %v5143_v45 = vsel %vm318_vm1, %v315_v41, %v284_v40  ;;  %v285_v47 = vrot.slane %v5137_v44, 7  ;;  %v286_v56 = vrot.slane %v5153_v48, 7  ;;  %v287_v57 = vrot.slane %v5156_v49, 7  ;;  %v5173_v59 = vld [vmem:[%s4925_s14 + $0x20] sm:$0xff]  ;;  %v5176_v60 = vld [vmem:[%s4925_s14 + $0x28] sm:$0xff] }
  0x1d   : > { %7597 = vst [vmem:[#allocation18_spill] sm:$0xff] %v5143_v45  ;;  %v5149_v46 = vsel %vm318_vm1, %v7463_v42, %v314_v43  ;;  %v5166_v55 = vsel %vm318_vm1, %v314_v43, %v315_v41  ;;  %v289_v41 = vrot.slane %v5176_v60, 7  ;;  %v5193_v43 = vld [vmem:[%s4925_s14 + $0x30] sm:$0xff]  ;;  %v5808_v37 = vld [vmem:[%s7457_s1] sm:$0xff] }
  0x1e   : > { %7598 = vst [vmem:[#allocation19_spill] sm:$0xff] %v5149_v46  ;;  %v5162_v54 = vsel %vm318_vm1, %v284_v40, %v285_v47  ;;  %7600 = vst [vmem:[#allocation21_spill] sm:$0xff] %v5166_v55  ;;  %v5186_v35 = vsel %vm318_vm1, %v285_v47, %v286_v56  ;;  %v288_v40 = vrot.slane %v5173_v59, 7 }
  0x1f   : > { %430 = vperm.xlu1 %4707, %v4949_v10   ;;  %425 = vperm.xlu0 %4706, %v4954_v11   ;;  %7599 = vst [vmem:[#allocation20_spill] sm:$0xff] %v5162_v54  ;;  %7602 = vst [vmem:[#allocation23_spill] sm:$0xff] %v5186_v35 }
  0x23   : > { %440 = vperm.xlu1 %4707, %v4961_v12   ;;  %435 = vperm.xlu0 %4706, %v4966_v13  }
  0x27   : > { %450 = vperm.xlu1 %4707, %v4973_v14   ;;  %445 = vperm.xlu0 %4706, %v4978_v15  }
  0x2b   : > { %460 = vperm.xlu1 %4707, %v4985_v16   ;;  %455 = vperm.xlu0 %4706, %v4990_v17  }
  0x2f   : > { %470 = vperm.xlu1 %4707, %v4997_v18   ;;  %465 = vperm.xlu0 %4706, %v5002_v19  }
  0x33   : > { %480 = vperm.xlu1 %4707, %v5009_v20   ;;  %475 = vperm.xlu0 %4706, %v5014_v21  }
  0x37   : > { %490 = vperm.xlu1 %4707, %v5021_v22   ;;  %485 = vperm.xlu0 %4706, %v5026_v23  }
  0x3b   : > { %500 = vperm.xlu1 %4707, %v5033_v24   ;;  %495 = vperm.xlu0 %4706, %v5038_v25  }
  0x3f   : > { %510 = vperm.xlu1 %4707, %v5045_v26   ;;  %505 = vperm.xlu0 %4706, %v5050_v27  }
  0x43   : > { %520 = vperm.xlu1 %4707, %v5057_v28   ;;  %515 = vperm.xlu0 %4706, %v5062_v29  }
  0x47   : > { %530 = vperm.xlu1 %4707, %v5069_v30   ;;  %525 = vperm.xlu0 %4706, %v5074_v31  }
  0x4b   : > { %540 = vperm.xlu1 %4707, %v5081_v32   ;;  %535 = vperm.xlu0 %4706, %v5086_v33  }
  0x4f   : > { %4709 = vset.pattern.permute.xlu1 %v4825_v34  ;;  %4708 = vset.pattern.permute.xlu0 %v4825_v34  ;;  %v5182_v34 = vsel %vm318_vm1, %v286_v56, %v287_v57  ;;  %v5202_v56 = vsel %vm318_vm1, %v288_v40, %v289_v41 }
  0x50   : > { %647 = vperm.xlu1 %4709, %v4903_v4   ;;  %642 = vperm.xlu0 %4708, %v4891_v1   ;;  %7601 = vst [vmem:[#allocation22_spill] sm:$0xff] %v5182_v34  ;;  %7603 = vst [vmem:[#allocation24_spill] sm:$0xff] %v5202_v56 }
  0x54   : > { %652 = vperm.xlu1 %4709, %v4886_v0   ;;  %657 = vperm.xlu0 %4708, %v4898_v3  }
  0x58   : > { %662 = vperm.xlu1 %4709, %v4918_v6   ;;  %667 = vperm.xlu0 %4708, %v4913_v5  }
  0x5c   : > { %672 = vperm.xlu1 %4709, %v4940_v9   ;;  %677 = vperm.xlu0 %4708, %v4935_v8  }
  0x60   : > { %682 = vperm.xlu1 %4709, %v4954_v11   ;;  %687 = vperm.xlu0 %4708, %v4949_v10  }
  0x64   : > { %692 = vperm.xlu1 %4709, %v4966_v13   ;;  %697 = vperm.xlu0 %4708, %v4961_v12  }
  0x68   : > { %702 = vperm.xlu1 %4709, %v4978_v15   ;;  %707 = vperm.xlu0 %4708, %v4973_v14  }
  0x6c   : > { %712 = vperm.xlu1 %4709, %v4990_v17   ;;  %717 = vperm.xlu0 %4708, %v4985_v16  }
  0x70   : > { %722 = vperm.xlu1 %4709, %v5002_v19   ;;  %727 = vperm.xlu0 %4708, %v4997_v18  }
  0x74   : > { %732 = vperm.xlu1 %4709, %v5014_v21   ;;  %737 = vperm.xlu0 %4708, %v5009_v20  }
  0x78   : > { %742 = vperm.xlu1 %4709, %v5026_v23   ;;  %747 = vperm.xlu0 %4708, %v5021_v22   ;;  %v5413_v23 = vld [vmem:[%s4925_s14 + $0xe0] sm:$0xff] }
  0x7c   : > { %752 = vperm.xlu1 %4709, %v5038_v25   ;;  %757 = vperm.xlu0 %4708, %v5033_v24  }
  0x80   : > { %762 = vperm.xlu1 %4709, %v5050_v27   ;;  %767 = vperm.xlu0 %4708, %v5045_v26  }
  0x84   : > { %772 = vperm.xlu1 %4709, %v5062_v29   ;;  %777 = vperm.xlu0 %4708, %v5057_v28  }
  0x88   : > { %782 = vperm.xlu1 %4709, %v5074_v31   ;;  %787 = vperm.xlu0 %4708, %v5069_v30  }
  0x8c   : > { %792 = vperm.xlu1 %4709, %v5086_v33   ;;  %797 = vperm.xlu0 %4708, %v5081_v32  }
  0x8e   : > { %v396_v50 = vpop.permute.xlu1 %395  ;;  %v386_v51 = vpop.permute.xlu0 %385 }
  0x8f   : > { %v545_v52 = vmul.f32 %v396_v50, %v5143_v45  ;;  %v543_v53 = vmul.f32 %v386_v51, %v5149_v46  ;;  %v5196_v50 = vld [vmem:[%s4925_s14 + $0x38] sm:$0xff] }
  0x90   : > { %4710 = vset.pattern.permute.xlu1 %v4826_v58  ;;  %4711 = vset.pattern.permute.xlu0 %v4826_v58  ;;  %v5206_v58 = vsel %vm318_vm1, %v287_v57, %v288_v40 }
  0x91   : > { %578 = vst.msk [vmem:[#allocation2 + $0x10] sm:$0xff] %vm575_vm0, %v545_v52  ;;  %576 = vst.msk [vmem:[#allocation2] sm:$0xff] %vm575_vm0, %v543_v53 }
  0x92   : > { %v401_v61 = vpop.permute.xlu1 %400  ;;  %v391_v62 = vpop.permute.xlu0 %390  ;;  %7604 = vst [vmem:[#allocation25_spill] sm:$0xff] %v5206_v58 }
  0x93   : > { %v546_v63 = vmul.f32 %v401_v61, %v5162_v54  ;;  %v544_v2 = vmul.f32 %v391_v62, %v5166_v55  ;;  %v290_v61 = vrot.slane %v5193_v43, 7  ;;  %v291_v62 = vrot.slane %v5196_v50, 7 }
  0x95   : > { %579 = vst.msk [vmem:[#allocation2 + $0x18] sm:$0xff] %vm575_vm0, %v546_v63  ;;  %577 = vst.msk [vmem:[#allocation2 + $0x8] sm:$0xff] %vm575_vm0, %v544_v2  ;;  %v5213_v63 = vld [vmem:[%s4925_s14 + $0x40] sm:$0xff]  ;;  %v5216_v2 = vld [vmem:[%s4925_s14 + $0x48] sm:$0xff]  ;;  %v5222_v40 = vsel %vm318_vm1, %v290_v61, %v291_v62  ;;  %v5226_v46 = vsel %vm318_vm1, %v289_v41, %v290_v61 }
  0x96   : > { %v411_v51 = vpop.permute.xlu1 %410  ;;  %v406_v52 = vpop.permute.xlu0 %405  ;;  %7605 = vst [vmem:[#allocation26_spill] sm:$0xff] %v5222_v40  ;;  %7606 = vst [vmem:[#allocation27_spill] sm:$0xff] %v5226_v46 }
  0x97   : > { %v548_v53 = vmul.f32 %v411_v51, %v5182_v34  ;;  %v547_v47 = vmul.f32 %v406_v52, %v5186_v35 }
  0x99   : > { %581 = vst.msk [vmem:[#allocation2 + $0x28] sm:$0xff] %vm575_vm0, %v548_v53  ;;  %580 = vst.msk [vmem:[#allocation2 + $0x20] sm:$0xff] %vm575_vm0, %v547_v47  ;;  %v292_v53 = vrot.slane %v5213_v63, 7  ;;  %v293_v47 = vrot.slane %v5216_v2, 7 }
  0x9a   : > { %v421_v51 = vpop.permute.xlu1 %420  ;;  %v416_v52 = vpop.permute.xlu0 %415 }
  0x9b   : > { %v550_v42 = vmul.f32 %v421_v51, %v5202_v56  ;;  %v549_v57 = vmul.f32 %v416_v52, %v5206_v58  ;;  %v5233_v51 = vld [vmem:[%s4925_s14 + $0x50] sm:$0xff]  ;;  %v5236_v52 = vld [vmem:[%s4925_s14 + $0x58] sm:$0xff]  ;;  %v5242_v61 = vsel %vm318_vm1, %v292_v53, %v293_v47  ;;  %v5246_v35 = vsel %vm318_vm1, %v291_v62, %v292_v53 }
  0x9c   : > { %7607 = vst [vmem:[#allocation28_spill] sm:$0xff] %v5242_v61  ;;  %7608 = vst [vmem:[#allocation29_spill] sm:$0xff] %v5246_v35 }
  0x9d   : > { %583 = vst.msk [vmem:[#allocation2 + $0x38] sm:$0xff] %vm575_vm0, %v550_v42  ;;  %582 = vst.msk [vmem:[#allocation2 + $0x30] sm:$0xff] %vm575_vm0, %v549_v57  ;;  %v294_v42 = vrot.slane %v5233_v51, 7  ;;  %v295_v57 = vrot.slane %v5236_v52, 7 }
  0x9e   : > { %v431_v55 = vpop.permute.xlu1 %430  ;;  %v426_v58 = vpop.permute.xlu0 %425 }
  0x9f   : > { %v552_v56 = vmul.f32 %v431_v55, %v5222_v40  ;;  %v551_v41 = vmul.f32 %v426_v58, %v5226_v46  ;;  %v5253_v55 = vld [vmem:[%s4925_s14 + $0x60] sm:$0xff]  ;;  %v5256_v58 = vld [vmem:[%s4925_s14 + $0x68] sm:$0xff]  ;;  %v5262_v53 = vsel %vm318_vm1, %v294_v42, %v295_v57  ;;  %v5266_v54 = vsel %vm318_vm1, %v293_v47, %v294_v42 }
  0xa0   : > { %7609 = vst [vmem:[#allocation30_spill] sm:$0xff] %v5262_v53  ;;  %7610 = vst [vmem:[#allocation31_spill] sm:$0xff] %v5266_v54 }
  0xa1   : > { %585 = vst.msk [vmem:[#allocation2 + $0x48] sm:$0xff] %vm575_vm0, %v552_v56  ;;  %584 = vst.msk [vmem:[#allocation2 + $0x40] sm:$0xff] %vm575_vm0, %v551_v41  ;;  %v296_v56 = vrot.slane %v5253_v55, 7  ;;  %v297_v41 = vrot.slane %v5256_v58, 7 }
  0xa2   : > { %v441_v46 = vpop.permute.xlu1 %440  ;;  %v436_v40 = vpop.permute.xlu0 %435 }
  0xa3   : > { %v554_v34 = vmul.f32 %v441_v46, %v5242_v61  ;;  %v553_v62 = vmul.f32 %v436_v40, %v5246_v35  ;;  %v5273_v46 = vld [vmem:[%s4925_s14 + $0x70] sm:$0xff]  ;;  %v5276_v40 = vld [vmem:[%s4925_s14 + $0x78] sm:$0xff]  ;;  %v5282_v42 = vsel %vm318_vm1, %v296_v56, %v297_v41  ;;  %v5286_v32 = vsel %vm318_vm1, %v295_v57, %v296_v56 }
  0xa4   : > { %7611 = vst [vmem:[#allocation32_spill] sm:$0xff] %v5282_v42  ;;  %7612 = vst [vmem:[#allocation33_spill] sm:$0xff] %v5286_v32 }
  0xa5   : > { %587 = vst.msk [vmem:[#allocation2 + $0x58] sm:$0xff] %vm575_vm0, %v554_v34  ;;  %586 = vst.msk [vmem:[#allocation2 + $0x50] sm:$0xff] %vm575_vm0, %v553_v62  ;;  %v298_v34 = vrot.slane %v5273_v46, 7  ;;  %v299_v62 = vrot.slane %v5276_v40, 7 }
  0xa6   : > { %v451_v35 = vpop.permute.xlu1 %450  ;;  %v446_v61 = vpop.permute.xlu0 %445 }
  0xa7   : > { %v556_v45 = vmul.f32 %v451_v35, %v5262_v53  ;;  %v555_v47 = vmul.f32 %v446_v61, %v5266_v54  ;;  %v5293_v35 = vld [vmem:[%s4925_s14 + $0x80] sm:$0xff]  ;;  %v5296_v61 = vld [vmem:[%s4925_s14 + $0x88] sm:$0xff]  ;;  %v5302_v56 = vsel %vm318_vm1, %v298_v34, %v299_v62  ;;  %v5306_v28 = vsel %vm318_vm1, %v297_v41, %v298_v34 }
  0xa8   : > { %7613 = vst [vmem:[#allocation34_spill] sm:$0xff] %v5302_v56  ;;  %7614 = vst [vmem:[#allocation35_spill] sm:$0xff] %v5306_v28 }
  0xa9   : > { %589 = vst.msk [vmem:[#allocation2 + $0x68] sm:$0xff] %vm575_vm0, %v556_v45  ;;  %588 = vst.msk [vmem:[#allocation2 + $0x60] sm:$0xff] %vm575_vm0, %v555_v47  ;;  %v300_v45 = vrot.slane %v5293_v35, 7  ;;  %v301_v47 = vrot.slane %v5296_v61, 7 }
  0xaa   : > { %v461_v54 = vpop.permute.xlu1 %460  ;;  %v456_v53 = vpop.permute.xlu0 %455 }
  0xab   : > { %v558_v30 = vmul.f32 %v461_v54, %v5282_v42  ;;  %v557_v57 = vmul.f32 %v456_v53, %v5286_v32  ;;  %v5313_v54 = vld [vmem:[%s4925_s14 + $0x90] sm:$0xff]  ;;  %v5316_v53 = vld [vmem:[%s4925_s14 + $0x98] sm:$0xff]  ;;  %v5322_v34 = vsel %vm318_vm1, %v300_v45, %v301_v47  ;;  %v5326_v26 = vsel %vm318_vm1, %v299_v62, %v300_v45 }
  0xac   : > { %7615 = vst [vmem:[#allocation36_spill] sm:$0xff] %v5322_v34  ;;  %7616 = vst [vmem:[#allocation37_spill] sm:$0xff] %v5326_v26 }
  0xad   : > { %591 = vst.msk [vmem:[#allocation2 + $0x78] sm:$0xff] %vm575_vm0, %v558_v30  ;;  %590 = vst.msk [vmem:[#allocation2 + $0x70] sm:$0xff] %vm575_vm0, %v557_v57  ;;  %v302_v30 = vrot.slane %v5313_v54, 7  ;;  %v303_v57 = vrot.slane %v5316_v53, 7 }
  0xae   : > { %v471_v32 = vpop.permute.xlu1 %470  ;;  %v466_v42 = vpop.permute.xlu0 %465 }
  0xaf   : > { %v560_v33 = vmul.f32 %v471_v32, %v5302_v56  ;;  %v559_v41 = vmul.f32 %v466_v42, %v5306_v28  ;;  %v5333_v32 = vld [vmem:[%s4925_s14 + $0xa0] sm:$0xff]  ;;  %v5336_v42 = vld [vmem:[%s4925_s14 + $0xa8] sm:$0xff]  ;;  %v5342_v45 = vsel %vm318_vm1, %v302_v30, %v303_v57  ;;  %v5346_v24 = vsel %vm318_vm1, %v301_v47, %v302_v30 }
  0xb0   : > { %7617 = vst [vmem:[#allocation38_spill] sm:$0xff] %v5342_v45  ;;  %7618 = vst [vmem:[#allocation39_spill] sm:$0xff] %v5346_v24 }
  0xb1   : > { %593 = vst.msk [vmem:[#allocation2 + $0x88] sm:$0xff] %vm575_vm0, %v560_v33  ;;  %592 = vst.msk [vmem:[#allocation2 + $0x80] sm:$0xff] %vm575_vm0, %v559_v41  ;;  %v304_v33 = vrot.slane %v5333_v32, 7  ;;  %v305_v41 = vrot.slane %v5336_v42, 7 }
  0xb2   : > { %v481_v28 = vpop.permute.xlu1 %480  ;;  %v476_v56 = vpop.permute.xlu0 %475 }
  0xb3   : > { %v562_v31 = vmul.f32 %v481_v28, %v5322_v34  ;;  %v561_v62 = vmul.f32 %v476_v56, %v5326_v26  ;;  %v5353_v28 = vld [vmem:[%s4925_s14 + $0xb0] sm:$0xff]  ;;  %v5356_v56 = vld [vmem:[%s4925_s14 + $0xb8] sm:$0xff]  ;;  %v5362_v30 = vsel %vm318_vm1, %v304_v33, %v305_v41  ;;  %v5366_v22 = vsel %vm318_vm1, %v303_v57, %v304_v33 }
  0xb4   : > { %7619 = vst [vmem:[#allocation40_spill] sm:$0xff] %v5362_v30  ;;  %7620 = vst [vmem:[#allocation41_spill] sm:$0xff] %v5366_v22 }
  0xb5   : > { %595 = vst.msk [vmem:[#allocation2 + $0x98] sm:$0xff] %vm575_vm0, %v562_v31  ;;  %594 = vst.msk [vmem:[#allocation2 + $0x90] sm:$0xff] %vm575_vm0, %v561_v62  ;;  %v306_v31 = vrot.slane %v5353_v28, 7  ;;  %v307_v62 = vrot.slane %v5356_v56, 7 }
  0xb6   : > { %v491_v26 = vpop.permute.xlu1 %490  ;;  %v486_v34 = vpop.permute.xlu0 %485 }
  0xb7   : > { %v564_v29 = vmul.f32 %v491_v26, %v5342_v45  ;;  %v563_v47 = vmul.f32 %v486_v34, %v5346_v24  ;;  %v5373_v26 = vld [vmem:[%s4925_s14 + $0xc0] sm:$0xff]  ;;  %v5376_v34 = vld [vmem:[%s4925_s14 + $0xc8] sm:$0xff]  ;;  %v5382_v33 = vsel %vm318_vm1, %v306_v31, %v307_v62  ;;  %v5386_v20 = vsel %vm318_vm1, %v305_v41, %v306_v31 }
  0xb8   : > { %7621 = vst [vmem:[#allocation42_spill] sm:$0xff] %v5382_v33  ;;  %7622 = vst [vmem:[#allocation43_spill] sm:$0xff] %v5386_v20 }
  0xb9   : > { %597 = vst.msk [vmem:[#allocation2 + $0xa8] sm:$0xff] %vm575_vm0, %v564_v29  ;;  %596 = vst.msk [vmem:[#allocation2 + $0xa0] sm:$0xff] %vm575_vm0, %v563_v47  ;;  %v308_v29 = vrot.slane %v5373_v26, 7  ;;  %v309_v47 = vrot.slane %v5376_v34, 7 }
  0xba   : > { %v501_v24 = vpop.permute.xlu1 %500  ;;  %v496_v45 = vpop.permute.xlu0 %495 }
  0xbb   : > { %v566_v27 = vmul.f32 %v501_v24, %v5362_v30  ;;  %v565_v57 = vmul.f32 %v496_v45, %v5366_v22  ;;  %v5393_v24 = vld [vmem:[%s4925_s14 + $0xd0] sm:$0xff]  ;;  %v5396_v45 = vld [vmem:[%s4925_s14 + $0xd8] sm:$0xff]  ;;  %v5402_v31 = vsel %vm318_vm1, %v308_v29, %v309_v47  ;;  %v5406_v18 = vsel %vm318_vm1, %v307_v62, %v308_v29 }
  0xbc   : > { %7623 = vst [vmem:[#allocation44_spill] sm:$0xff] %v5402_v31  ;;  %7624 = vst [vmem:[#allocation45_spill] sm:$0xff] %v5406_v18 }
  0xbd   : > { %599 = vst.msk [vmem:[#allocation2 + $0xb8] sm:$0xff] %vm575_vm0, %v566_v27  ;;  %598 = vst.msk [vmem:[#allocation2 + $0xb0] sm:$0xff] %vm575_vm0, %v565_v57  ;;  %v310_v27 = vrot.slane %v5393_v24, 7  ;;  %v311_v57 = vrot.slane %v5396_v45, 7 }
  0xbe   : > { %v511_v22 = vpop.permute.xlu1 %510  ;;  %v506_v30 = vpop.permute.xlu0 %505 }
  0xbf   : > { %v568_v25 = vmul.f32 %v511_v22, %v5382_v33  ;;  %v567_v41 = vmul.f32 %v506_v30, %v5386_v20  ;;  %v5419_v62 = vsel %vm318_vm1, %v310_v27, %v311_v57  ;;  %v5423_v29 = vsel %vm318_vm1, %v309_v47, %v310_v27 }
  0xc0   : > { %7625 = vst [vmem:[#allocation46_spill] sm:$0xff] %v5419_v62  ;;  %7626 = vst [vmem:[#allocation47_spill] sm:$0xff] %v5423_v29 }
  0xc1   : > { %601 = vst.msk [vmem:[#allocation2 + $0xc8] sm:$0xff] %vm575_vm0, %v568_v25  ;;  %600 = vst.msk [vmem:[#allocation2 + $0xc0] sm:$0xff] %vm575_vm0, %v567_v41  ;;  %v312_v25 = vrot.slane %v5413_v23, 7 }
  0xc2   : > { %v521_v22 = vpop.permute.xlu1 %520  ;;  %v516_v30 = vpop.permute.xlu0 %515 }
  0xc3   : > { %v570_v20 = vmul.f32 %v521_v22, %v5402_v31  ;;  %v569_v33 = vmul.f32 %v516_v30, %v5406_v18  ;;  %v7627_v18 = vrot.slane %v5124_v38, 7  ;;  %v5438_v47 = vsel %vm318_vm1, %v311_v57, %v312_v25 }
  0xc4   : > { %7629 = vst [vmem:[#allocation49_spill] sm:$0xff] %v5438_v47 }
  0xc5   : > { %603 = vst.msk [vmem:[#allocation2 + $0xd8] sm:$0xff] %vm575_vm0, %v570_v20  ;;  %602 = vst.msk [vmem:[#allocation2 + $0xd0] sm:$0xff] %vm575_vm0, %v569_v33  ;;  %v5434_v31 = vsel %vm318_vm1, %v312_v25, %v7627_v18 }
  0xc6   : > { %v531_v41 = vpop.permute.xlu1 %530  ;;  %v526_v16 = vpop.permute.xlu0 %525  ;;  %7628 = vst [vmem:[#allocation48_spill] sm:$0xff] %v5434_v31 }
  0xc7   : > { %v572_v22 = vmul.f32 %v531_v41, %v5419_v62  ;;  %v571_v30 = vmul.f32 %v526_v16, %v5423_v29 }
  0xc9   : > { %605 = vst.msk [vmem:[#allocation2 + $0xe8] sm:$0xff] %vm575_vm0, %v572_v22  ;;  %604 = vst.msk [vmem:[#allocation2 + $0xe0] sm:$0xff] %vm575_vm0, %v571_v30 }
  0xca   : > { %v541_v20 = vpop.permute.xlu1 %540  ;;  %v536_v33 = vpop.permute.xlu0 %535 }
  0xcb   : > { %v574_v27 = vmul.f32 %v541_v20, %v5434_v31  ;;  %v573_v16 = vmul.f32 %v536_v33, %v5438_v47 }
  0xcd   : > { %607 = vst.msk [vmem:[#allocation2 + $0xf8] sm:$0xff] %vm575_vm0, %v574_v27  ;;  %606 = vst.msk [vmem:[#allocation2 + $0xf0] sm:$0xff] %vm575_vm0, %v573_v16 }
  0xcf   : > { %v648_v18 = vpop.permute.xlu1 %647  ;;  %v643_v41 = vpop.permute.xlu0 %642 }
  0xd0   : > { %v801_v29 = vmul.f32 %v648_v18, %v5119_v36  ;;  %v800_v57 = vmul.f32 %v643_v41, %v5127_v39 }
  0xd2   : > { %866 = vrot.lane.b32.xlu0 %v801_v29, %s4827_s29  ;;  %864 = vrot.lane.b32.xlu1 %v800_v57, %s4827_s29 }
  0xd3   : > { %v653_v25 = vpop.permute.xlu1 %652  ;;  %v658_v22 = vpop.permute.xlu0 %657 }
  0xd4   : > { %v802_v30 = vmul.f32 %v653_v25, %v4930_v7  ;;  %v803_v20 = vmul.f32 %v658_v22, %v5137_v44 }
  0xd6   : > { %870 = vrot.lane.b32.xlu0 %v803_v20, %s4827_s29  ;;  %868 = vrot.lane.b32.xlu1 %v802_v30, %s4827_s29 }
  0xd7   : > { %v663_v33 = vpop.permute.xlu1 %662  ;;  %v668_v27 = vpop.permute.xlu0 %667 }
  0xd8   : > { %v804_v16 = vmul.f32 %v663_v33, %v5153_v48  ;;  %v805_v18 = vmul.f32 %v668_v27, %v5156_v49 }
  0xda   : > { %874 = vrot.lane.b32.xlu0 %v805_v18, %s4827_s29  ;;  %872 = vrot.lane.b32.xlu1 %v804_v16, %s4827_s29 }
  0xdb   : > { %v673_v29 = vpop.permute.xlu1 %672  ;;  %v678_v41 = vpop.permute.xlu0 %677 }
  0xdc   : > { %v806_v57 = vmul.f32 %v673_v29, %v5173_v59  ;;  %v807_v25 = vmul.f32 %v678_v41, %v5176_v60 }
  0xde   : > { %878 = vrot.lane.b32.xlu0 %v807_v25, %s4827_s29  ;;  %876 = vrot.lane.b32.xlu1 %v806_v57, %s4827_s29 }
  0xdf   : > { %v683_v22 = vpop.permute.xlu1 %682  ;;  %v688_v30 = vpop.permute.xlu0 %687 }
  0xe0   : > { %v808_v20 = vmul.f32 %v683_v22, %v5193_v43  ;;  %v809_v33 = vmul.f32 %v688_v30, %v5196_v50 }
  0xe2   : > { %882 = vrot.lane.b32.xlu0 %v809_v33, %s4827_s29  ;;  %880 = vrot.lane.b32.xlu1 %v808_v20, %s4827_s29 }
  0xe3   : > { %v693_v27 = vpop.permute.xlu1 %692  ;;  %v698_v16 = vpop.permute.xlu0 %697 }
  0xe4   : > { %v810_v18 = vmul.f32 %v693_v27, %v5213_v63  ;;  %v811_v29 = vmul.f32 %v698_v16, %v5216_v2 }
  0xe6   : > { %886 = vrot.lane.b32.xlu0 %v811_v29, %s4827_s29  ;;  %884 = vrot.lane.b32.xlu1 %v810_v18, %s4827_s29 }
  0xe7   : > { %v703_v41 = vpop.permute.xlu1 %702  ;;  %v708_v57 = vpop.permute.xlu0 %707 }
  0xe8   : > { %v812_v25 = vmul.f32 %v703_v41, %v5233_v51  ;;  %v813_v22 = vmul.f32 %v708_v57, %v5236_v52 }
  0xea   : > { %890 = vrot.lane.b32.xlu0 %v813_v22, %s4827_s29  ;;  %888 = vrot.lane.b32.xlu1 %v812_v25, %s4827_s29 }
  0xeb   : > { %v713_v30 = vpop.permute.xlu1 %712  ;;  %v718_v20 = vpop.permute.xlu0 %717 }
  0xec   : > { %v814_v33 = vmul.f32 %v713_v30, %v5253_v55  ;;  %v815_v27 = vmul.f32 %v718_v20, %v5256_v58 }
  0xee   : > { %894 = vrot.lane.b32.xlu0 %v815_v27, %s4827_s29  ;;  %892 = vrot.lane.b32.xlu1 %v814_v33, %s4827_s29 }
  0xef   : > { %v723_v16 = vpop.permute.xlu1 %722  ;;  %v728_v18 = vpop.permute.xlu0 %727 }
  0xf0   : > { %v816_v29 = vmul.f32 %v723_v16, %v5273_v46  ;;  %v817_v41 = vmul.f32 %v728_v18, %v5276_v40 }
  0xf2   : > { %898 = vrot.lane.b32.xlu0 %v817_v41, %s4827_s29  ;;  %896 = vrot.lane.b32.xlu1 %v816_v29, %s4827_s29 }
  0xf3   : > { %v733_v57 = vpop.permute.xlu1 %732  ;;  %v738_v25 = vpop.permute.xlu0 %737 }
  0xf4   : > { %v818_v22 = vmul.f32 %v733_v57, %v5293_v35  ;;  %v819_v30 = vmul.f32 %v738_v25, %v5296_v61 }
  0xf6   : > { %902 = vrot.lane.b32.xlu0 %v819_v30, %s4827_s29  ;;  %900 = vrot.lane.b32.xlu1 %v818_v22, %s4827_s29 }
  0xf7   : > { %v743_v20 = vpop.permute.xlu1 %742  ;;  %v748_v33 = vpop.permute.xlu0 %747 }
  0xf8   : > { %v820_v27 = vmul.f32 %v743_v20, %v5313_v54  ;;  %v821_v16 = vmul.f32 %v748_v33, %v5316_v53 }
  0xfa   : > { %906 = vrot.lane.b32.xlu0 %v821_v16, %s4827_s29  ;;  %904 = vrot.lane.b32.xlu1 %v820_v27, %s4827_s29 }
  0xfb   : > { %v753_v18 = vpop.permute.xlu1 %752  ;;  %v758_v29 = vpop.permute.xlu0 %757 }
  0xfc   : > { %v822_v41 = vmul.f32 %v753_v18, %v5333_v32  ;;  %v823_v57 = vmul.f32 %v758_v29, %v5336_v42 }
  0xfe   : > { %910 = vrot.lane.b32.xlu0 %v823_v57, %s4827_s29  ;;  %908 = vrot.lane.b32.xlu1 %v822_v41, %s4827_s29 }
  0xff   : > { %v763_v25 = vpop.permute.xlu1 %762  ;;  %v768_v22 = vpop.permute.xlu0 %767 }
 0x100   : > { %v824_v30 = vmul.f32 %v763_v25, %v5353_v28  ;;  %v825_v20 = vmul.f32 %v768_v22, %v5356_v56 }
 0x102   : > { %914 = vrot.lane.b32.xlu0 %v825_v20, %s4827_s29  ;;  %912 = vrot.lane.b32.xlu1 %v824_v30, %s4827_s29 }
 0x103   : > { %v773_v33 = vpop.permute.xlu1 %772  ;;  %v778_v27 = vpop.permute.xlu0 %777 }
 0x104   : > { %v826_v16 = vmul.f32 %v773_v33, %v5373_v26  ;;  %v827_v18 = vmul.f32 %v778_v27, %v5376_v34 }
 0x106   : > { %918 = vrot.lane.b32.xlu0 %v827_v18, %s4827_s29  ;;  %916 = vrot.lane.b32.xlu1 %v826_v16, %s4827_s29  ;;  %v7643_v18 = vld [vmem:[#allocation14_spill] sm:$0xff] }
 0x107   : > { %v783_v29 = vpop.permute.xlu1 %782  ;;  %v788_v41 = vpop.permute.xlu0 %787 }
 0x108   : > { %v828_v57 = vmul.f32 %v783_v29, %v5393_v24  ;;  %v829_v25 = vmul.f32 %v788_v41, %v5396_v45  ;;  %v1023_v29 = vrot.slane %v5127_v39, 1  ;;  %v1022_v41 = vrot.slane %v5124_v38, 1 }
 0x10a   : > { %922 = vrot.lane.b32.xlu0 %v829_v25, %s4827_s29  ;;  %920 = vrot.lane.b32.xlu1 %v828_v57, %s4827_s29 }
 0x10b   : > { %v793_v22 = vpop.permute.xlu1 %792  ;;  %v798_v30 = vpop.permute.xlu0 %797 }
 0x10c   : > { %v830_v20 = vmul.f32 %v793_v22, %v5413_v23  ;;  %v831_v33 = vmul.f32 %v798_v30, %v5124_v38  ;;  %v5556_v22 = vsel %vm1025_vm3, %v1022_v41, %v1023_v29  ;;  %v7645_v30 = vld [vmem:[#allocation16_spill] sm:$0xff] }
 0x10e   : > { %926 = vrot.lane.b32.xlu0 %v831_v33, %s4827_s29  ;;  %924 = vrot.lane.b32.xlu1 %v830_v20, %s4827_s29  ;;  %v4828_v20 = vmov 3  }
 0x112   : > { %1097 = vperm.xlu0 %4711, %v4903_v4   ;;  %1092 = vperm.xlu1 %4710, %v4891_v1   ;;  %v7631_v1 = vld [vmem:[#allocation7_spill] sm:$0xff]  ;;  %v7633_v4 = vld [vmem:[#allocation9_spill] sm:$0xff] }
 0x116   : > { %1112 = vperm.xlu0 %4711, %v4918_v6   ;;  %1102 = vperm.xlu1 %4710, %v4886_v0   ;;  %v7630_v0 = vld [vmem:[#allocation3_spill] sm:$0xff] }
 0x117   : > { %v7635_v6 = vld [vmem:[#allocation11_spill] sm:$0xff]  ;;  %7644 = vst [vmem:[#allocation3_spill] sm:$0xff] %v5556_v22 }
 0x11a   : > { %1122 = vperm.xlu0 %4711, %v4940_v9   ;;  %1107 = vperm.xlu1 %4710, %v4898_v3   ;;  %v7632_v3 = vld [vmem:[#allocation4_spill] sm:$0xff]  ;;  %v7637_v9 = vld [vmem:[#allocation13_spill] sm:$0xff] }
 0x11e   : > { %1132 = vperm.xlu0 %4711, %v4954_v11   ;;  %1117 = vperm.xlu1 %4710, %v4913_v5   ;;  %v7634_v5 = vld [vmem:[#allocation5_spill] sm:$0xff] }
 0x122   : > { %1142 = vperm.xlu0 %4711, %v4966_v13   ;;  %1127 = vperm.xlu1 %4710, %v4935_v8   ;;  %v7636_v8 = vld [vmem:[#allocation6_spill] sm:$0xff]  ;;  %v7639_v13 = vld [vmem:[#allocation15_spill] sm:$0xff] }
 0x126   : > { %1152 = vperm.xlu0 %4711, %v4978_v15   ;;  %1137 = vperm.xlu1 %4710, %v4949_v10   ;;  %v7638_v10 = vld [vmem:[#allocation8_spill] sm:$0xff] }
 0x12a   : > { %1162 = vperm.xlu0 %4711, %v4990_v17   ;;  %1147 = vperm.xlu1 %4710, %v4961_v12  }
 0x12e   : > { %1172 = vperm.xlu0 %4711, %v5002_v19   ;;  %1157 = vperm.xlu1 %4710, %v4973_v14   ;;  %v7640_v14 = vld [vmem:[#allocation10_spill] sm:$0xff]  ;;  %v7641_v19 = vld [vmem:[#allocation17_spill] sm:$0xff] }
 0x132   : > { %1182 = vperm.xlu0 %4711, %v5014_v21   ;;  %1167 = vperm.xlu1 %4710, %v7630_v0   ;;  %v7642_v21 = vld [vmem:[#allocation12_spill] sm:$0xff] }
 0x136   : > { %1192 = vperm.xlu0 %4711, %v7631_v1   ;;  %1177 = vperm.xlu1 %4710, %v7632_v3  }
 0x13a   : > { %1202 = vperm.xlu0 %4711, %v7633_v4   ;;  %1187 = vperm.xlu1 %4710, %v7634_v5  }
 0x13e   : > { %1212 = vperm.xlu0 %4711, %v7635_v6   ;;  %1197 = vperm.xlu1 %4710, %v7636_v8  }
 0x142   : > { %1222 = vperm.xlu0 %4711, %v7637_v9   ;;  %1207 = vperm.xlu1 %4710, %v7638_v10  }
 0x144   : > { %v867_v11 = vpop.permute.xlu0 %866  ;;  %v865_v12 = vpop.permute.xlu1 %864 }
 0x145   : > { %962 = vst.msk [vmem:[#allocation2 + $0x8] sm:$0xff] %vm960_vm2, %v867_v11  ;;  %961 = vst.msk [vmem:[#allocation2] sm:$0xff] %vm960_vm2, %v865_v12 }
 0x146   : > { %1232 = vperm.xlu0 %4711, %v7639_v13   ;;  %1217 = vperm.xlu1 %4710, %v7640_v14  }
 0x148   : > { %v871_v15 = vpop.permute.xlu0 %870  ;;  %v869_v17 = vpop.permute.xlu1 %868 }
 0x149   : > { %964 = vst.msk [vmem:[#allocation2 + $0x18] sm:$0xff] %vm960_vm2, %v871_v15  ;;  %963 = vst.msk [vmem:[#allocation2 + $0x10] sm:$0xff] %vm960_vm2, %v869_v17 }
 0x14a   : > { %1242 = vperm.xlu0 %4711, %v7641_v19   ;;  %1227 = vperm.xlu1 %4710, %v7642_v21  }
 0x14c   : > { %v875_v27 = vpop.permute.xlu0 %874  ;;  %v873_v16 = vpop.permute.xlu1 %872 }
 0x14d   : > { %966 = vst.msk [vmem:[#allocation2 + $0x28] sm:$0xff] %vm960_vm2, %v875_v27  ;;  %965 = vst.msk [vmem:[#allocation2 + $0x20] sm:$0xff] %vm960_vm2, %v873_v16 }
 0x14e   : > { %1237 = vperm.xlu1 %4710, %v7643_v18   ;;  %4712 = vset.pattern.permute.xlu0 %v4828_v20 }
 0x150   : > { %v879_v57 = vpop.permute.xlu0 %878  ;;  %v877_v25 = vpop.permute.xlu1 %876 }
 0x151   : > { %968 = vst.msk [vmem:[#allocation2 + $0x38] sm:$0xff] %vm960_vm2, %v879_v57  ;;  %967 = vst.msk [vmem:[#allocation2 + $0x30] sm:$0xff] %vm960_vm2, %v877_v25 }
 0x152   : > { %1247 = vperm.xlu1 %4710, %v7645_v30  }
 0x154   : > { %v883_v33 = vpop.permute.xlu0 %882  ;;  %v881_v0 = vpop.permute.xlu1 %880 }
 0x155   : > { %970 = vst.msk [vmem:[#allocation2 + $0x48] sm:$0xff] %vm960_vm2, %v883_v33  ;;  %969 = vst.msk [vmem:[#allocation2 + $0x40] sm:$0xff] %vm960_vm2, %v881_v0  ;;  %v993_v33 = vrot.slane %v4930_v7, 1  ;;  %v995_v7 = vrot.slane %v5153_v48, 1  ;;  %v997_v48 = vrot.slane %v5173_v59, 1  ;;  %v999_v59 = vrot.slane %v5193_v43, 1 }
 0x156   : > { %4713 = vset.pattern.permute.xlu1 %v4828_v20  ;;  %v1024_v20 = vrot.slane %v5119_v36, 1  ;;  %v1001_v43 = vrot.slane %v5213_v63, 1  ;;  %v1003_v63 = vrot.slane %v5233_v51, 1  ;;  %v1005_v51 = vrot.slane %v5253_v55, 1 }
 0x157   : > { %v1007_v55 = vrot.slane %v5273_v46, 1  ;;  %v1009_v46 = vrot.slane %v5293_v35, 1  ;;  %v1011_v35 = vrot.slane %v5313_v54, 1  ;;  %v1013_v54 = vrot.slane %v5333_v32, 1 }
 0x158   : > { %v887_v1 = vpop.permute.xlu0 %886  ;;  %v885_v3 = vpop.permute.xlu1 %884  ;;  %v5589_v0 = vsel %vm1025_vm3, %v1024_v20, %v993_v33  ;;  %v1015_v32 = vrot.slane %v5353_v28, 1  ;;  %v1017_v28 = vrot.slane %v5373_v26, 1  ;;  %v1019_v26 = vrot.slane %v5393_v24, 1 }
 0x159   : > { %972 = vst.msk [vmem:[#allocation2 + $0x58] sm:$0xff] %vm960_vm2, %v887_v1  ;;  %971 = vst.msk [vmem:[#allocation2 + $0x50] sm:$0xff] %vm960_vm2, %v885_v3  ;;  %v5595_v1 = vsel %vm1025_vm3, %v1023_v29, %v1024_v20  ;;  %v994_v3 = vrot.slane %v5137_v44, 1  ;;  %v1021_v24 = vrot.slane %v5413_v23, 1 }
 0x15a   : > { %7646 = vst [vmem:[#allocation7_spill] sm:$0xff] %v5589_v0  ;;  %7647 = vst [vmem:[#allocation4_spill] sm:$0xff] %v5595_v1 }
 0x15c   : > { %v891_v4 = vpop.permute.xlu0 %890  ;;  %v889_v5 = vpop.permute.xlu1 %888 }
 0x15d   : > { %974 = vst.msk [vmem:[#allocation2 + $0x68] sm:$0xff] %vm960_vm2, %v891_v4  ;;  %973 = vst.msk [vmem:[#allocation2 + $0x60] sm:$0xff] %vm960_vm2, %v889_v5 }
 0x160   : > { %v895_v6 = vpop.permute.xlu0 %894  ;;  %v893_v8 = vpop.permute.xlu1 %892 }
 0x161   : > { %976 = vst.msk [vmem:[#allocation2 + $0x78] sm:$0xff] %vm960_vm2, %v895_v6  ;;  %975 = vst.msk [vmem:[#allocation2 + $0x70] sm:$0xff] %vm960_vm2, %v893_v8  ;;  %v996_v8 = vrot.slane %v5156_v49, 1  ;;  %v998_v49 = vrot.slane %v5176_v60, 1  ;;  %v1000_v60 = vrot.slane %v5196_v50, 1  ;;  %v1002_v50 = vrot.slane %v5216_v2, 1 }
 0x162   : > { %v1004_v2 = vrot.slane %v5236_v52, 1  ;;  %v1006_v52 = vrot.slane %v5256_v58, 1  ;;  %v1008_v58 = vrot.slane %v5276_v40, 1  ;;  %v1010_v40 = vrot.slane %v5296_v61, 1 }
 0x163   : > { %v1012_v61 = vrot.slane %v5316_v53, 1  ;;  %v1014_v53 = vrot.slane %v5336_v42, 1  ;;  %v1016_v42 = vrot.slane %v5356_v56, 1  ;;  %v1018_v56 = vrot.slane %v5376_v34, 1 }
 0x164   : > { %v899_v9 = vpop.permute.xlu0 %898  ;;  %v897_v10 = vpop.permute.xlu1 %896  ;;  %v1020_v34 = vrot.slane %v5396_v45, 1 }
 0x165   : > { %978 = vst.msk [vmem:[#allocation2 + $0x88] sm:$0xff] %vm960_vm2, %v899_v9  ;;  %977 = vst.msk [vmem:[#allocation2 + $0x80] sm:$0xff] %vm960_vm2, %v897_v10  ;;  %v5604_v9 = vsel %vm1025_vm3, %v993_v33, %v994_v3  ;;  %v5611_v10 = vsel %vm1025_vm3, %v995_v7, %v996_v8  ;;  %v5783_v45 = vsel %vm1025_vm3, %v1018_v56, %v1019_v26 }
 0x166   : > { %7648 = vst [vmem:[#allocation9_spill] sm:$0xff] %v5604_v9  ;;  %7663 = vst [vmem:[#allocation53_spill] sm:$0xff] %v5783_v45 }
 0x168   : > { %v903_v11 = vpop.permute.xlu0 %902  ;;  %v901_v12 = vpop.permute.xlu1 %900 }
 0x169   : > { %980 = vst.msk [vmem:[#allocation2 + $0x98] sm:$0xff] %vm960_vm2, %v903_v11  ;;  %979 = vst.msk [vmem:[#allocation2 + $0x90] sm:$0xff] %vm960_vm2, %v901_v12  ;;  %v5617_v11 = vsel %vm1025_vm3, %v994_v3, %v995_v7 }
 0x16a   : > { %7649 = vst [vmem:[#allocation5_spill] sm:$0xff] %v5617_v11 }
 0x16c   : > { %v907_v13 = vpop.permute.xlu0 %906  ;;  %v905_v14 = vpop.permute.xlu1 %904 }
 0x16d   : > { %982 = vst.msk [vmem:[#allocation2 + $0xa8] sm:$0xff] %vm960_vm2, %v907_v13  ;;  %981 = vst.msk [vmem:[#allocation2 + $0xa0] sm:$0xff] %vm960_vm2, %v905_v14 }
 0x170   : > { %v911_v15 = vpop.permute.xlu0 %910  ;;  %v909_v17 = vpop.permute.xlu1 %908 }
 0x171   : > { %984 = vst.msk [vmem:[#allocation2 + $0xb8] sm:$0xff] %vm960_vm2, %v911_v15  ;;  %983 = vst.msk [vmem:[#allocation2 + $0xb0] sm:$0xff] %vm960_vm2, %v909_v17  ;;  %v5624_v17 = vsel %vm1025_vm3, %v997_v48, %v998_v49 }
 0x174   : > { %v915_v19 = vpop.permute.xlu0 %914  ;;  %v913_v21 = vpop.permute.xlu1 %912 }
 0x175   : > { %986 = vst.msk [vmem:[#allocation2 + $0xc8] sm:$0xff] %vm960_vm2, %v915_v19  ;;  %985 = vst.msk [vmem:[#allocation2 + $0xc0] sm:$0xff] %vm960_vm2, %v913_v21  ;;  %v5630_v19 = vsel %vm1025_vm3, %v996_v8, %v997_v48 }
 0x178   : > { %v919_v27 = vpop.permute.xlu0 %918  ;;  %v917_v16 = vpop.permute.xlu1 %916 }
 0x179   : > { %988 = vst.msk [vmem:[#allocation2 + $0xd8] sm:$0xff] %vm960_vm2, %v919_v27  ;;  %987 = vst.msk [vmem:[#allocation2 + $0xd0] sm:$0xff] %vm960_vm2, %v917_v16 }
 0x17c   : > { %v923_v18 = vpop.permute.xlu0 %922  ;;  %v921_v57 = vpop.permute.xlu1 %920 }
 0x17d   : > { %990 = vst.msk [vmem:[#allocation2 + $0xe8] sm:$0xff] %vm960_vm2, %v923_v18  ;;  %989 = vst.msk [vmem:[#allocation2 + $0xe0] sm:$0xff] %vm960_vm2, %v921_v57  ;;  %v5638_v57 = vsel %vm1025_vm3, %v999_v59, %v1000_v60 }
 0x180   : > { %v927_v25 = vpop.permute.xlu0 %926  ;;  %v925_v30 = vpop.permute.xlu1 %924 }
 0x181   : > { %992 = vst.msk [vmem:[#allocation2 + $0xf8] sm:$0xff] %vm960_vm2, %v927_v25  ;;  %991 = vst.msk [vmem:[#allocation2 + $0xf0] sm:$0xff] %vm960_vm2, %v925_v30  ;;  %v5644_v25 = vsel %vm1025_vm3, %v998_v49, %v999_v59 }
 0x191   : > { %v1098_v4 = vpop.permute.xlu0 %1097  ;;  %v1093_v5 = vpop.permute.xlu1 %1092 }
 0x192   : > { %v1251_v6 = vmul.f32 %v1098_v4, %v5589_v0  ;;  %v1250_v36 = vmul.f32 %v1093_v5, %v5595_v1  ;;  %v5652_v4 = vsel %vm1025_vm3, %v1001_v43, %v1002_v50  ;;  %v5658_v5 = vsel %vm1025_vm3, %v1000_v60, %v1001_v43  ;;  %v5974_v0 = vld [vmem:[%s7457_s1 + $0xe8] sm:$0xff] }
 0x194   : > { %1314 = vrot.lane.b32.xlu0 %v1250_v36, %s4829_s30  ;;  %1316 = vrot.lane.b32.xlu1 %v1251_v6, %s4829_s30 }
 0x195   : > { %v1113_v39 = vpop.permute.xlu0 %1112  ;;  %v1103_v44 = vpop.permute.xlu1 %1102 }
 0x196   : > { %v1252_v29 = vmul.f32 %v1103_v44, %v5604_v9  ;;  %v1254_v14 = vmul.f32 %v1113_v39, %v5611_v10  ;;  %v5666_v39 = vsel %vm1025_vm3, %v1003_v63, %v1004_v2  ;;  %v5672_v44 = vsel %vm1025_vm3, %v1002_v50, %v1003_v63 }
 0x198   : > { %1318 = vrot.lane.b32.xlu0 %v1252_v29, %s4829_s30 }
 0x199   : > { %v1123_v12 = vpop.permute.xlu0 %1122  ;;  %v1108_v13 = vpop.permute.xlu1 %1107 }
 0x19a   : > { %v1253_v15 = vmul.f32 %v1108_v13, %v5617_v11  ;;  %v1256_v16 = vmul.f32 %v1123_v12, %v5624_v17  ;;  %v5680_v13 = vsel %vm1025_vm3, %v1005_v51, %v1006_v52 }
 0x19c   : > { %1322 = vrot.lane.b32.xlu0 %v1254_v14, %s4829_s30  ;;  %1320 = vrot.lane.b32.xlu1 %v1253_v15, %s4829_s30  ;;  %v5686_v14 = vsel %vm1025_vm3, %v1004_v2, %v1005_v51 }
 0x19d   : > { %v1133_v21 = vpop.permute.xlu0 %1132  ;;  %v1118_v27 = vpop.permute.xlu1 %1117 }
 0x19e   : > { %v1255_v18 = vmul.f32 %v1118_v27, %v5630_v19  ;;  %v1258_v33 = vmul.f32 %v1133_v21, %v5638_v57  ;;  %v5694_v27 = vsel %vm1025_vm3, %v1007_v55, %v1008_v58 }
 0x19f   : > { %7650 = vst [vmem:[#allocation11_spill] sm:$0xff] %v5694_v27 }
 0x1a0   : > { %1326 = vrot.lane.b32.xlu0 %v1256_v16, %s4829_s30  ;;  %1324 = vrot.lane.b32.xlu1 %v1255_v18, %s4829_s30  ;;  %v5700_v16 = vsel %vm1025_vm3, %v1006_v52, %v1007_v55 }
 0x1a1   : > { %v1143_v30 = vpop.permute.xlu0 %1142  ;;  %v1128_v20 = vpop.permute.xlu1 %1127  ;;  %7651 = vst [vmem:[#allocation6_spill] sm:$0xff] %v5700_v16 }
 0x1a2   : > { %v1257_v3 = vmul.f32 %v1128_v20, %v5644_v25  ;;  %v1260_v7 = vmul.f32 %v1143_v30, %v5652_v4  ;;  %v5708_v20 = vsel %vm1025_vm3, %v1009_v46, %v1010_v40 }
 0x1a3   : > { %7652 = vst [vmem:[#allocation13_spill] sm:$0xff] %v5708_v20 }
 0x1a4   : > { %1330 = vrot.lane.b32.xlu0 %v1258_v33, %s4829_s30  ;;  %1328 = vrot.lane.b32.xlu1 %v1257_v3, %s4829_s30  ;;  %v5714_v33 = vsel %vm1025_vm3, %v1008_v58, %v1009_v46 }
 0x1a5   : > { %v1153_v6 = vpop.permute.xlu0 %1152  ;;  %v1138_v36 = vpop.permute.xlu1 %1137  ;;  %7653 = vst [vmem:[#allocation8_spill] sm:$0xff] %v5714_v33 }
 0x1a6   : > { %v1259_v8 = vmul.f32 %v1138_v36, %v5658_v5  ;;  %v1262_v49 = vmul.f32 %v1153_v6, %v5666_v39  ;;  %v5722_v36 = vsel %vm1025_vm3, %v1011_v35, %v1012_v61 }
 0x1a7   : > { %7654 = vst [vmem:[#allocation15_spill] sm:$0xff] %v5722_v36 }
 0x1a8   : > { %1334 = vrot.lane.b32.xlu0 %v1260_v7, %s4829_s30  ;;  %1332 = vrot.lane.b32.xlu1 %v1259_v8, %s4829_s30  ;;  %v5728_v7 = vsel %vm1025_vm3, %v1010_v40, %v1011_v35 }
 0x1a9   : > { %v1163_v29 = vpop.permute.xlu0 %1162  ;;  %v1148_v48 = vpop.permute.xlu1 %1147  ;;  %7655 = vst [vmem:[#allocation10_spill] sm:$0xff] %v5728_v7 }
 0x1aa   : > { %v1261_v12 = vmul.f32 %v1148_v48, %v5672_v44  ;;  %v1264_v60 = vmul.f32 %v1163_v29, %v5680_v13  ;;  %v5736_v48 = vsel %vm1025_vm3, %v1013_v54, %v1014_v53 }
 0x1ab   : > { %7656 = vst [vmem:[#allocation17_spill] sm:$0xff] %v5736_v48 }
 0x1ac   : > { %1338 = vrot.lane.b32.xlu0 %v1262_v49, %s4829_s30  ;;  %1336 = vrot.lane.b32.xlu1 %v1261_v12, %s4829_s30  ;;  %v5742_v49 = vsel %vm1025_vm3, %v1012_v61, %v1013_v54 }
 0x1ad   : > { %v1173_v15 = vpop.permute.xlu0 %1172  ;;  %v1158_v59 = vpop.permute.xlu1 %1157  ;;  %7657 = vst [vmem:[#allocation12_spill] sm:$0xff] %v5742_v49 }
 0x1ae   : > { %v1263_v21 = vmul.f32 %v1158_v59, %v5686_v14  ;;  %v1266_v50 = vmul.f32 %v1173_v15, %v5694_v27  ;;  %v5750_v59 = vsel %vm1025_vm3, %v1015_v32, %v1016_v42  ;;  %v7672_v27 = vld [vmem:[#allocation26_spill] sm:$0xff] }
 0x1af   : > { %7658 = vst [vmem:[#allocation14_spill] sm:$0xff] %v5750_v59 }
 0x1b0   : > { %1342 = vrot.lane.b32.xlu0 %v1264_v60, %s4829_s30  ;;  %1340 = vrot.lane.b32.xlu1 %v1263_v21, %s4829_s30  ;;  %v5756_v60 = vsel %vm1025_vm3, %v1014_v53, %v1015_v32  ;;  %v5793_v53 = vsel %vm1025_vm3, %v1021_v24, %v1022_v41  ;;  %v5816_v32 = vld [vmem:[%s7457_s1 + $0x18] sm:$0xff] }
 0x1b1   : > { %v1183_v18 = vpop.permute.xlu0 %1182  ;;  %v1168_v43 = vpop.permute.xlu1 %1167  ;;  %7659 = vst [vmem:[#allocation16_spill] sm:$0xff] %v5756_v60  ;;  %7664 = vst [vmem:[#allocation54_spill] sm:$0xff] %v5793_v53 }
 0x1b2   : > { %v1265_v30 = vmul.f32 %v1168_v43, %v5700_v16  ;;  %v1268_v2 = vmul.f32 %v1183_v18, %v5708_v20  ;;  %v5764_v43 = vsel %vm1025_vm3, %v1017_v28, %v1018_v56  ;;  %v5857_v56 = vld [vmem:[%s7457_s1 + $0x30] sm:$0xff] }
 0x1b3   : > { %7660 = vst [vmem:[#allocation50_spill] sm:$0xff] %v5764_v43 }
 0x1b4   : > { %1346 = vrot.lane.b32.xlu0 %v1266_v50, %s4829_s30  ;;  %1344 = vrot.lane.b32.xlu1 %v1265_v30, %s4829_s30  ;;  %v5770_v50 = vsel %vm1025_vm3, %v1016_v42, %v1017_v28  ;;  %v5821_v42 = vld [vmem:[%s7457_s1 + $0x8] sm:$0xff] }
 0x1b5   : > { %v1193_v3 = vpop.permute.xlu0 %1192  ;;  %v1178_v63 = vpop.permute.xlu1 %1177  ;;  %7661 = vst [vmem:[#allocation51_spill] sm:$0xff] %v5770_v50  ;;  %v5852_v28 = vld [vmem:[%s7457_s1 + $0x48] sm:$0xff] }
 0x1b6   : > { %v1267_v6 = vmul.f32 %v1178_v63, %v5714_v33  ;;  %v1270_v52 = vmul.f32 %v1193_v3, %v5722_v36  ;;  %v5778_v63 = vsel %vm1025_vm3, %v1019_v26, %v1020_v34  ;;  %v5888_v26 = vld [vmem:[%s7457_s1 + $0x78] sm:$0xff] }
 0x1b7   : > { %7662 = vst [vmem:[#allocation52_spill] sm:$0xff] %v5778_v63  ;;  %v7668_v36 = vld [vmem:[#allocation22_spill] sm:$0xff] }
 0x1b8   : > { %1350 = vrot.lane.b32.xlu0 %v1268_v2, %s4829_s30  ;;  %1348 = vrot.lane.b32.xlu1 %v1267_v6, %s4829_s30 }
 0x1b9   : > { %v1203_v8 = vpop.permute.xlu0 %1202  ;;  %v1188_v51 = vpop.permute.xlu1 %1187 }
 0x1ba   : > { %v1269_v29 = vmul.f32 %v1188_v51, %v5728_v7  ;;  %v1272_v58 = vmul.f32 %v1203_v8, %v5736_v48  ;;  %v5797_v8 = vsel %vm1025_vm3, %v1020_v34, %v1021_v24  ;;  %v5893_v34 = vld [vmem:[%s7457_s1 + $0x60] sm:$0xff]  ;;  %v5924_v24 = vld [vmem:[%s7457_s1 + $0xa8] sm:$0xff] }
 0x1bb   : > { %7665 = vst [vmem:[#allocation55_spill] sm:$0xff] %v5797_v8 }
 0x1bc   : > { %1354 = vrot.lane.b32.xlu0 %v1270_v52, %s4829_s30  ;;  %1352 = vrot.lane.b32.xlu1 %v1269_v29, %s4829_s30 }
 0x1bd   : > { %v1213_v12 = vpop.permute.xlu0 %1212  ;;  %v1198_v55 = vpop.permute.xlu1 %1197 }
 0x1be   : > { %v1271_v15 = vmul.f32 %v1198_v55, %v5742_v49  ;;  %v1274_v40 = vmul.f32 %v1213_v12, %v5750_v59  ;;  %v5828_v12 = vld [vmem:[%s7457_s1 + $0x28] sm:$0xff]  ;;  %v5833_v55 = vld [vmem:[%s7457_s1 + $0x10] sm:$0xff]  ;;  %v7666_v49 = vld [vmem:[#allocation18_spill] sm:$0xff] }
 0x1c0   : > { %1358 = vrot.lane.b32.xlu0 %v1272_v58, %s4829_s30  ;;  %1356 = vrot.lane.b32.xlu1 %v1271_v15, %s4829_s30  ;;  %v5840_v58 = vld [vmem:[%s7457_s1 + $0x38] sm:$0xff]  ;;  %v5845_v15 = vld [vmem:[%s7457_s1 + $0x20] sm:$0xff] }
 0x1c1   : > { %v1223_v21 = vpop.permute.xlu0 %1222  ;;  %v1208_v46 = vpop.permute.xlu1 %1207 }
 0x1c2   : > { %v1273_v18 = vmul.f32 %v1208_v46, %v5756_v60  ;;  %v1276_v61 = vmul.f32 %v1223_v21, %v5764_v43  ;;  %v5864_v21 = vld [vmem:[%s7457_s1 + $0x58] sm:$0xff]  ;;  %v5869_v46 = vld [vmem:[%s7457_s1 + $0x40] sm:$0xff] }
 0x1c4   : > { %1362 = vrot.lane.b32.xlu0 %v1274_v40, %s4829_s30  ;;  %1360 = vrot.lane.b32.xlu1 %v1273_v18, %s4829_s30  ;;  %v5876_v40 = vld [vmem:[%s7457_s1 + $0x68] sm:$0xff]  ;;  %v5881_v18 = vld [vmem:[%s7457_s1 + $0x50] sm:$0xff] }
 0x1c5   : > { %v1233_v30 = vpop.permute.xlu0 %1232  ;;  %v1218_v35 = vpop.permute.xlu1 %1217 }
 0x1c6   : > { %v1275_v3 = vmul.f32 %v1218_v35, %v5770_v50  ;;  %v1278_v6 = vmul.f32 %v1233_v30, %v5778_v63  ;;  %v5900_v30 = vld [vmem:[%s7457_s1 + $0x88] sm:$0xff]  ;;  %v5905_v35 = vld [vmem:[%s7457_s1 + $0x70] sm:$0xff] }
 0x1c8   : > { %1366 = vrot.lane.b32.xlu0 %v1276_v61, %s4829_s30  ;;  %1364 = vrot.lane.b32.xlu1 %v1275_v3, %s4829_s30  ;;  %v5912_v61 = vld [vmem:[%s7457_s1 + $0x98] sm:$0xff]  ;;  %v5917_v3 = vld [vmem:[%s7457_s1 + $0x80] sm:$0xff] }
 0x1c9   : > { %v1228_v2 = vpop.permute.xlu1 %1227  ;;  %v1243_v23 = vpop.permute.xlu0 %1242 }
 0x1ca   : > { %v1277_v54 = vmul.f32 %v1228_v2, %v5783_v45  ;;  %v1280_v52 = vmul.f32 %v1243_v23, %v5793_v53  ;;  %v5929_v2 = vld [vmem:[%s7457_s1 + $0x90] sm:$0xff]  ;;  %v5948_v23 = vld [vmem:[%s7457_s1 + $0xc8] sm:$0xff] }
 0x1cc   : > { %1370 = vrot.lane.b32.xlu0 %v1278_v6, %s4829_s30  ;;  %1368 = vrot.lane.b32.xlu1 %v1277_v54, %s4829_s30  ;;  %v5936_v6 = vld [vmem:[%s7457_s1 + $0xb8] sm:$0xff]  ;;  %v5941_v54 = vld [vmem:[%s7457_s1 + $0xa0] sm:$0xff] }
 0x1cd   : > { %v1238_v51 = vpop.permute.xlu1 %1237 }
 0x1ce   : > { %v1279_v29 = vmul.f32 %v1238_v51, %v5797_v8  ;;  %v5953_v51 = vld [vmem:[%s7457_s1 + $0xb0] sm:$0xff] }
 0x1d0   : > { %1374 = vrot.lane.b32.xlu0 %v1280_v52, %s4829_s30  ;;  %1372 = vrot.lane.b32.xlu1 %v1279_v29, %s4829_s30  ;;  %v5960_v52 = vld [vmem:[%s7457_s1 + $0xd8] sm:$0xff]  ;;  %v5965_v29 = vld [vmem:[%s7457_s1 + $0xc0] sm:$0xff] }
 0x1d1   : > { %v1248_v38 = vpop.permute.xlu1 %1247 }
 0x1d2   : > { %v1281_v41 = vmul.f32 %v1248_v38, %v5556_v22  ;;  %v5979_v22 = vld [vmem:[%s7457_s1 + $0xd0] sm:$0xff] }
 0x1d4   : > { %1477 = vperm.xlu0 %4712, %v5808_v37   ;;  %1376 = vrot.lane.b32.xlu1 %v1281_v41, %s4829_s30 }
 0x1d8   : > { %1492 = vperm.xlu0 %4712, %v5816_v32   ;;  %1482 = vperm.xlu1 %4713, %v5821_v42  }
 0x1dc   : > { %1502 = vperm.xlu0 %4712, %v5828_v12   ;;  %1487 = vperm.xlu1 %4713, %v5833_v55  }
 0x1e0   : > { %1512 = vperm.xlu0 %4712, %v5840_v58   ;;  %1497 = vperm.xlu1 %4713, %v5845_v15  }
 0x1e4   : > { %1522 = vperm.xlu0 %4712, %v5852_v28   ;;  %1507 = vperm.xlu1 %4713, %v5857_v56  }
 0x1e8   : > { %1532 = vperm.xlu0 %4712, %v5864_v21   ;;  %1517 = vperm.xlu1 %4713, %v5869_v46  }
 0x1ec   : > { %1542 = vperm.xlu0 %4712, %v5876_v40   ;;  %1527 = vperm.xlu1 %4713, %v5881_v18  }
 0x1f0   : > { %1552 = vperm.xlu0 %4712, %v5888_v26   ;;  %1537 = vperm.xlu1 %4713, %v5893_v34  }
 0x1f4   : > { %1562 = vperm.xlu0 %4712, %v5900_v30   ;;  %1547 = vperm.xlu1 %4713, %v5905_v35  }
 0x1f8   : > { %1572 = vperm.xlu0 %4712, %v5912_v61   ;;  %1557 = vperm.xlu1 %4713, %v5917_v3  }
 0x1fc   : > { %1582 = vperm.xlu0 %4712, %v5924_v24   ;;  %1567 = vperm.xlu1 %4713, %v5929_v2  }
 0x200   : > { %1592 = vperm.xlu0 %4712, %v5936_v6   ;;  %1577 = vperm.xlu1 %4713, %v5941_v54  }
 0x204   : > { %1602 = vperm.xlu0 %4712, %v5948_v23   ;;  %1587 = vperm.xlu1 %4713, %v5953_v51  }
 0x206   : > { %v1315_v38 = vpop.permute.xlu0 %1314  ;;  %v1317_v41 = vpop.permute.xlu1 %1316 }
 0x207   : > { %1411 = vst.msk [vmem:[#allocation2] sm:$0xff] %vm1410_vm4, %v1315_v38  ;;  %1412 = vst.msk [vmem:[#allocation2 + $0x8] sm:$0xff] %vm1410_vm4, %v1317_v41  ;;  %v5987_v38 = vld [vmem:[%s7457_s1 + $0xf8] sm:$0xff]  ;;  %v5992_v41 = vld [vmem:[%s7457_s1 + $0xe0] sm:$0xff] }
 0x208   : > { %1612 = vperm.xlu0 %4712, %v5960_v52   ;;  %1597 = vperm.xlu1 %4713, %v5965_v29  }
 0x20a   : > { %v1319_v1 = vpop.permute.xlu0 %1318 }
 0x20b   : > { %1413 = vst.msk [vmem:[#allocation2 + $0x10] sm:$0xff] %vm1410_vm4, %v1319_v1  ;;  %v6001_v1 = vld [vmem:[%s7457_s1 + $0xf0] sm:$0xff] }
 0x20c   : > { %1622 = vperm.xlu0 %4712, %v5974_v0   ;;  %1607 = vperm.xlu1 %4713, %v5979_v22  }
 0x20e   : > { %v1323_v8 = vpop.permute.xlu0 %1322  ;;  %v1321_v53 = vpop.permute.xlu1 %1320 }
 0x20f   : > { %1415 = vst.msk [vmem:[#allocation2 + $0x20] sm:$0xff] %vm1410_vm4, %v1323_v8  ;;  %1414 = vst.msk [vmem:[#allocation2 + $0x18] sm:$0xff] %vm1410_vm4, %v1321_v53 }
 0x210   : > { %1632 = vperm.xlu0 %4712, %v5987_v38   ;;  %1617 = vperm.xlu1 %4713, %v5992_v41  }
 0x212   : > { %v1327_v45 = vpop.permute.xlu0 %1326  ;;  %v1325_v63 = vpop.permute.xlu1 %1324 }
 0x213   : > { %1417 = vst.msk [vmem:[#allocation2 + $0x30] sm:$0xff] %vm1410_vm4, %v1327_v45  ;;  %1416 = vst.msk [vmem:[#allocation2 + $0x28] sm:$0xff] %vm1410_vm4, %v1325_v63 }
 0x214   : > { %1627 = vperm.xlu1 %4713, %v6001_v1  }
 0x216   : > { %v1331_v8 = vpop.permute.xlu0 %1330  ;;  %v1329_v50 = vpop.permute.xlu1 %1328 }
 0x217   : > { %1419 = vst.msk [vmem:[#allocation2 + $0x40] sm:$0xff] %vm1410_vm4, %v1331_v8  ;;  %1418 = vst.msk [vmem:[#allocation2 + $0x38] sm:$0xff] %vm1410_vm4, %v1329_v50 }
 0x21a   : > { %v1335_v53 = vpop.permute.xlu0 %1334  ;;  %v1333_v43 = vpop.permute.xlu1 %1332 }
 0x21b   : > { %1421 = vst.msk [vmem:[#allocation2 + $0x50] sm:$0xff] %vm1410_vm4, %v1335_v53  ;;  %1420 = vst.msk [vmem:[#allocation2 + $0x48] sm:$0xff] %vm1410_vm4, %v1333_v43 }
 0x21e   : > { %v1339_v60 = vpop.permute.xlu0 %1338  ;;  %v1337_v59 = vpop.permute.xlu1 %1336 }
 0x21f   : > { %1423 = vst.msk [vmem:[#allocation2 + $0x60] sm:$0xff] %vm1410_vm4, %v1339_v60  ;;  %1422 = vst.msk [vmem:[#allocation2 + $0x58] sm:$0xff] %vm1410_vm4, %v1337_v59 }
 0x222   : > { %v1343_v63 = vpop.permute.xlu0 %1342  ;;  %v1341_v45 = vpop.permute.xlu1 %1340 }
 0x223   : > { %1425 = vst.msk [vmem:[#allocation2 + $0x70] sm:$0xff] %vm1410_vm4, %v1343_v63  ;;  %1424 = vst.msk [vmem:[#allocation2 + $0x68] sm:$0xff] %vm1410_vm4, %v1341_v45 }
 0x226   : > { %v1347_v8 = vpop.permute.xlu0 %1346  ;;  %v1345_v50 = vpop.permute.xlu1 %1344 }
 0x227   : > { %1427 = vst.msk [vmem:[#allocation2 + $0x80] sm:$0xff] %vm1410_vm4, %v1347_v8  ;;  %1426 = vst.msk [vmem:[#allocation2 + $0x78] sm:$0xff] %vm1410_vm4, %v1345_v50 }
 0x22a   : > { %v1351_v53 = vpop.permute.xlu0 %1350  ;;  %v1349_v43 = vpop.permute.xlu1 %1348 }
 0x22b   : > { %1429 = vst.msk [vmem:[#allocation2 + $0x90] sm:$0xff] %vm1410_vm4, %v1351_v53  ;;  %1428 = vst.msk [vmem:[#allocation2 + $0x88] sm:$0xff] %vm1410_vm4, %v1349_v43 }
 0x22e   : > { %v1355_v60 = vpop.permute.xlu0 %1354  ;;  %v1353_v59 = vpop.permute.xlu1 %1352 }
 0x22f   : > { %1431 = vst.msk [vmem:[#allocation2 + $0xa0] sm:$0xff] %vm1410_vm4, %v1355_v60  ;;  %1430 = vst.msk [vmem:[#allocation2 + $0x98] sm:$0xff] %vm1410_vm4, %v1353_v59 }
 0x232   : > { %v1359_v63 = vpop.permute.xlu0 %1358  ;;  %v1357_v45 = vpop.permute.xlu1 %1356 }
 0x233   : > { %1433 = vst.msk [vmem:[#allocation2 + $0xb0] sm:$0xff] %vm1410_vm4, %v1359_v63  ;;  %1432 = vst.msk [vmem:[#allocation2 + $0xa8] sm:$0xff] %vm1410_vm4, %v1357_v45 }
 0x236   : > { %v1363_v8 = vpop.permute.xlu0 %1362  ;;  %v1361_v50 = vpop.permute.xlu1 %1360 }
 0x237   : > { %1435 = vst.msk [vmem:[#allocation2 + $0xc0] sm:$0xff] %vm1410_vm4, %v1363_v8  ;;  %1434 = vst.msk [vmem:[#allocation2 + $0xb8] sm:$0xff] %vm1410_vm4, %v1361_v50 }
 0x23a   : > { %v1367_v53 = vpop.permute.xlu0 %1366  ;;  %v1365_v43 = vpop.permute.xlu1 %1364 }
 0x23b   : > { %1437 = vst.msk [vmem:[#allocation2 + $0xd0] sm:$0xff] %vm1410_vm4, %v1367_v53  ;;  %1436 = vst.msk [vmem:[#allocation2 + $0xc8] sm:$0xff] %vm1410_vm4, %v1365_v43 }
 0x23e   : > { %v1371_v60 = vpop.permute.xlu0 %1370  ;;  %v1369_v59 = vpop.permute.xlu1 %1368 }
 0x23f   : > { %1439 = vst.msk [vmem:[#allocation2 + $0xe0] sm:$0xff] %vm1410_vm4, %v1371_v60  ;;  %1438 = vst.msk [vmem:[#allocation2 + $0xd8] sm:$0xff] %vm1410_vm4, %v1369_v59  ;;  %v7667_v60 = vld [vmem:[#allocation20_spill] sm:$0xff]  ;;  %v4831_v59 = vmov 5  }
 0x240   : > { %4715 = vset.pattern.permute.xlu0 %v4831_v59  ;;  %4714 = vset.pattern.permute.xlu1 %v4831_v59 }
 0x242   : > { %v1375_v63 = vpop.permute.xlu0 %1374  ;;  %v1373_v45 = vpop.permute.xlu1 %1372 }
 0x243   : > { %1441 = vst.msk [vmem:[#allocation2 + $0xf0] sm:$0xff] %vm1410_vm4, %v1375_v63  ;;  %1440 = vst.msk [vmem:[#allocation2 + $0xe8] sm:$0xff] %vm1410_vm4, %v1373_v45 }
 0x246   : > { %v1377_v8 = vpop.permute.xlu1 %1376 }
 0x247   : > { %1442 = vst.msk [vmem:[#allocation2 + $0xf8] sm:$0xff] %vm1410_vm4, %v1377_v8  ;;  %v7669_v8 = vld [vmem:[#allocation23_spill] sm:$0xff] }
 0x253   : > { %v1478_v50 = vpop.permute.xlu0 %1477 }
 0x254   : > { %v1635_v53 = vmul.f32 %v1478_v50, %v7666_v49  ;;  %v7670_v49 = vld [vmem:[#allocation24_spill] sm:$0xff] }
 0x256   : > { %1699 = vrot.lane.b32.xlu1 %v1635_v53, %s4830_s12 }
 0x257   : > { %v1493_v43 = vpop.permute.xlu0 %1492  ;;  %v1483_v48 = vpop.permute.xlu1 %1482 }
 0x258   : > { %v1636_v7 = vmul.f32 %v1483_v48, %v7667_v60  ;;  %v1638_v33 = vmul.f32 %v1493_v43, %v7668_v36  ;;  %v7671_v48 = vld [vmem:[#allocation25_spill] sm:$0xff]  ;;  %v7673_v36 = vld [vmem:[#allocation27_spill] sm:$0xff] }
 0x25a   : > { %1701 = vrot.lane.b32.xlu0 %v1636_v7, %s4830_s12 }
 0x25b   : > { %v1503_v63 = vpop.permute.xlu0 %1502  ;;  %v1488_v45 = vpop.permute.xlu1 %1487 }
 0x25c   : > { %v1637_v20 = vmul.f32 %v1488_v45, %v7669_v8  ;;  %v1640_v16 = vmul.f32 %v1503_v63, %v7670_v49  ;;  %v7674_v8 = vld [vmem:[#allocation28_spill] sm:$0xff]  ;;  %v7675_v49 = vld [vmem:[#allocation29_spill] sm:$0xff] }
 0x25e   : > { %1703 = vrot.lane.b32.xlu1 %v1637_v20, %s4830_s12  ;;  %1705 = vrot.lane.b32.xlu0 %v1638_v33, %s4830_s12 }
 0x25f   : > { %v1513_v50 = vpop.permute.xlu0 %1512  ;;  %v1498_v53 = vpop.permute.xlu1 %1497 }
 0x260   : > { %v1639_v60 = vmul.f32 %v1498_v53, %v7671_v48  ;;  %v1642_v43 = vmul.f32 %v1513_v50, %v7672_v27  ;;  %v7676_v48 = vld [vmem:[#allocation30_spill] sm:$0xff]  ;;  %v7677_v27 = vld [vmem:[#allocation31_spill] sm:$0xff] }
 0x262   : > { %1707 = vrot.lane.b32.xlu1 %v1639_v60, %s4830_s12  ;;  %1709 = vrot.lane.b32.xlu0 %v1640_v16, %s4830_s12 }
 0x263   : > { %v1523_v7 = vpop.permute.xlu0 %1522  ;;  %v1508_v59 = vpop.permute.xlu1 %1507 }
 0x264   : > { %v1641_v45 = vmul.f32 %v1508_v59, %v7673_v36  ;;  %v1644_v63 = vmul.f32 %v1523_v7, %v7674_v8  ;;  %v7678_v36 = vld [vmem:[#allocation32_spill] sm:$0xff]  ;;  %v7679_v8 = vld [vmem:[#allocation33_spill] sm:$0xff] }
 0x266   : > { %1711 = vrot.lane.b32.xlu1 %v1641_v45, %s4830_s12  ;;  %1713 = vrot.lane.b32.xlu0 %v1642_v43, %s4830_s12 }
 0x267   : > { %v1533_v20 = vpop.permute.xlu0 %1532  ;;  %v1518_v33 = vpop.permute.xlu1 %1517 }
 0x268   : > { %v1643_v53 = vmul.f32 %v1518_v33, %v7675_v49  ;;  %v1646_v50 = vmul.f32 %v1533_v20, %v7676_v48  ;;  %v7680_v49 = vld [vmem:[#allocation34_spill] sm:$0xff]  ;;  %v7681_v48 = vld [vmem:[#allocation35_spill] sm:$0xff] }
 0x26a   : > { %1715 = vrot.lane.b32.xlu1 %v1643_v53, %s4830_s12  ;;  %1717 = vrot.lane.b32.xlu0 %v1644_v63, %s4830_s12 }
 0x26b   : > { %v1543_v16 = vpop.permute.xlu0 %1542  ;;  %v1528_v60 = vpop.permute.xlu1 %1527 }
 0x26c   : > { %v1645_v59 = vmul.f32 %v1528_v60, %v7677_v27  ;;  %v1648_v7 = vmul.f32 %v1543_v16, %v7678_v36  ;;  %v7682_v27 = vld [vmem:[#allocation36_spill] sm:$0xff]  ;;  %v7683_v36 = vld [vmem:[#allocation37_spill] sm:$0xff] }
 0x26e   : > { %1719 = vrot.lane.b32.xlu1 %v1645_v59, %s4830_s12  ;;  %1721 = vrot.lane.b32.xlu0 %v1646_v50, %s4830_s12 }
 0x26f   : > { %v1553_v43 = vpop.permute.xlu0 %1552  ;;  %v1538_v45 = vpop.permute.xlu1 %1537 }
 0x270   : > { %v1647_v33 = vmul.f32 %v1538_v45, %v7679_v8  ;;  %v1650_v20 = vmul.f32 %v1553_v43, %v7680_v49  ;;  %v7684_v8 = vld [vmem:[#allocation38_spill] sm:$0xff]  ;;  %v7685_v49 = vld [vmem:[#allocation39_spill] sm:$0xff] }
 0x272   : > { %1723 = vrot.lane.b32.xlu1 %v1647_v33, %s4830_s12  ;;  %1725 = vrot.lane.b32.xlu0 %v1648_v7, %s4830_s12 }
 0x273   : > { %v1563_v63 = vpop.permute.xlu0 %1562  ;;  %v1548_v53 = vpop.permute.xlu1 %1547 }
 0x274   : > { %v1649_v60 = vmul.f32 %v1548_v53, %v7681_v48  ;;  %v1652_v16 = vmul.f32 %v1563_v63, %v7682_v27  ;;  %v7686_v48 = vld [vmem:[#allocation40_spill] sm:$0xff]  ;;  %v7687_v27 = vld [vmem:[#allocation41_spill] sm:$0xff] }
 0x276   : > { %1727 = vrot.lane.b32.xlu1 %v1649_v60, %s4830_s12  ;;  %1729 = vrot.lane.b32.xlu0 %v1650_v20, %s4830_s12 }
 0x277   : > { %v1573_v50 = vpop.permute.xlu0 %1572  ;;  %v1558_v59 = vpop.permute.xlu1 %1557 }
 0x278   : > { %v1651_v45 = vmul.f32 %v1558_v59, %v7683_v36  ;;  %v1654_v43 = vmul.f32 %v1573_v50, %v7684_v8  ;;  %v7688_v36 = vld [vmem:[#allocation42_spill] sm:$0xff]  ;;  %v7689_v8 = vld [vmem:[#allocation43_spill] sm:$0xff] }
 0x27a   : > { %1731 = vrot.lane.b32.xlu1 %v1651_v45, %s4830_s12  ;;  %1733 = vrot.lane.b32.xlu0 %v1652_v16, %s4830_s12 }
 0x27b   : > { %v1583_v7 = vpop.permute.xlu0 %1582  ;;  %v1568_v33 = vpop.permute.xlu1 %1567 }
 0x27c   : > { %v1653_v53 = vmul.f32 %v1568_v33, %v7685_v49  ;;  %v1656_v63 = vmul.f32 %v1583_v7, %v7686_v48  ;;  %v7690_v49 = vld [vmem:[#allocation44_spill] sm:$0xff]  ;;  %v7691_v48 = vld [vmem:[#allocation45_spill] sm:$0xff] }
 0x27e   : > { %1735 = vrot.lane.b32.xlu1 %v1653_v53, %s4830_s12  ;;  %1737 = vrot.lane.b32.xlu0 %v1654_v43, %s4830_s12 }
 0x27f   : > { %v1593_v20 = vpop.permute.xlu0 %1592  ;;  %v1578_v60 = vpop.permute.xlu1 %1577 }
 0x280   : > { %v1655_v59 = vmul.f32 %v1578_v60, %v7687_v27  ;;  %v1658_v50 = vmul.f32 %v1593_v20, %v7688_v36  ;;  %v7719_v36 = vld [vmem:[#allocation27_spill] sm:$0xff] }
 0x282   : > { %1739 = vrot.lane.b32.xlu1 %v1655_v59, %s4830_s12  ;;  %1741 = vrot.lane.b32.xlu0 %v1656_v63, %s4830_s12 }
 0x283   : > { %v1603_v16 = vpop.permute.xlu0 %1602  ;;  %v1588_v45 = vpop.permute.xlu1 %1587 }
 0x284   : > { %v1657_v33 = vmul.f32 %v1588_v45, %v7689_v8  ;;  %v1660_v7 = vmul.f32 %v1603_v16, %v7690_v49  ;;  %v7692_v45 = vld [vmem:[#allocation47_spill] sm:$0xff] }
 0x286   : > { %1743 = vrot.lane.b32.xlu1 %v1657_v33, %s4830_s12  ;;  %1745 = vrot.lane.b32.xlu0 %v1658_v50, %s4830_s12 }
 0x287   : > { %v1613_v43 = vpop.permute.xlu0 %1612  ;;  %v1598_v53 = vpop.permute.xlu1 %1597 }
 0x288   : > { %v1659_v60 = vmul.f32 %v1598_v53, %v7691_v48  ;;  %v1662_v20 = vmul.f32 %v1613_v43, %v5419_v62 }
 0x28a   : > { %1747 = vrot.lane.b32.xlu1 %v1659_v60, %s4830_s12  ;;  %1749 = vrot.lane.b32.xlu0 %v1660_v7, %s4830_s12  ;;  %v7693_v7 = vld [vmem:[#allocation21_spill] sm:$0xff]  ;;  %v7694_v60 = vld [vmem:[#allocation19_spill] sm:$0xff] }
 0x28b   : > { %v1623_v63 = vpop.permute.xlu0 %1622  ;;  %v1608_v59 = vpop.permute.xlu1 %1607 }
 0x28c   : > { %v1661_v8 = vmul.f32 %v1608_v59, %v7692_v45  ;;  %v1664_v16 = vmul.f32 %v1623_v63, %v5434_v31  ;;  %v4752_v63 = vld [vmem:[%s4925_s14] sm:$0xff]  ;;  %v6491_v45 = vld [vmem:[%s7457_s1 + $0xe8] sm:$0xff] }
 0x28e   : > { %1751 = vrot.lane.b32.xlu1 %v1661_v8, %s4830_s12  ;;  %1753 = vrot.lane.b32.xlu0 %v1662_v20, %s4830_s12  ;;  %v4753_v20 = vld [vmem:[%s4925_s14 + $0x8] sm:$0xff] }
 0x28f   : > { %v1618_v50 = vpop.permute.xlu1 %1617  ;;  %v1633_v53 = vpop.permute.xlu0 %1632 }
 0x290   : > { %v1663_v33 = vmul.f32 %v1618_v50, %v5438_v47  ;;  %v1666_v8 = vmul.f32 %v1633_v53, %v7693_v7  ;;  %v4754_v50 = vld [vmem:[%s4925_s14 + $0x10] sm:$0xff]  ;;  %v4757_v53 = vld [vmem:[%s4925_s14 + $0x28] sm:$0xff] }
 0x292   : > { %1755 = vrot.lane.b32.xlu1 %v1663_v33, %s4830_s12  ;;  %1757 = vrot.lane.b32.xlu0 %v1664_v16, %s4830_s12  ;;  %v4755_v16 = vld [vmem:[%s4925_s14 + $0x18] sm:$0xff]  ;;  %v4756_v33 = vld [vmem:[%s4925_s14 + $0x20] sm:$0xff] }
 0x293   : > { %v1628_v43 = vpop.permute.xlu1 %1627 }
 0x294   : > { %v1665_v59 = vmul.f32 %v1628_v43, %v7694_v60  ;;  %v4758_v43 = vld [vmem:[%s4925_s14 + $0x30] sm:$0xff]  ;;  %v6465_v60 = vld [vmem:[%s7457_s1 + $0xc8] sm:$0xff] }
 0x296   : > { %1759 = vrot.lane.b32.xlu1 %v1665_v59, %s4830_s12  ;;  %1761 = vrot.lane.b32.xlu0 %v1666_v8, %s4830_s12  ;;  %v4759_v8 = vld [vmem:[%s4925_s14 + $0x38] sm:$0xff]  ;;  %v4760_v59 = vld [vmem:[%s4925_s14 + $0x40] sm:$0xff] }
 0x29a   : > { %1860 = vrot.lane.b32.xlu1 %v4752_v63, %s4832_s13  ;;  %1862 = vrot.lane.b32.xlu0 %v4753_v20, %s4832_s13  ;;  %v4761_v63 = vld [vmem:[%s4925_s14 + $0x48] sm:$0xff]  ;;  %v4762_v20 = vld [vmem:[%s4925_s14 + $0x50] sm:$0xff] }
 0x29e   : > { %1864 = vrot.lane.b32.xlu1 %v4754_v50, %s4832_s13  ;;  %1866 = vrot.lane.b32.xlu0 %v4755_v16, %s4832_s13  ;;  %v4763_v50 = vld [vmem:[%s4925_s14 + $0x58] sm:$0xff]  ;;  %v4764_v16 = vld [vmem:[%s4925_s14 + $0x60] sm:$0xff] }
 0x2a2   : > { %1868 = vrot.lane.b32.xlu1 %v4756_v33, %s4832_s13  ;;  %1870 = vrot.lane.b32.xlu0 %v4757_v53, %s4832_s13  ;;  %v4765_v33 = vld [vmem:[%s4925_s14 + $0x68] sm:$0xff]  ;;  %v4766_v53 = vld [vmem:[%s4925_s14 + $0x70] sm:$0xff] }
 0x2a6   : > { %1872 = vrot.lane.b32.xlu1 %v4758_v43, %s4832_s13  ;;  %1874 = vrot.lane.b32.xlu0 %v4759_v8, %s4832_s13  ;;  %v4767_v43 = vld [vmem:[%s4925_s14 + $0x78] sm:$0xff]  ;;  %v4768_v8 = vld [vmem:[%s4925_s14 + $0x80] sm:$0xff] }
 0x2aa   : > { %1876 = vrot.lane.b32.xlu1 %v4760_v59, %s4832_s13  ;;  %1878 = vrot.lane.b32.xlu0 %v4761_v63, %s4832_s13  ;;  %v4769_v59 = vld [vmem:[%s4925_s14 + $0x88] sm:$0xff]  ;;  %v4770_v63 = vld [vmem:[%s4925_s14 + $0x90] sm:$0xff] }
 0x2ae   : > { %1880 = vrot.lane.b32.xlu1 %v4762_v20, %s4832_s13  ;;  %1882 = vrot.lane.b32.xlu0 %v4763_v50, %s4832_s13  ;;  %v4771_v20 = vld [vmem:[%s4925_s14 + $0x98] sm:$0xff]  ;;  %v4772_v50 = vld [vmem:[%s4925_s14 + $0xa0] sm:$0xff] }
 0x2b2   : > { %1884 = vrot.lane.b32.xlu1 %v4764_v16, %s4832_s13  ;;  %1886 = vrot.lane.b32.xlu0 %v4765_v33, %s4832_s13  ;;  %v4773_v16 = vld [vmem:[%s4925_s14 + $0xa8] sm:$0xff]  ;;  %v4774_v33 = vld [vmem:[%s4925_s14 + $0xb0] sm:$0xff] }
 0x2b6   : > { %1888 = vrot.lane.b32.xlu1 %v4766_v53, %s4832_s13  ;;  %1890 = vrot.lane.b32.xlu0 %v4767_v43, %s4832_s13  ;;  %v4775_v53 = vld [vmem:[%s4925_s14 + $0xb8] sm:$0xff] }
 0x2ba   : > { %1892 = vrot.lane.b32.xlu1 %v4768_v8, %s4832_s13  ;;  %1894 = vrot.lane.b32.xlu0 %v4769_v59, %s4832_s13  ;;  %v4776_v8 = vld [vmem:[%s4925_s14 + $0xc0] sm:$0xff]  ;;  %v4777_v59 = vld [vmem:[%s4925_s14 + $0xc8] sm:$0xff] }
 0x2be   : > { %1896 = vrot.lane.b32.xlu1 %v4770_v63, %s4832_s13  ;;  %1898 = vrot.lane.b32.xlu0 %v4771_v20, %s4832_s13  ;;  %v4778_v20 = vld [vmem:[%s4925_s14 + $0xd0] sm:$0xff] }
 0x2c2   : > { %1900 = vrot.lane.b32.xlu1 %v4772_v50, %s4832_s13  ;;  %1902 = vrot.lane.b32.xlu0 %v4773_v16, %s4832_s13  ;;  %v4779_v50 = vld [vmem:[%s4925_s14 + $0xd8] sm:$0xff] }
 0x2c6   : > { %1904 = vrot.lane.b32.xlu1 %v4774_v33, %s4832_s13  ;;  %1906 = vrot.lane.b32.xlu0 %v4775_v53, %s4832_s13  ;;  %v4780_v53 = vld [vmem:[%s4925_s14 + $0xe0] sm:$0xff] }
 0x2c8   : > { %v1700_v43 = vpop.permute.xlu1 %1699 }
 0x2c9   : > { %1796 = vst.msk [vmem:[#allocation2] sm:$0xff] %vm1795_vm5, %v1700_v43  ;;  %v4781_v43 = vld [vmem:[%s4925_s14 + $0xe8] sm:$0xff] }
 0x2ca   : > { %1908 = vrot.lane.b32.xlu1 %v4776_v8, %s4832_s13  ;;  %1910 = vrot.lane.b32.xlu0 %v4777_v59, %s4832_s13 }
 0x2cc   : > { %v1702_v63 = vpop.permute.xlu0 %1701 }
 0x2cd   : > { %1797 = vst.msk [vmem:[#allocation2 + $0x8] sm:$0xff] %vm1795_vm5, %v1702_v63  ;;  %v4782_v63 = vld [vmem:[%s4925_s14 + $0xf0] sm:$0xff] }
 0x2ce   : > { %1912 = vrot.lane.b32.xlu1 %v4778_v20, %s4832_s13  ;;  %1914 = vrot.lane.b32.xlu0 %v4779_v50, %s4832_s13  ;;  %v4783_v20 = vld [vmem:[%s4925_s14 + $0xf8] sm:$0xff] }
 0x2d0   : > { %v1704_v16 = vpop.permute.xlu1 %1703  ;;  %v1706_v33 = vpop.permute.xlu0 %1705 }
 0x2d1   : > { %1798 = vst.msk [vmem:[#allocation2 + $0x10] sm:$0xff] %vm1795_vm5, %v1704_v16  ;;  %1799 = vst.msk [vmem:[#allocation2 + $0x18] sm:$0xff] %vm1795_vm5, %v1706_v33 }
 0x2d2   : > { %1916 = vrot.lane.b32.xlu1 %v4780_v53, %s4832_s13  ;;  %1918 = vrot.lane.b32.xlu0 %v4781_v43, %s4832_s13 }
 0x2d4   : > { %v1708_v8 = vpop.permute.xlu1 %1707  ;;  %v1710_v59 = vpop.permute.xlu0 %1709 }
 0x2d5   : > { %1800 = vst.msk [vmem:[#allocation2 + $0x20] sm:$0xff] %vm1795_vm5, %v1708_v8  ;;  %1801 = vst.msk [vmem:[#allocation2 + $0x28] sm:$0xff] %vm1795_vm5, %v1710_v59  ;;  %v4833_v59 = vmov 6  }
 0x2d6   : > { %1920 = vrot.lane.b32.xlu1 %v4782_v63, %s4832_s13  ;;  %1922 = vrot.lane.b32.xlu0 %v4783_v20, %s4832_s13 }
 0x2d8   : > { %v1712_v50 = vpop.permute.xlu1 %1711  ;;  %v1714_v16 = vpop.permute.xlu0 %1713 }
 0x2d9   : > { %1802 = vst.msk [vmem:[#allocation2 + $0x30] sm:$0xff] %vm1795_vm5, %v1712_v50  ;;  %1803 = vst.msk [vmem:[#allocation2 + $0x38] sm:$0xff] %vm1795_vm5, %v1714_v16 }
 0x2da   : > { %2023 = vperm.xlu1 %4714, %v5808_v37   ;;  %2028 = vperm.xlu0 %4715, %v5821_v42  }
 0x2dc   : > { %v1716_v33 = vpop.permute.xlu1 %1715  ;;  %v1718_v53 = vpop.permute.xlu0 %1717 }
 0x2dd   : > { %1804 = vst.msk [vmem:[#allocation2 + $0x40] sm:$0xff] %vm1795_vm5, %v1716_v33  ;;  %1805 = vst.msk [vmem:[#allocation2 + $0x48] sm:$0xff] %vm1795_vm5, %v1718_v53 }
 0x2de   : > { %2033 = vperm.xlu1 %4714, %v5833_v55   ;;  %2043 = vperm.xlu0 %4715, %v5845_v15  }
 0x2e0   : > { %v1720_v43 = vpop.permute.xlu1 %1719  ;;  %v1722_v8 = vpop.permute.xlu0 %1721 }
 0x2e1   : > { %1806 = vst.msk [vmem:[#allocation2 + $0x50] sm:$0xff] %vm1795_vm5, %v1720_v43  ;;  %1807 = vst.msk [vmem:[#allocation2 + $0x58] sm:$0xff] %vm1795_vm5, %v1722_v8 }
 0x2e2   : > { %2038 = vperm.xlu1 %4714, %v5816_v32   ;;  %2053 = vperm.xlu0 %4715, %v5857_v56  }
 0x2e4   : > { %v1724_v37 = vpop.permute.xlu1 %1723  ;;  %v1726_v42 = vpop.permute.xlu0 %1725 }
 0x2e5   : > { %1808 = vst.msk [vmem:[#allocation2 + $0x60] sm:$0xff] %vm1795_vm5, %v1724_v37  ;;  %1809 = vst.msk [vmem:[#allocation2 + $0x68] sm:$0xff] %vm1795_vm5, %v1726_v42 }
 0x2e6   : > { %2048 = vperm.xlu1 %4714, %v5828_v12   ;;  %2063 = vperm.xlu0 %4715, %v5869_v46  }
 0x2e8   : > { %v1728_v55 = vpop.permute.xlu1 %1727  ;;  %v1730_v15 = vpop.permute.xlu0 %1729 }
 0x2e9   : > { %1810 = vst.msk [vmem:[#allocation2 + $0x70] sm:$0xff] %vm1795_vm5, %v1728_v55  ;;  %1811 = vst.msk [vmem:[#allocation2 + $0x78] sm:$0xff] %vm1795_vm5, %v1730_v15 }
 0x2ea   : > { %2058 = vperm.xlu1 %4714, %v5840_v58   ;;  %2073 = vperm.xlu0 %4715, %v5881_v18  }
 0x2ec   : > { %v1732_v32 = vpop.permute.xlu1 %1731  ;;  %v1734_v56 = vpop.permute.xlu0 %1733 }
 0x2ed   : > { %1812 = vst.msk [vmem:[#allocation2 + $0x80] sm:$0xff] %vm1795_vm5, %v1732_v32  ;;  %1813 = vst.msk [vmem:[#allocation2 + $0x88] sm:$0xff] %vm1795_vm5, %v1734_v56 }
 0x2ee   : > { %2068 = vperm.xlu1 %4714, %v5852_v28   ;;  %2083 = vperm.xlu0 %4715, %v5893_v34  }
 0x2f0   : > { %v1736_v12 = vpop.permute.xlu1 %1735  ;;  %v1738_v46 = vpop.permute.xlu0 %1737 }
 0x2f1   : > { %1814 = vst.msk [vmem:[#allocation2 + $0x90] sm:$0xff] %vm1795_vm5, %v1736_v12  ;;  %1815 = vst.msk [vmem:[#allocation2 + $0x98] sm:$0xff] %vm1795_vm5, %v1738_v46 }
 0x2f2   : > { %2078 = vperm.xlu1 %4714, %v5864_v21   ;;  %2093 = vperm.xlu0 %4715, %v5905_v35  }
 0x2f4   : > { %v1740_v58 = vpop.permute.xlu1 %1739  ;;  %v1742_v18 = vpop.permute.xlu0 %1741 }
 0x2f5   : > { %1816 = vst.msk [vmem:[#allocation2 + $0xa0] sm:$0xff] %vm1795_vm5, %v1740_v58  ;;  %1817 = vst.msk [vmem:[#allocation2 + $0xa8] sm:$0xff] %vm1795_vm5, %v1742_v18 }
 0x2f6   : > { %2088 = vperm.xlu1 %4714, %v5876_v40   ;;  %2103 = vperm.xlu0 %4715, %v5917_v3  }
 0x2f8   : > { %v1744_v28 = vpop.permute.xlu1 %1743  ;;  %v1746_v34 = vpop.permute.xlu0 %1745 }
 0x2f9   : > { %1818 = vst.msk [vmem:[#allocation2 + $0xb0] sm:$0xff] %vm1795_vm5, %v1744_v28  ;;  %1819 = vst.msk [vmem:[#allocation2 + $0xb8] sm:$0xff] %vm1795_vm5, %v1746_v34 }
 0x2fa   : > { %2098 = vperm.xlu1 %4714, %v5888_v26   ;;  %2113 = vperm.xlu0 %4715, %v5929_v2  }
 0x2fc   : > { %v1748_v21 = vpop.permute.xlu1 %1747  ;;  %v1750_v35 = vpop.permute.xlu0 %1749 }
 0x2fd   : > { %1820 = vst.msk [vmem:[#allocation2 + $0xc0] sm:$0xff] %vm1795_vm5, %v1748_v21  ;;  %1821 = vst.msk [vmem:[#allocation2 + $0xc8] sm:$0xff] %vm1795_vm5, %v1750_v35 }
 0x2fe   : > { %2108 = vperm.xlu1 %4714, %v5900_v30   ;;  %2123 = vperm.xlu0 %4715, %v5941_v54  }
 0x300   : > { %v1752_v40 = vpop.permute.xlu1 %1751  ;;  %v1754_v3 = vpop.permute.xlu0 %1753 }
 0x301   : > { %1822 = vst.msk [vmem:[#allocation2 + $0xd0] sm:$0xff] %vm1795_vm5, %v1752_v40  ;;  %1823 = vst.msk [vmem:[#allocation2 + $0xd8] sm:$0xff] %vm1795_vm5, %v1754_v3 }
 0x302   : > { %2118 = vperm.xlu1 %4714, %v5912_v61   ;;  %2133 = vperm.xlu0 %4715, %v5953_v51  }
 0x304   : > { %v1756_v26 = vpop.permute.xlu1 %1755  ;;  %v1758_v2 = vpop.permute.xlu0 %1757 }
 0x305   : > { %1824 = vst.msk [vmem:[#allocation2 + $0xe0] sm:$0xff] %vm1795_vm5, %v1756_v26  ;;  %1825 = vst.msk [vmem:[#allocation2 + $0xe8] sm:$0xff] %vm1795_vm5, %v1758_v2 }
 0x306   : > { %2128 = vperm.xlu1 %4714, %v5924_v24   ;;  %2143 = vperm.xlu0 %4715, %v5965_v29  }
 0x308   : > { %v1760_v30 = vpop.permute.xlu1 %1759  ;;  %v1762_v54 = vpop.permute.xlu0 %1761 }
 0x309   : > { %1826 = vst.msk [vmem:[#allocation2 + $0xf0] sm:$0xff] %vm1795_vm5, %v1760_v30  ;;  %1827 = vst.msk [vmem:[#allocation2 + $0xf8] sm:$0xff] %vm1795_vm5, %v1762_v54 }
 0x30a   : > { %2138 = vperm.xlu1 %4714, %v5936_v6   ;;  %2153 = vperm.xlu0 %4715, %v5979_v22  }
 0x30c   : > { %v1861_v61 = vpop.permute.xlu1 %1860  ;;  %v1863_v51 = vpop.permute.xlu0 %1862 }
 0x30d   : > { %1957 = vst.msk [vmem:[#allocation2] sm:$0xff] %vm1956_vm6, %v1861_v61  ;;  %1958 = vst.msk [vmem:[#allocation2 + $0x8] sm:$0xff] %vm1956_vm6, %v1863_v51 }
 0x30e   : > { %2148 = vperm.xlu1 %4714, %v5948_v23   ;;  %2163 = vperm.xlu0 %4715, %v5992_v41  }
 0x310   : > { %v1865_v24 = vpop.permute.xlu1 %1864  ;;  %v1867_v29 = vpop.permute.xlu0 %1866 }
 0x311   : > { %1959 = vst.msk [vmem:[#allocation2 + $0x10] sm:$0xff] %vm1956_vm6, %v1865_v24  ;;  %1960 = vst.msk [vmem:[#allocation2 + $0x18] sm:$0xff] %vm1956_vm6, %v1867_v29 }
 0x312   : > { %2158 = vperm.xlu1 %4714, %v5960_v52   ;;  %2173 = vperm.xlu0 %4715, %v6001_v1  }
 0x314   : > { %v1869_v22 = vpop.permute.xlu1 %1868  ;;  %v1871_v6 = vpop.permute.xlu0 %1870 }
 0x315   : > { %1961 = vst.msk [vmem:[#allocation2 + $0x20] sm:$0xff] %vm1956_vm6, %v1869_v22  ;;  %1962 = vst.msk [vmem:[#allocation2 + $0x28] sm:$0xff] %vm1956_vm6, %v1871_v6 }
 0x316   : > { %2168 = vperm.xlu1 %4714, %v5974_v0   ;;  %4716 = vset.pattern.permute.xlu0 %v4833_v59 }
 0x318   : > { %v1873_v23 = vpop.permute.xlu1 %1872  ;;  %v1875_v41 = vpop.permute.xlu0 %1874 }
 0x319   : > { %1963 = vst.msk [vmem:[#allocation2 + $0x30] sm:$0xff] %vm1956_vm6, %v1873_v23  ;;  %1964 = vst.msk [vmem:[#allocation2 + $0x38] sm:$0xff] %vm1956_vm6, %v1875_v41 }
 0x31a   : > { %2178 = vperm.xlu1 %4714, %v5987_v38  }
 0x31c   : > { %v1877_v52 = vpop.permute.xlu1 %1876  ;;  %v1879_v1 = vpop.permute.xlu0 %1878 }
 0x31d   : > { %1965 = vst.msk [vmem:[#allocation2 + $0x40] sm:$0xff] %vm1956_vm6, %v1877_v52  ;;  %1966 = vst.msk [vmem:[#allocation2 + $0x48] sm:$0xff] %vm1956_vm6, %v1879_v1 }
 0x31e   : > { %4717 = vset.pattern.permute.xlu1 %v4833_v59 }
 0x320   : > { %v1881_v63 = vpop.permute.xlu1 %1880  ;;  %v1883_v20 = vpop.permute.xlu0 %1882 }
 0x321   : > { %1967 = vst.msk [vmem:[#allocation2 + $0x50] sm:$0xff] %vm1956_vm6, %v1881_v63  ;;  %1968 = vst.msk [vmem:[#allocation2 + $0x58] sm:$0xff] %vm1956_vm6, %v1883_v20 }
 0x324   : > { %v1885_v0 = vpop.permute.xlu1 %1884  ;;  %v1887_v50 = vpop.permute.xlu0 %1886 }
 0x325   : > { %1969 = vst.msk [vmem:[#allocation2 + $0x60] sm:$0xff] %vm1956_vm6, %v1885_v0  ;;  %1970 = vst.msk [vmem:[#allocation2 + $0x68] sm:$0xff] %vm1956_vm6, %v1887_v50 }
 0x328   : > { %v1889_v38 = vpop.permute.xlu1 %1888  ;;  %v1891_v16 = vpop.permute.xlu0 %1890 }
 0x329   : > { %1971 = vst.msk [vmem:[#allocation2 + $0x70] sm:$0xff] %vm1956_vm6, %v1889_v38  ;;  %1972 = vst.msk [vmem:[#allocation2 + $0x78] sm:$0xff] %vm1956_vm6, %v1891_v16 }
 0x32c   : > { %v1893_v33 = vpop.permute.xlu1 %1892  ;;  %v1895_v53 = vpop.permute.xlu0 %1894 }
 0x32d   : > { %1973 = vst.msk [vmem:[#allocation2 + $0x80] sm:$0xff] %vm1956_vm6, %v1893_v33  ;;  %1974 = vst.msk [vmem:[#allocation2 + $0x88] sm:$0xff] %vm1956_vm6, %v1895_v53 }
 0x330   : > { %v1897_v43 = vpop.permute.xlu1 %1896  ;;  %v1899_v8 = vpop.permute.xlu0 %1898 }
 0x331   : > { %1975 = vst.msk [vmem:[#allocation2 + $0x90] sm:$0xff] %vm1956_vm6, %v1897_v43  ;;  %1976 = vst.msk [vmem:[#allocation2 + $0x98] sm:$0xff] %vm1956_vm6, %v1899_v8 }
 0x334   : > { %v1901_v37 = vpop.permute.xlu1 %1900  ;;  %v1903_v42 = vpop.permute.xlu0 %1902 }
 0x335   : > { %1977 = vst.msk [vmem:[#allocation2 + $0xa0] sm:$0xff] %vm1956_vm6, %v1901_v37  ;;  %1978 = vst.msk [vmem:[#allocation2 + $0xa8] sm:$0xff] %vm1956_vm6, %v1903_v42  ;;  %v7695_v37 = vld [vmem:[#allocation11_spill] sm:$0xff] }
 0x338   : > { %v1905_v55 = vpop.permute.xlu1 %1904  ;;  %v1907_v15 = vpop.permute.xlu0 %1906 }
 0x339   : > { %1979 = vst.msk [vmem:[#allocation2 + $0xb0] sm:$0xff] %vm1956_vm6, %v1905_v55  ;;  %1980 = vst.msk [vmem:[#allocation2 + $0xb8] sm:$0xff] %vm1956_vm6, %v1907_v15  ;;  %v7696_v55 = vld [vmem:[#allocation6_spill] sm:$0xff] }
 0x33c   : > { %v1909_v32 = vpop.permute.xlu1 %1908  ;;  %v1911_v56 = vpop.permute.xlu0 %1910 }
 0x33d   : > { %1981 = vst.msk [vmem:[#allocation2 + $0xc0] sm:$0xff] %vm1956_vm6, %v1909_v32  ;;  %1982 = vst.msk [vmem:[#allocation2 + $0xc8] sm:$0xff] %vm1956_vm6, %v1911_v56 }
 0x340   : > { %v1913_v12 = vpop.permute.xlu1 %1912  ;;  %v1915_v46 = vpop.permute.xlu0 %1914 }
 0x341   : > { %1983 = vst.msk [vmem:[#allocation2 + $0xd0] sm:$0xff] %vm1956_vm6, %v1913_v12  ;;  %1984 = vst.msk [vmem:[#allocation2 + $0xd8] sm:$0xff] %vm1956_vm6, %v1915_v46  ;;  %v7697_v12 = vld [vmem:[#allocation13_spill] sm:$0xff] }
 0x344   : > { %v1917_v58 = vpop.permute.xlu1 %1916  ;;  %v1919_v18 = vpop.permute.xlu0 %1918 }
 0x345   : > { %1985 = vst.msk [vmem:[#allocation2 + $0xe0] sm:$0xff] %vm1956_vm6, %v1917_v58  ;;  %1986 = vst.msk [vmem:[#allocation2 + $0xe8] sm:$0xff] %vm1956_vm6, %v1919_v18  ;;  %v7698_v58 = vld [vmem:[#allocation8_spill] sm:$0xff] }
 0x348   : > { %v1921_v28 = vpop.permute.xlu1 %1920  ;;  %v1923_v34 = vpop.permute.xlu0 %1922 }
 0x349   : > { %1987 = vst.msk [vmem:[#allocation2 + $0xf0] sm:$0xff] %vm1956_vm6, %v1921_v28  ;;  %1988 = vst.msk [vmem:[#allocation2 + $0xf8] sm:$0xff] %vm1956_vm6, %v1923_v34 }
 0x359   : > { %v2024_v21 = vpop.permute.xlu1 %2023  ;;  %v2029_v35 = vpop.permute.xlu0 %2028 }
 0x35a   : > { %v2181_v40 = vmul.f32 %v2024_v21, %v5604_v9  ;;  %v2182_v3 = vmul.f32 %v2029_v35, %v5617_v11  ;;  %v7699_v21 = vld [vmem:[#allocation15_spill] sm:$0xff]  ;;  %v6453_v9 = vld [vmem:[%s7457_s1 + $0xb8] sm:$0xff] }
 0x35b   : > { %v6477_v11 = vld [vmem:[%s7457_s1 + $0xd8] sm:$0xff] }
 0x35c   : > { %2245 = vrot.lane.b32.xlu0 %v2181_v40, %s4834_s15  ;;  %2247 = vrot.lane.b32.xlu1 %v2182_v3, %s4834_s15  ;;  %v7700_v40 = vld [vmem:[#allocation10_spill] sm:$0xff] }
 0x35d   : > { %v2034_v26 = vpop.permute.xlu1 %2033  ;;  %v2044_v2 = vpop.permute.xlu0 %2043 }
 0x35e   : > { %v2183_v30 = vmul.f32 %v2034_v26, %v5611_v10  ;;  %v2185_v51 = vmul.f32 %v2044_v2, %v5624_v17 }
 0x360   : > { %2249 = vrot.lane.b32.xlu0 %v2183_v30, %s4834_s15  ;;  %v7701_v30 = vld [vmem:[#allocation17_spill] sm:$0xff] }
 0x361   : > { %v2039_v54 = vpop.permute.xlu1 %2038  ;;  %v2054_v61 = vpop.permute.xlu0 %2053 }
 0x362   : > { %v2184_v24 = vmul.f32 %v2039_v54, %v5630_v19  ;;  %v2187_v6 = vmul.f32 %v2054_v61, %v5638_v57  ;;  %v7702_v61 = vld [vmem:[#allocation12_spill] sm:$0xff] }
 0x364   : > { %2251 = vrot.lane.b32.xlu1 %v2184_v24, %s4834_s15  ;;  %2253 = vrot.lane.b32.xlu0 %v2185_v51, %s4834_s15 }
 0x365   : > { %v2049_v29 = vpop.permute.xlu1 %2048  ;;  %v2064_v22 = vpop.permute.xlu0 %2063 }
 0x366   : > { %v2186_v23 = vmul.f32 %v2049_v29, %v5644_v25  ;;  %v2189_v52 = vmul.f32 %v2064_v22, %v5652_v4  ;;  %v7703_v22 = vld [vmem:[#allocation14_spill] sm:$0xff] }
 0x368   : > { %2255 = vrot.lane.b32.xlu1 %v2186_v23, %s4834_s15  ;;  %2257 = vrot.lane.b32.xlu0 %v2187_v6, %s4834_s15  ;;  %v7704_v23 = vld [vmem:[#allocation16_spill] sm:$0xff] }
 0x369   : > { %v2059_v41 = vpop.permute.xlu1 %2058  ;;  %v2074_v59 = vpop.permute.xlu0 %2073 }
 0x36a   : > { %v2188_v1 = vmul.f32 %v2059_v41, %v5658_v5  ;;  %v2191_v0 = vmul.f32 %v2074_v59, %v5666_v39 }
 0x36c   : > { %2259 = vrot.lane.b32.xlu1 %v2188_v1, %s4834_s15  ;;  %2261 = vrot.lane.b32.xlu0 %v2189_v52, %s4834_s15  ;;  %v7705_v1 = vld [vmem:[#allocation50_spill] sm:$0xff] }
 0x36d   : > { %v2069_v63 = vpop.permute.xlu1 %2068  ;;  %v2084_v20 = vpop.permute.xlu0 %2083 }
 0x36e   : > { %v2190_v50 = vmul.f32 %v2069_v63, %v5672_v44  ;;  %v2193_v33 = vmul.f32 %v2084_v20, %v5680_v13  ;;  %v7706_v20 = vld [vmem:[#allocation51_spill] sm:$0xff] }
 0x370   : > { %2263 = vrot.lane.b32.xlu1 %v2190_v50, %s4834_s15  ;;  %2265 = vrot.lane.b32.xlu0 %v2191_v0, %s4834_s15 }
 0x371   : > { %v2079_v38 = vpop.permute.xlu1 %2078  ;;  %v2094_v16 = vpop.permute.xlu0 %2093 }
 0x372   : > { %v2192_v53 = vmul.f32 %v2079_v38, %v5686_v14  ;;  %v2195_v42 = vmul.f32 %v2094_v16, %v7695_v37  ;;  %v7707_v16 = vld [vmem:[#allocation52_spill] sm:$0xff] }
 0x374   : > { %2267 = vrot.lane.b32.xlu1 %v2192_v53, %s4834_s15  ;;  %2269 = vrot.lane.b32.xlu0 %v2193_v33, %s4834_s15  ;;  %v7708_v53 = vld [vmem:[#allocation53_spill] sm:$0xff] }
 0x375   : > { %v2089_v43 = vpop.permute.xlu1 %2088  ;;  %v2104_v8 = vpop.permute.xlu0 %2103 }
 0x376   : > { %v2194_v15 = vmul.f32 %v2089_v43, %v7696_v55  ;;  %v2197_v46 = vmul.f32 %v2104_v8, %v7697_v12 }
 0x378   : > { %2271 = vrot.lane.b32.xlu1 %v2194_v15, %s4834_s15  ;;  %2273 = vrot.lane.b32.xlu0 %v2195_v42, %s4834_s15  ;;  %v7709_v42 = vld [vmem:[#allocation54_spill] sm:$0xff] }
 0x379   : > { %v2099_v32 = vpop.permute.xlu1 %2098  ;;  %v2114_v56 = vpop.permute.xlu0 %2113 }
 0x37a   : > { %v2196_v18 = vmul.f32 %v2099_v32, %v7698_v58  ;;  %v2199_v35 = vmul.f32 %v2114_v56, %v7699_v21  ;;  %v7710_v32 = vld [vmem:[#allocation55_spill] sm:$0xff] }
 0x37c   : > { %2275 = vrot.lane.b32.xlu1 %v2196_v18, %s4834_s15  ;;  %2277 = vrot.lane.b32.xlu0 %v2197_v46, %s4834_s15 }
 0x37d   : > { %v2109_v28 = vpop.permute.xlu1 %2108  ;;  %v2124_v34 = vpop.permute.xlu0 %2123 }
 0x37e   : > { %v2198_v3 = vmul.f32 %v2109_v28, %v7700_v40  ;;  %v2201_v54 = vmul.f32 %v2124_v34, %v7701_v30  ;;  %v7711_v28 = vld [vmem:[#allocation4_spill] sm:$0xff] }
 0x380   : > { %2279 = vrot.lane.b32.xlu1 %v2198_v3, %s4834_s15  ;;  %2281 = vrot.lane.b32.xlu0 %v2199_v35, %s4834_s15  ;;  %v7712_v35 = vld [vmem:[#allocation3_spill] sm:$0xff] }
 0x381   : > { %v2119_v26 = vpop.permute.xlu1 %2118  ;;  %v2134_v2 = vpop.permute.xlu0 %2133 }
 0x382   : > { %v2200_v51 = vmul.f32 %v2119_v26, %v7702_v61  ;;  %v2203_v6 = vmul.f32 %v2134_v2, %v7703_v22  ;;  %v6320_v2 = vld [vmem:[%s7457_s1] sm:$0xff] }
 0x384   : > { %2283 = vrot.lane.b32.xlu1 %v2200_v51, %s4834_s15  ;;  %2285 = vrot.lane.b32.xlu0 %v2201_v54, %s4834_s15  ;;  %v7713_v54 = vld [vmem:[#allocation7_spill] sm:$0xff] }
 0x385   : > { %v2129_v24 = vpop.permute.xlu1 %2128  ;;  %v2144_v29 = vpop.permute.xlu0 %2143 }
 0x386   : > { %v2202_v41 = vmul.f32 %v2129_v24, %v7704_v23  ;;  %v2205_v63 = vmul.f32 %v2144_v29, %v7705_v1  ;;  %v6328_v24 = vld [vmem:[%s7457_s1 + $0x8] sm:$0xff]  ;;  %v6333_v29 = vld [vmem:[%s7457_s1 + $0x18] sm:$0xff] }
 0x388   : > { %2287 = vrot.lane.b32.xlu1 %v2202_v41, %s4834_s15  ;;  %2289 = vrot.lane.b32.xlu0 %v2203_v6, %s4834_s15  ;;  %v6340_v6 = vld [vmem:[%s7457_s1 + $0x10] sm:$0xff]  ;;  %v6345_v41 = vld [vmem:[%s7457_s1 + $0x28] sm:$0xff] }
 0x389   : > { %v2139_v59 = vpop.permute.xlu1 %2138  ;;  %v2154_v52 = vpop.permute.xlu0 %2153 }
 0x38a   : > { %v2204_v0 = vmul.f32 %v2139_v59, %v7706_v20  ;;  %v2207_v33 = vmul.f32 %v2154_v52, %v7707_v16  ;;  %v6352_v59 = vld [vmem:[%s7457_s1 + $0x20] sm:$0xff]  ;;  %v6357_v52 = vld [vmem:[%s7457_s1 + $0x38] sm:$0xff] }
 0x38c   : > { %2291 = vrot.lane.b32.xlu1 %v2204_v0, %s4834_s15  ;;  %2293 = vrot.lane.b32.xlu0 %v2205_v63, %s4834_s15  ;;  %v6364_v63 = vld [vmem:[%s7457_s1 + $0x30] sm:$0xff]  ;;  %v6369_v0 = vld [vmem:[%s7457_s1 + $0x48] sm:$0xff] }
 0x38d   : > { %v2149_v50 = vpop.permute.xlu1 %2148  ;;  %v2164_v38 = vpop.permute.xlu0 %2163 }
 0x38e   : > { %v2206_v43 = vmul.f32 %v2149_v50, %v7708_v53  ;;  %v2209_v15 = vmul.f32 %v2164_v38, %v7709_v42  ;;  %v6376_v50 = vld [vmem:[%s7457_s1 + $0x40] sm:$0xff]  ;;  %v6381_v38 = vld [vmem:[%s7457_s1 + $0x58] sm:$0xff] }
 0x38f   : > { %v6472_v42 = vld [vmem:[%s7457_s1 + $0xc0] sm:$0xff] }
 0x390   : > { %2295 = vrot.lane.b32.xlu1 %v2206_v43, %s4834_s15  ;;  %2297 = vrot.lane.b32.xlu0 %v2207_v33, %s4834_s15  ;;  %v6388_v33 = vld [vmem:[%s7457_s1 + $0x50] sm:$0xff]  ;;  %v6393_v43 = vld [vmem:[%s7457_s1 + $0x68] sm:$0xff] }
 0x391   : > { %v2159_v8 = vpop.permute.xlu1 %2158  ;;  %v2174_v46 = vpop.permute.xlu0 %2173 }
 0x392   : > { %v2208_v56 = vmul.f32 %v2159_v8, %v7710_v32  ;;  %v2211_v34 = vmul.f32 %v2174_v46, %v7711_v28  ;;  %v6400_v8 = vld [vmem:[%s7457_s1 + $0x60] sm:$0xff]  ;;  %v6417_v46 = vld [vmem:[%s7457_s1 + $0x88] sm:$0xff]  ;;  %v6460_v28 = vld [vmem:[%s7457_s1 + $0xb0] sm:$0xff] }
 0x394   : > { %2299 = vrot.lane.b32.xlu1 %v2208_v56, %s4834_s15  ;;  %2301 = vrot.lane.b32.xlu0 %v2209_v15, %s4834_s15  ;;  %v6405_v15 = vld [vmem:[%s7457_s1 + $0x78] sm:$0xff]  ;;  %v6412_v56 = vld [vmem:[%s7457_s1 + $0x70] sm:$0xff] }
 0x395   : > { %v2169_v18 = vpop.permute.xlu1 %2168 }
 0x396   : > { %v2210_v3 = vmul.f32 %v2169_v18, %v7712_v35  ;;  %v6424_v18 = vld [vmem:[%s7457_s1 + $0x80] sm:$0xff] }
 0x398   : > { %2303 = vrot.lane.b32.xlu1 %v2210_v3, %s4834_s15  ;;  %2305 = vrot.lane.b32.xlu0 %v2211_v34, %s4834_s15  ;;  %v6429_v34 = vld [vmem:[%s7457_s1 + $0x98] sm:$0xff]  ;;  %v6436_v3 = vld [vmem:[%s7457_s1 + $0x90] sm:$0xff] }
 0x399   : > { %v2179_v26 = vpop.permute.xlu1 %2178 }
 0x39a   : > { %v2212_v51 = vmul.f32 %v2179_v26, %v7713_v54  ;;  %v6441_v26 = vld [vmem:[%s7457_s1 + $0xa8] sm:$0xff]  ;;  %v6486_v54 = vld [vmem:[%s7457_s1 + $0xd0] sm:$0xff] }
 0x39c   : > { %2307 = vrot.lane.b32.xlu1 %v2212_v51, %s4834_s15  ;;  %2408 = vperm.xlu0 %4716, %v6320_v2   ;;  %v6448_v51 = vld [vmem:[%s7457_s1 + $0xa0] sm:$0xff] }
 0x3a0   : > { %2413 = vperm.xlu1 %4717, %v6328_v24   ;;  %2423 = vperm.xlu0 %4716, %v6333_v29  }
 0x3a4   : > { %2418 = vperm.xlu1 %4717, %v6340_v6   ;;  %2433 = vperm.xlu0 %4716, %v6345_v41  }
 0x3a8   : > { %2428 = vperm.xlu1 %4717, %v6352_v59   ;;  %2443 = vperm.xlu0 %4716, %v6357_v52  }
 0x3ac   : > { %2438 = vperm.xlu1 %4717, %v6364_v63   ;;  %2453 = vperm.xlu0 %4716, %v6369_v0  }
 0x3b0   : > { %2448 = vperm.xlu1 %4717, %v6376_v50   ;;  %2463 = vperm.xlu0 %4716, %v6381_v38  }
 0x3b4   : > { %2458 = vperm.xlu1 %4717, %v6388_v33   ;;  %2473 = vperm.xlu0 %4716, %v6393_v43  }
 0x3b8   : > { %2468 = vperm.xlu1 %4717, %v6400_v8   ;;  %2483 = vperm.xlu0 %4716, %v6405_v15  }
 0x3bc   : > { %2478 = vperm.xlu1 %4717, %v6412_v56   ;;  %2493 = vperm.xlu0 %4716, %v6417_v46  }
 0x3c0   : > { %2488 = vperm.xlu1 %4717, %v6424_v18   ;;  %2503 = vperm.xlu0 %4716, %v6429_v34  }
 0x3c4   : > { %2498 = vperm.xlu1 %4717, %v6436_v3   ;;  %2513 = vperm.xlu0 %4716, %v6441_v26  }
 0x3c8   : > { %2508 = vperm.xlu1 %4717, %v6448_v51   ;;  %2523 = vperm.xlu0 %4716, %v6453_v9  }
 0x3cc   : > { %2518 = vperm.xlu1 %4717, %v6460_v28   ;;  %2533 = vperm.xlu0 %4716, %v6465_v60  }
 0x3ce   : > { %v2246_v47 = vpop.permute.xlu0 %2245  ;;  %v2248_v16 = vpop.permute.xlu1 %2247 }
 0x3cf   : > { %2342 = vst.msk [vmem:[#allocation2] sm:$0xff] %vm2341_vm7, %v2246_v47  ;;  %2343 = vst.msk [vmem:[#allocation2 + $0x8] sm:$0xff] %vm2341_vm7, %v2248_v16  ;;  %v6499_v47 = vld [vmem:[%s7457_s1 + $0xe0] sm:$0xff]  ;;  %v6504_v16 = vld [vmem:[%s7457_s1 + $0xf8] sm:$0xff] }
 0x3d0   : > { %2528 = vperm.xlu1 %4717, %v6472_v42   ;;  %2543 = vperm.xlu0 %4716, %v6477_v11  }
 0x3d2   : > { %v2250_v1 = vpop.permute.xlu0 %2249 }
 0x3d3   : > { %2344 = vst.msk [vmem:[#allocation2 + $0x10] sm:$0xff] %vm2341_vm7, %v2250_v1  ;;  %v6513_v1 = vld [vmem:[%s7457_s1 + $0xf0] sm:$0xff] }
 0x3d4   : > { %2538 = vperm.xlu1 %4717, %v6486_v54   ;;  %2553 = vperm.xlu0 %4716, %v6491_v45  }
 0x3d6   : > { %v2252_v7 = vpop.permute.xlu1 %2251  ;;  %v2254_v35 = vpop.permute.xlu0 %2253 }
 0x3d7   : > { %2345 = vst.msk [vmem:[#allocation2 + $0x18] sm:$0xff] %vm2341_vm7, %v2252_v7  ;;  %2346 = vst.msk [vmem:[#allocation2 + $0x20] sm:$0xff] %vm2341_vm7, %v2254_v35  ;;  %v7580_v7 = vmov 7  }
 0x3d8   : > { %2548 = vperm.xlu1 %4717, %v6499_v47   ;;  %2563 = vperm.xlu0 %4716, %v6504_v16  }
 0x3da   : > { %v2256_v48 = vpop.permute.xlu1 %2255  ;;  %v2258_v22 = vpop.permute.xlu0 %2257 }
 0x3db   : > { %2347 = vst.msk [vmem:[#allocation2 + $0x28] sm:$0xff] %vm2341_vm7, %v2256_v48  ;;  %2348 = vst.msk [vmem:[#allocation2 + $0x30] sm:$0xff] %vm2341_vm7, %v2258_v22 }
 0x3dc   : > { %2558 = vperm.xlu1 %4717, %v6513_v1   ;;  %4718 = vset.pattern.permute.xlu0 %v7580_v7 }
 0x3de   : > { %v2260_v35 = vpop.permute.xlu1 %2259  ;;  %v2262_v31 = vpop.permute.xlu0 %2261 }
 0x3df   : > { %2349 = vst.msk [vmem:[#allocation2 + $0x38] sm:$0xff] %vm2341_vm7, %v2260_v35  ;;  %2350 = vst.msk [vmem:[#allocation2 + $0x40] sm:$0xff] %vm2341_vm7, %v2262_v31 }
 0x3e0   : > { %4719 = vset.pattern.permute.xlu1 %v7580_v7  ;;  %v7714_v7 = vld [vmem:[#allocation23_spill] sm:$0xff] }
 0x3e2   : > { %v2264_v32 = vpop.permute.xlu1 %2263  ;;  %v2266_v30 = vpop.permute.xlu0 %2265 }
 0x3e3   : > { %2351 = vst.msk [vmem:[#allocation2 + $0x48] sm:$0xff] %vm2341_vm7, %v2264_v32  ;;  %2352 = vst.msk [vmem:[#allocation2 + $0x50] sm:$0xff] %vm2341_vm7, %v2266_v30 }
 0x3e6   : > { %v2268_v48 = vpop.permute.xlu1 %2267  ;;  %v2270_v22 = vpop.permute.xlu0 %2269 }
 0x3e7   : > { %2353 = vst.msk [vmem:[#allocation2 + $0x58] sm:$0xff] %vm2341_vm7, %v2268_v48  ;;  %2354 = vst.msk [vmem:[#allocation2 + $0x60] sm:$0xff] %vm2341_vm7, %v2270_v22 }
 0x3ea   : > { %v2272_v62 = vpop.permute.xlu1 %2271  ;;  %v2274_v53 = vpop.permute.xlu0 %2273 }
 0x3eb   : > { %2355 = vst.msk [vmem:[#allocation2 + $0x68] sm:$0xff] %vm2341_vm7, %v2272_v62  ;;  %2356 = vst.msk [vmem:[#allocation2 + $0x70] sm:$0xff] %vm2341_vm7, %v2274_v53 }
 0x3ee   : > { %v2276_v31 = vpop.permute.xlu1 %2275  ;;  %v2278_v35 = vpop.permute.xlu0 %2277 }
 0x3ef   : > { %2357 = vst.msk [vmem:[#allocation2 + $0x78] sm:$0xff] %vm2341_vm7, %v2276_v31  ;;  %2358 = vst.msk [vmem:[#allocation2 + $0x80] sm:$0xff] %vm2341_vm7, %v2278_v35 }
 0x3f2   : > { %v2280_v32 = vpop.permute.xlu1 %2279  ;;  %v2282_v30 = vpop.permute.xlu0 %2281 }
 0x3f3   : > { %2359 = vst.msk [vmem:[#allocation2 + $0x88] sm:$0xff] %vm2341_vm7, %v2280_v32  ;;  %2360 = vst.msk [vmem:[#allocation2 + $0x90] sm:$0xff] %vm2341_vm7, %v2282_v30 }
 0x3f6   : > { %v2284_v48 = vpop.permute.xlu1 %2283  ;;  %v2286_v22 = vpop.permute.xlu0 %2285 }
 0x3f7   : > { %2361 = vst.msk [vmem:[#allocation2 + $0x98] sm:$0xff] %vm2341_vm7, %v2284_v48  ;;  %2362 = vst.msk [vmem:[#allocation2 + $0xa0] sm:$0xff] %vm2341_vm7, %v2286_v22 }
 0x3fa   : > { %v2288_v62 = vpop.permute.xlu1 %2287  ;;  %v2290_v53 = vpop.permute.xlu0 %2289 }
 0x3fb   : > { %2363 = vst.msk [vmem:[#allocation2 + $0xa8] sm:$0xff] %vm2341_vm7, %v2288_v62  ;;  %2364 = vst.msk [vmem:[#allocation2 + $0xb0] sm:$0xff] %vm2341_vm7, %v2290_v53 }
 0x3fe   : > { %v2292_v31 = vpop.permute.xlu1 %2291  ;;  %v2294_v35 = vpop.permute.xlu0 %2293 }
 0x3ff   : > { %2365 = vst.msk [vmem:[#allocation2 + $0xb8] sm:$0xff] %vm2341_vm7, %v2292_v31  ;;  %2366 = vst.msk [vmem:[#allocation2 + $0xc0] sm:$0xff] %vm2341_vm7, %v2294_v35 }
 0x402   : > { %v2296_v32 = vpop.permute.xlu1 %2295  ;;  %v2298_v30 = vpop.permute.xlu0 %2297 }
 0x403   : > { %2367 = vst.msk [vmem:[#allocation2 + $0xc8] sm:$0xff] %vm2341_vm7, %v2296_v32  ;;  %2368 = vst.msk [vmem:[#allocation2 + $0xd0] sm:$0xff] %vm2341_vm7, %v2298_v30 }
 0x406   : > { %v2300_v48 = vpop.permute.xlu1 %2299  ;;  %v2302_v22 = vpop.permute.xlu0 %2301 }
 0x407   : > { %2369 = vst.msk [vmem:[#allocation2 + $0xd8] sm:$0xff] %vm2341_vm7, %v2300_v48  ;;  %2370 = vst.msk [vmem:[#allocation2 + $0xe0] sm:$0xff] %vm2341_vm7, %v2302_v22  ;;  %v7715_v48 = vld [vmem:[#allocation22_spill] sm:$0xff] }
 0x40a   : > { %v2304_v62 = vpop.permute.xlu1 %2303  ;;  %v2306_v53 = vpop.permute.xlu0 %2305 }
 0x40b   : > { %2371 = vst.msk [vmem:[#allocation2 + $0xe8] sm:$0xff] %vm2341_vm7, %v2304_v62  ;;  %2372 = vst.msk [vmem:[#allocation2 + $0xf0] sm:$0xff] %vm2341_vm7, %v2306_v53  ;;  %v7716_v62 = vld [vmem:[#allocation24_spill] sm:$0xff]  ;;  %v7717_v53 = vld [vmem:[#allocation25_spill] sm:$0xff] }
 0x40e   : > { %v2308_v31 = vpop.permute.xlu1 %2307 }
 0x40f   : > { %2373 = vst.msk [vmem:[#allocation2 + $0xf8] sm:$0xff] %vm2341_vm7, %v2308_v31 }
 0x41b   : > { %v2409_v35 = vpop.permute.xlu0 %2408 }
 0x41c   : > { %v2566_v32 = vmul.f32 %v2409_v35, %v7714_v7  ;;  %v7718_v35 = vld [vmem:[#allocation26_spill] sm:$0xff] }
 0x41e   : > { %2630 = vrot.lane.b32.xlu1 %v2566_v32, %s4836_s20 }
 0x41f   : > { %v2414_v30 = vpop.permute.xlu1 %2413  ;;  %v2424_v27 = vpop.permute.xlu0 %2423 }
 0x420   : > { %v2567_v21 = vmul.f32 %v2414_v30, %v7715_v48  ;;  %v2569_v20 = vmul.f32 %v2424_v27, %v7716_v62  ;;  %v7720_v48 = vld [vmem:[#allocation28_spill] sm:$0xff]  ;;  %v7721_v62 = vld [vmem:[#allocation29_spill] sm:$0xff] }
 0x422   : > { %2632 = vrot.lane.b32.xlu0 %v2567_v21, %s4836_s20 }
 0x423   : > { %v2419_v22 = vpop.permute.xlu1 %2418  ;;  %v2434_v49 = vpop.permute.xlu0 %2433 }
 0x424   : > { %v2568_v12 = vmul.f32 %v2419_v22, %v7717_v53  ;;  %v2571_v32 = vmul.f32 %v2434_v49, %v7718_v35  ;;  %v7722_v53 = vld [vmem:[#allocation30_spill] sm:$0xff]  ;;  %v7723_v35 = vld [vmem:[#allocation31_spill] sm:$0xff] }
 0x426   : > { %2634 = vrot.lane.b32.xlu1 %v2568_v12, %s4836_s20  ;;  %2636 = vrot.lane.b32.xlu0 %v2569_v20, %s4836_s20 }
 0x427   : > { %v2429_v7 = vpop.permute.xlu1 %2428  ;;  %v2444_v31 = vpop.permute.xlu0 %2443 }
 0x428   : > { %v2570_v23 = vmul.f32 %v2429_v7, %v7719_v36  ;;  %v2573_v27 = vmul.f32 %v2444_v31, %v7720_v48  ;;  %v7724_v7 = vld [vmem:[#allocation32_spill] sm:$0xff]  ;;  %v7725_v31 = vld [vmem:[#allocation33_spill] sm:$0xff] }
 0x42a   : > { %2638 = vrot.lane.b32.xlu1 %v2570_v23, %s4836_s20  ;;  %2640 = vrot.lane.b32.xlu0 %v2571_v32, %s4836_s20 }
 0x42b   : > { %v2439_v21 = vpop.permute.xlu1 %2438  ;;  %v2454_v30 = vpop.permute.xlu0 %2453 }
 0x42c   : > { %v2572_v22 = vmul.f32 %v2439_v21, %v7721_v62  ;;  %v2575_v49 = vmul.f32 %v2454_v30, %v7722_v53  ;;  %v7726_v62 = vld [vmem:[#allocation34_spill] sm:$0xff]  ;;  %v7727_v30 = vld [vmem:[#allocation35_spill] sm:$0xff] }
 0x42e   : > { %2642 = vrot.lane.b32.xlu1 %v2572_v22, %s4836_s20  ;;  %2644 = vrot.lane.b32.xlu0 %v2573_v27, %s4836_s20 }
 0x42f   : > { %v2449_v12 = vpop.permute.xlu1 %2448  ;;  %v2464_v20 = vpop.permute.xlu0 %2463 }
 0x430   : > { %v2574_v36 = vmul.f32 %v2449_v12, %v7723_v35  ;;  %v2577_v32 = vmul.f32 %v2464_v20, %v7724_v7  ;;  %v4837_v20 = vmov 8  }
 0x432   : > { %2646 = vrot.lane.b32.xlu1 %v2574_v36, %s4836_s20  ;;  %2648 = vrot.lane.b32.xlu0 %v2575_v49, %s4836_s20  ;;  %v7728_v49 = vld [vmem:[#allocation37_spill] sm:$0xff]  ;;  %v7729_v36 = vmov 7  }
 0x433   : > { %v2459_v23 = vpop.permute.xlu1 %2458  ;;  %v2474_v21 = vpop.permute.xlu0 %2473 }
 0x434   : > { %v2576_v48 = vmul.f32 %v2459_v23, %v7725_v31  ;;  %v2579_v22 = vmul.f32 %v2474_v21, %v7726_v62 }
 0x436   : > { %2650 = vrot.lane.b32.xlu1 %v2576_v48, %s4836_s20  ;;  %2652 = vrot.lane.b32.xlu0 %v2577_v32, %s4836_s20 }
 0x437   : > { %v2469_v27 = vpop.permute.xlu1 %2468 }
 0x438   : > { %v2578_v53 = vmul.f32 %v2469_v27, %v7727_v30 }
 0x43a   : > { %2654 = vrot.lane.b32.xlu1 %v2578_v53, %s4836_s20  ;;  %2656 = vrot.lane.b32.xlu0 %v2579_v22, %s4836_s20 }
 0x43b   : > { %v2479_v12 = vpop.permute.xlu1 %2478 }
 0x43c   : > { %v2580_v35 = vmul.f32 %v2479_v12, %v7728_v49 }
 0x43e   : > { %2658 = vrot.lane.b32.xlu1 %v2580_v35, %s4836_s20  ;;  %2793 = vperm.xlu0 %4718, %v6320_v2  }
 0x43f   : > { %v6599_v23 = vpop.permute.xlu1 %2488 }
 0x442   : > { %2798 = vperm.xlu1 %4719, %v6328_v24   ;;  %2813 = vperm.xlu0 %4718, %v6352_v59  }
 0x443   : > { %v6607_v7 = vpop.permute.xlu1 %2498 }
 0x446   : > { %4720 = vset.pattern.permute.xlu1 %v4837_v20  ;;  %2833 = vperm.xlu0 %4718, %v6376_v50  }
 0x447   : > { %3178 = vperm.xlu1 %4720, %v6320_v2   ;;  %v6597_v2 = vpop.permute.xlu0 %2483 }
 0x44a   : > { %2853 = vperm.xlu0 %4718, %v6400_v8  }
 0x44b   : > { %4721 = vset.pattern.permute.xlu1 %v7729_v36 }
 0x44c   : > { %2803 = vperm.xlu1 %4721, %v6340_v6  }
 0x44e   : > { %2873 = vperm.xlu0 %4718, %v6424_v18  }
 0x450   : > { %2808 = vperm.xlu1 %4721, %v6333_v29  }
 0x452   : > { %2893 = vperm.xlu0 %4718, %v6448_v51  }
 0x454   : > { %4722 = vset.pattern.permute.xlu1 %v4837_v20 }
 0x455   : > { %3193 = vperm.xlu1 %4722, %v6333_v29   ;;  %v6604_v29 = vpop.permute.xlu0 %2493 }
 0x456   : > { %2913 = vperm.xlu0 %4718, %v6472_v42  }
 0x459   : > { %4723 = vset.pattern.permute.xlu1 %v7729_v36 }
 0x45a   : > { %2818 = vperm.xlu1 %4723, %v6345_v41   ;;  %2933 = vperm.xlu0 %4718, %v6499_v47  }
 0x45e   : > { %4724 = vset.pattern.permute.xlu1 %v4837_v20  ;;  %4747 = vset.pattern.permute.xlu0 %v4837_v20 }
 0x45f   : > { %3198 = vperm.xlu1 %4724, %v6352_v59   ;;  %3183 = vperm.xlu0 %4747, %v6328_v24   ;;  %v6611_v24 = vpop.permute.xlu0 %2503  ;;  %v6615_v59 = vpop.permute.xlu1 %2508 }
 0x463   : > { %4725 = vset.pattern.permute.xlu1 %v7729_v36  ;;  %3188 = vperm.xlu0 %4747, %v6340_v6   ;;  %v6619_v6 = vpop.permute.xlu0 %2513 }
 0x464   : > { %2823 = vperm.xlu1 %4725, %v6364_v63  }
 0x467   : > { %3203 = vperm.xlu0 %4747, %v6345_v41   ;;  %v6623_v41 = vpop.permute.xlu1 %2518 }
 0x468   : > { %2828 = vperm.xlu1 %4725, %v6357_v52  }
 0x46b   : > { %3208 = vperm.xlu0 %4747, %v6364_v63   ;;  %v6630_v63 = vpop.permute.xlu1 %2528 }
 0x46c   : > { %4726 = vset.pattern.permute.xlu1 %v4837_v20 }
 0x46d   : > { %3213 = vperm.xlu1 %4726, %v6357_v52   ;;  %v6628_v52 = vpop.permute.xlu0 %2523 }
 0x46f   : > { %3223 = vperm.xlu0 %4747, %v6369_v0   ;;  %v6638_v32 = vpop.permute.xlu1 %2538 }
 0x471   : > { %4727 = vset.pattern.permute.xlu1 %v7729_v36 }
 0x472   : > { %2838 = vperm.xlu1 %4727, %v6369_v0   ;;  %v6635_v0 = vpop.permute.xlu0 %2533 }
 0x473   : > { %3228 = vperm.xlu0 %4747, %v6388_v33   ;;  %v6646_v31 = vpop.permute.xlu1 %2548 }
 0x476   : > { %4728 = vset.pattern.permute.xlu1 %v4837_v20 }
 0x477   : > { %3218 = vperm.xlu1 %4728, %v6376_v50   ;;  %3243 = vperm.xlu0 %4747, %v6393_v43   ;;  %v6642_v50 = vpop.permute.xlu0 %2543  ;;  %v6654_v48 = vpop.permute.xlu1 %2558 }
 0x47b   : > { %4729 = vset.pattern.permute.xlu1 %v7729_v36  ;;  %3248 = vperm.xlu0 %4747, %v6412_v56  }
 0x47c   : > { %2843 = vperm.xlu1 %4729, %v6388_v33   ;;  %v6650_v33 = vpop.permute.xlu0 %2553 }
 0x47f   : > { %3263 = vperm.xlu0 %4747, %v6417_v46  }
 0x480   : > { %2848 = vperm.xlu1 %4729, %v6381_v38  }
 0x483   : > { %3268 = vperm.xlu0 %4747, %v6436_v3  }
 0x484   : > { %4730 = vset.pattern.permute.xlu1 %v4837_v20 }
 0x485   : > { %3233 = vperm.xlu1 %4730, %v6381_v38   ;;  %v6659_v38 = vpop.permute.xlu0 %2563 }
 0x487   : > { %3283 = vperm.xlu0 %4747, %v6441_v26  }
 0x489   : > { %4731 = vset.pattern.permute.xlu1 %v7729_v36 }
 0x48a   : > { %2858 = vperm.xlu1 %4731, %v6393_v43  }
 0x48b   : > { %3288 = vperm.xlu0 %4747, %v6460_v28  }
 0x48e   : > { %4732 = vset.pattern.permute.xlu1 %v4837_v20 }
 0x48f   : > { %3238 = vperm.xlu1 %4732, %v6400_v8   ;;  %3303 = vperm.xlu0 %4747, %v6465_v60  }
 0x490   : > { %v2631_v21 = vpop.permute.xlu1 %2630 }
 0x491   : > { %2727 = vst.msk [vmem:[#allocation2] sm:$0xff] %vm2726_vm8, %v2631_v21  ;;  %v6697_v21 = vld [vmem:[%s4925_s14 + $0x10] sm:$0xff] }
 0x493   : > { %4733 = vset.pattern.permute.xlu1 %v7729_v36  ;;  %3308 = vperm.xlu0 %4747, %v6486_v54  }
 0x494   : > { %2863 = vperm.xlu1 %4733, %v6412_v56   ;;  %v2633_v43 = vpop.permute.xlu0 %2632 }
 0x495   : > { %2728 = vst.msk [vmem:[#allocation2 + $0x8] sm:$0xff] %vm2726_vm8, %v2633_v43 }
 0x497   : > { %3323 = vperm.xlu0 %4747, %v6491_v45  }
 0x498   : > { %2868 = vperm.xlu1 %4733, %v6405_v15   ;;  %v2635_v8 = vpop.permute.xlu1 %2634  ;;  %v2637_v27 = vpop.permute.xlu0 %2636 }
 0x499   : > { %2729 = vst.msk [vmem:[#allocation2 + $0x10] sm:$0xff] %vm2726_vm8, %v2635_v8  ;;  %2730 = vst.msk [vmem:[#allocation2 + $0x18] sm:$0xff] %vm2726_vm8, %v2637_v27 }
 0x49b   : > { %3328 = vperm.xlu0 %4747, %v6513_v1  }
 0x49c   : > { %4734 = vset.pattern.permute.xlu1 %v4837_v20  ;;  %v2639_v62 = vpop.permute.xlu1 %2638  ;;  %v2641_v22 = vpop.permute.xlu0 %2640 }
 0x49d   : > { %2731 = vst.msk [vmem:[#allocation2 + $0x20] sm:$0xff] %vm2726_vm8, %v2639_v62  ;;  %2732 = vst.msk [vmem:[#allocation2 + $0x28] sm:$0xff] %vm2726_vm8, %v2641_v22  ;;  %3253 = vperm.xlu1 %4734, %v6405_v15  }
 0x4a0   : > { %v2643_v56 = vpop.permute.xlu1 %2642  ;;  %v2645_v30 = vpop.permute.xlu0 %2644 }
 0x4a1   : > { %2733 = vst.msk [vmem:[#allocation2 + $0x30] sm:$0xff] %vm2726_vm8, %v2643_v56  ;;  %2734 = vst.msk [vmem:[#allocation2 + $0x38] sm:$0xff] %vm2726_vm8, %v2645_v30  ;;  %4735 = vset.pattern.permute.xlu1 %v7729_v36  ;;  %v6712_v56 = vld [vmem:[%s4925_s14 + $0x20] sm:$0xff] }
 0x4a2   : > { %2878 = vperm.xlu1 %4735, %v6417_v46  }
 0x4a4   : > { %v2647_v53 = vpop.permute.xlu1 %2646  ;;  %v2649_v12 = vpop.permute.xlu0 %2648 }
 0x4a5   : > { %2735 = vst.msk [vmem:[#allocation2 + $0x40] sm:$0xff] %vm2726_vm8, %v2647_v53  ;;  %2736 = vst.msk [vmem:[#allocation2 + $0x48] sm:$0xff] %vm2726_vm8, %v2649_v12 }
 0x4a6   : > { %4736 = vset.pattern.permute.xlu1 %v4837_v20 }
 0x4a7   : > { %3258 = vperm.xlu1 %4736, %v6424_v18  }
 0x4a8   : > { %v2651_v15 = vpop.permute.xlu1 %2650  ;;  %v2653_v49 = vpop.permute.xlu0 %2652 }
 0x4a9   : > { %2737 = vst.msk [vmem:[#allocation2 + $0x50] sm:$0xff] %vm2726_vm8, %v2651_v15  ;;  %2738 = vst.msk [vmem:[#allocation2 + $0x58] sm:$0xff] %vm2726_vm8, %v2653_v49 }
 0x4ab   : > { %4737 = vset.pattern.permute.xlu1 %v7729_v36 }
 0x4ac   : > { %2883 = vperm.xlu1 %4737, %v6436_v3   ;;  %v2655_v46 = vpop.permute.xlu1 %2654  ;;  %v2657_v35 = vpop.permute.xlu0 %2656 }
 0x4ad   : > { %2739 = vst.msk [vmem:[#allocation2 + $0x60] sm:$0xff] %vm2726_vm8, %v2655_v46  ;;  %2740 = vst.msk [vmem:[#allocation2 + $0x68] sm:$0xff] %vm2726_vm8, %v2657_v35 }
 0x4b0   : > { %2888 = vperm.xlu1 %4737, %v6429_v34   ;;  %v2659_v18 = vpop.permute.xlu1 %2658 }
 0x4b1   : > { %2741 = vst.msk [vmem:[#allocation2 + $0x70] sm:$0xff] %vm2726_vm8, %v2659_v18 }
 0x4b4   : > { %4738 = vset.pattern.permute.xlu1 %v4837_v20 }
 0x4b5   : > { %3273 = vperm.xlu1 %4738, %v6429_v34  }
 0x4b9   : > { %4739 = vset.pattern.permute.xlu1 %v7729_v36 }
 0x4ba   : > { %2898 = vperm.xlu1 %4739, %v6441_v26  }
 0x4bd   : > { %v2794_v3 = vpop.permute.xlu0 %2793 }
 0x4be   : > { %4740 = vset.pattern.permute.xlu1 %v4837_v20  ;;  %v2951_v43 = vmul.f32 %v6697_v21, %v2794_v3 }
 0x4bf   : > { %3278 = vperm.xlu1 %4740, %v6448_v51  }
 0x4c0   : > { %3015 = vrot.lane.b32.xlu0 %v2951_v43, %s4838_s23 }
 0x4c1   : > { %v6702_v8 = vpop.permute.xlu1 %2798  ;;  %v2814_v34 = vpop.permute.xlu0 %2813 }
 0x4c3   : > { %4741 = vset.pattern.permute.xlu1 %v7729_v36 }
 0x4c4   : > { %2903 = vperm.xlu1 %4741, %v6460_v28  }
 0x4c5   : > { %v2834_v26 = vpop.permute.xlu0 %2833 }
 0x4c6   : > { %v3179_v27 = vpop.permute.xlu1 %3178 }
 0x4c7   : > { %v3336_v62 = vmul.f32 %v3179_v27, %v5611_v10 }
 0x4c8   : > { %2908 = vperm.xlu1 %4741, %v6453_v9  }
 0x4c9   : > { %3400 = vrot.lane.b32.xlu0 %v3336_v62, %s4839_s24  ;;  %v6709_v51 = vpop.permute.xlu0 %2853 }
 0x4cb   : > { %v2804_v22 = vpop.permute.xlu1 %2803 }
 0x4cc   : > { %v2953_v30 = vmul.f32 %v6712_v56, %v2804_v22  ;;  %4742 = vset.pattern.permute.xlu1 %v4837_v20 }
 0x4cd   : > { %3293 = vperm.xlu1 %4742, %v6453_v9   ;;  %v6717_v28 = vpop.permute.xlu0 %2873 }
 0x4ce   : > { %3019 = vrot.lane.b32.xlu0 %v2953_v30, %s4838_s23 }
 0x4cf   : > { %v6720_v10 = vpop.permute.xlu1 %2808 }
 0x4d1   : > { %4743 = vset.pattern.permute.xlu1 %v7729_v36  ;;  %v6723_v53 = vpop.permute.xlu0 %2893 }
 0x4d2   : > { %2918 = vperm.xlu1 %4743, %v6465_v60  }
 0x4d4   : > { %v6726_v12 = vpop.permute.xlu1 %3193 }
 0x4d5   : > { %v6728_v15 = vpop.permute.xlu0 %2913 }
 0x4d6   : > { %4744 = vset.pattern.permute.xlu1 %v4837_v20 }
 0x4d7   : > { %3298 = vperm.xlu1 %4744, %v6472_v42   ;;  %v6742_v42 = vld [vmem:[%s4925_s14 + $0x30] sm:$0xff] }
 0x4d8   : > { %v2955_v43 = vmul.f32 %v6742_v42, %v2814_v34  ;;  %v6762_v34 = vld [vmem:[%s4925_s14 + $0x40] sm:$0xff] }
 0x4d9   : > { %v6732_v9 = vpop.permute.xlu1 %2818  ;;  %v6734_v49 = vpop.permute.xlu0 %2933 }
 0x4db   : > { %4745 = vset.pattern.permute.xlu1 %v7729_v36 }
 0x4dc   : > { %2923 = vperm.xlu1 %4745, %v6486_v54  }
 0x4de   : > { %v3199_v46 = vpop.permute.xlu1 %3198  ;;  %v3184_v35 = vpop.permute.xlu0 %3183 }
 0x4df   : > { %v3340_v62 = vmul.f32 %v3199_v46, %v5638_v57 }
 0x4e0   : > { %2928 = vperm.xlu1 %4745, %v6477_v11  }
 0x4e2   : > { %v3189_v60 = vpop.permute.xlu0 %3188 }
 0x4e3   : > { %v3338_v18 = vmul.f32 %v3189_v60, %v5624_v17  ;;  %v2824_v3 = vpop.permute.xlu1 %2823 }
 0x4e4   : > { %4746 = vset.pattern.permute.xlu1 %v4837_v20  ;;  %v2957_v30 = vmul.f32 %v6762_v34, %v2824_v3 }
 0x4e5   : > { %3313 = vperm.xlu1 %4746, %v6477_v11   ;;  %3404 = vrot.lane.b32.xlu0 %v3338_v18, %s4839_s24  ;;  %v6774_v18 = vld [vmem:[%s4925_s14 + $0x50] sm:$0xff] }
 0x4e6   : > { %v6747_v54 = vpop.permute.xlu0 %3203 }
 0x4e7   : > { %v6749_v27 = vpop.permute.xlu1 %2828 }
 0x4e9   : > { %4748 = vset.pattern.permute.xlu1 %v7729_v36  ;;  %3023 = vrot.lane.b32.xlu0 %v2955_v43, %s4838_s23 }
 0x4ea   : > { %2938 = vperm.xlu1 %4748, %v6491_v45   ;;  %v3209_v17 = vpop.permute.xlu0 %3208 }
 0x4eb   : > { %v3342_v45 = vmul.f32 %v3209_v17, %v5652_v4  ;;  %v6790_v17 = vld [vmem:[%s4925_s14 + $0x60] sm:$0xff] }
 0x4ec   : > { %v6755_v22 = vpop.permute.xlu1 %3213 }
 0x4ed   : > { %3408 = vrot.lane.b32.xlu0 %v3340_v62, %s4839_s24 }
 0x4ee   : > { %4749 = vset.pattern.permute.xlu1 %v4837_v20  ;;  %v6759_v11 = vpop.permute.xlu0 %3223 }
 0x4ef   : > { %3318 = vperm.xlu1 %4749, %v6499_v47   ;;  %v2959_v47 = vmul.f32 %v6774_v18, %v2834_v26 }
 0x4f1   : > { %v6767_v60 = vpop.permute.xlu1 %2838  ;;  %3027 = vrot.lane.b32.xlu0 %v2957_v30, %s4838_s23 }
 0x4f2   : > { %v3229_v57 = vpop.permute.xlu0 %3228 }
 0x4f3   : > { %4750 = vset.pattern.permute.xlu1 %v7729_v36  ;;  %v4789_v36 = vld [vmem:[%s4925_s14 + $0x18] sm:$0xff] }
 0x4f4   : > { %2943 = vperm.xlu1 %4750, %v6513_v1   ;;  %v2952_v26 = vmul.f32 %v4789_v36, %v6702_v8  ;;  %v3346_v8 = vmul.f32 %v3229_v57, %v5680_v13 }
 0x4f5   : > { %3412 = vrot.lane.b32.xlu0 %v3342_v45, %s4839_s24 }
 0x4f6   : > { %v3219_v46 = vpop.permute.xlu1 %3218  ;;  %v6777_v3 = vpop.permute.xlu0 %3243 }
 0x4f7   : > { %v3344_v4 = vmul.f32 %v3219_v46, %v5666_v39  ;;  %v3561_v39 = vld [vmem:[%s7458_s2] sm:$0xff] }
 0x4f8   : > { %2948 = vperm.xlu1 %4750, %v6504_v16  }
 0x4f9   : > { %3031 = vrot.lane.b32.xlu0 %v2959_v47, %s4838_s23 }
 0x4fa   : > { %v6785_v1 = vpop.permute.xlu0 %3248 }
 0x4fb   : > { %v2844_v43 = vpop.permute.xlu1 %2843 }
 0x4fc   : > { %4751 = vset.pattern.permute.xlu1 %v4837_v20  ;;  %v2961_v62 = vmul.f32 %v6790_v17, %v2844_v43  ;;  %v3337_v20 = vmul.f32 %v3184_v35, %v5630_v19  ;;  %v3564_v19 = vld [vmem:[%s7458_s2 + $0x18] sm:$0xff]  ;;  %v6818_v35 = vld [vmem:[%s4925_s14 + $0x70] sm:$0xff]  ;;  %v4792_v43 = vld [vmem:[%s4925_s14 + $0x28] sm:$0xff] }
 0x4fd   : > { %3333 = vperm.xlu1 %4751, %v6504_v16   ;;  %3416 = vrot.lane.b32.xlu0 %v3344_v4, %s4839_s24  ;;  %v3562_v16 = vld [vmem:[%s7458_s2 + $0x8] sm:$0xff]  ;;  %v3563_v4 = vld [vmem:[%s7458_s2 + $0x10] sm:$0xff]  ;;  %v2963_v57 = vmul.f32 %v6818_v35, %v6709_v51  ;;  %v3339_v51 = vmul.f32 %v6726_v12, %v5644_v25 }
 0x4fe   : > { %v4674_v45 = vpack.c.bf16 %v3562_v16, %v3561_v39  ;;  %v6805_v46 = vpop.permute.xlu0 %3263  ;;  %v4678_v13 = vpack.c.bf16 %v3564_v19, %v3563_v4  ;;  %v3565_v39 = vld [vmem:[%s7458_s2 + $0x20] sm:$0xf]  ;;  %v7730_v25 = vld [vmem:[#allocation36_spill] sm:$0xff] }
 0x4ff   : > { %v6793_v30 = vpop.permute.xlu1 %2848  ;;  %v3963_v19 = vld [vmem:[%s7460_s4] sm:$0xf]  ;;  %v2581_v12 = vmul.f32 %v6597_v2, %v7730_v25  ;;  %v4795_v2 = vld [vmem:[%s4925_s14 + $0x48] sm:$0xff] }
 0x500   : > { %4675 = vmatprep.subr.bf16.mxu0 %v4674_v45  ;;  %4624 = vmatprep.subr.msk.mxu1 %vm3670_vm9, %v3963_v19 }
 0x501   : > { %3017 = vrot.lane.b32.xlu1 %v2952_v26, %s4838_s23  ;;  %3035 = vrot.lane.b32.xlu0 %v2961_v62, %s4838_s23  ;;  %v2954_v26 = vmul.f32 %v4792_v43, %v6720_v10 }
 0x502   : > { %4677 = vmatpush3.bf16.msra.mxu0 %v4674_v45  ;;  %v6831_v16 = vpop.permute.xlu0 %3268  ;;  %4625 = vmatpush3.msk.msra.mxu1 %vm3670_vm9, %v3963_v19 }
 0x503   : > { %4679 = vmatprep.subr.bf16.mxu0 %v4678_v13 }
 0x504   : > { %v6807_v47 = vpop.permute.xlu1 %3233 }
 0x505   : > { %3402 = vrot.lane.b32.xlu1 %v3337_v20, %s4839_s24  ;;  %3420 = vrot.lane.b32.xlu0 %v3346_v8, %s4839_s24  ;;  %v4793_v20 = vld [vmem:[%s4925_s14 + $0x38] sm:$0xff] }
 0x506   : > { %4681 = vmatpush3.bf16.msra.mxu0 %v4678_v13  ;;  %v2956_v8 = vmul.f32 %v4793_v20, %v6732_v9  ;;  %v6841_v4 = vpop.permute.xlu0 %3283  ;;  %v6857_v13 = vld [vmem:[%s4925_s14 + $0x8] sm:$0xff] }
 0x507   : > { %4574 = vmatprep.subr.msk.mxu0 %vm3670_vm9, %v3565_v39  ;;  %4627 = vmatmul.mubr.msk.f32.vlgmr.msra.gmra.mrb[0].mxu1 %vm575_vm0, %v6857_v13 }
 0x508   : > { %4629 = vmatprep.mubr.msk.f32.mxu1 %vm575_vm0, %v6697_v21 }
 0x509   : > { %v6824_v62 = vpop.permute.xlu1 %2858  ;;  %3021 = vrot.lane.b32.xlu1 %v2954_v26, %s4838_s23  ;;  %3039 = vrot.lane.b32.xlu0 %v2963_v57, %s4838_s23  ;;  %v4796_v26 = vld [vmem:[%s4925_s14 + $0x88] sm:$0xff] }
 0x50a   : > { %4575 = vmatpush3.msk.msra.mxu0 %vm3670_vm9, %v3565_v39  ;;  %v6863_v57 = vpop.permute.xlu0 %3288 }
 0x50b   : > { %4630 = vmatmul.mubr.msk.f32.gmra.mrb[2].mxu1 %vm575_vm0, %v4789_v36  ;;  %v4797_v36 = vld [vmem:[%s4925_s14 + $0x58] sm:$0xff] }
 0x50c   : > { %4632 = vmatprep.mubr.msk.f32.mxu1 %vm575_vm0, %v6712_v56  ;;  %v2960_v56 = vmul.f32 %v4797_v36, %v6767_v60  ;;  %v4798_v60 = vld [vmem:[%s4925_s14 + $0x98] sm:$0xff] }
 0x50d   : > { %3406 = vrot.lane.b32.xlu1 %v3339_v51, %s4839_s24  ;;  %v3343_v51 = vmul.f32 %v6755_v22, %v5672_v44  ;;  %v7731_v44 = vld [vmem:[#allocation38_spill] sm:$0xff] }
 0x50e   : > { %v3239_v10 = vpop.permute.xlu1 %3238  ;;  %v6877_v21 = vpop.permute.xlu0 %3303  ;;  %v2583_v22 = vmul.f32 %v6604_v29, %v7731_v44  ;;  %v7736_v44 = vld [vmem:[#allocation39_spill] sm:$0xff] }
 0x50f   : > { %v3348_v45 = vmul.f32 %v3239_v10, %v7695_v37  ;;  %v3341_v37 = vmul.f32 %v6747_v54, %v5658_v5  ;;  %v2958_v5 = vmul.f32 %v4795_v2, %v6749_v27  ;;  %4633 = vmatmul.mubr.msk.f32.gmra.mrb[4].mxu1 %vm575_vm0, %v4792_v43 }
 0x510   : > { %4635 = vmatprep.mubr.msk.f32.mxu1 %vm575_vm0, %v6742_v42  ;;  %v3345_v42 = vmul.f32 %v6759_v11, %v5686_v14  ;;  %v3353_v11 = vmul.f32 %v6805_v46, %v7702_v61 }
 0x511   : > { %3025 = vrot.lane.b32.xlu1 %v2956_v8, %s4838_s23  ;;  %3424 = vrot.lane.b32.xlu0 %v3348_v45, %s4839_s24  ;;  %v4799_v8 = vld [vmem:[%s4925_s14 + $0x68] sm:$0xff] }
 0x513   : > { %v6853_v9 = vpop.permute.xlu1 %2863  ;;  %4636 = vmatmul.mubr.msk.f32.gmra.mrb[6].mxu1 %vm575_vm0, %v4793_v20 }
 0x514   : > { %4638 = vmatprep.mubr.msk.f32.mxu1 %vm575_vm0, %v6762_v34  ;;  %v2962_v34 = vmul.f32 %v4799_v8, %v6793_v30  ;;  %v7732_v30 = vld [vmem:[#allocation40_spill] sm:$0xff] }
 0x515   : > { %3410 = vrot.lane.b32.xlu1 %v3341_v37, %s4839_s24  ;;  %2660 = vrot.lane.b32.xlu0 %v2581_v12, %s4836_s20  ;;  %v2585_v19 = vmul.f32 %v6611_v24, %v7732_v30  ;;  %v4802_v24 = vld [vmem:[%s4925_s14 + $0x80] sm:$0xff]  ;;  %v3349_v12 = vmul.f32 %v6777_v3, %v7698_v58  ;;  %v7733_v37 = vld [vmem:[#allocation16_spill] sm:$0xff]  ;;  %v7734_v58 = vld [vmem:[#allocation42_spill] sm:$0xff] }
 0x516   : > { %v2587_v3 = vmul.f32 %v6619_v6, %v7734_v58 }
 0x517   : > { %v2869_v54 = vpop.permute.xlu1 %2868  ;;  %4639 = vmatmul.mubr.msk.f32.gmra.mrb[8].mxu1 %vm575_vm0, %v4795_v2 }
 0x518   : > { %v2966_v39 = vmul.f32 %v4796_v26, %v2869_v54  ;;  %4641 = vmatprep.mubr.msk.f32.mxu1 %vm575_vm0, %v6774_v18  ;;  %v3347_v18 = vmul.f32 %v6807_v47, %v7696_v55  ;;  %v4801_v47 = vld [vmem:[%s4925_s14 + $0xa8] sm:$0xff]  ;;  %v2965_v54 = vmul.f32 %v4802_v24, %v6853_v9 }
 0x519   : > { %3029 = vrot.lane.b32.xlu1 %v2958_v5, %s4838_s23  ;;  %v4803_v5 = vld [vmem:[%s4925_s14 + $0x90] sm:$0xff] }
 0x51a   : > { %3045 = vrot.lane.b32.xlu0 %v2966_v39, %s4838_s23 }
 0x51b   : > { %4642 = vmatmul.mubr.msk.f32.gmra.mrb[10].mxu1 %vm575_vm0, %v4797_v36  ;;  %v4806_v36 = vld [vmem:[%s4925_s14 + $0xb0] sm:$0xff] }
 0x51c   : > { %v3254_v10 = vpop.permute.xlu1 %3253  ;;  %4644 = vmatprep.mubr.msk.f32.mxu1 %vm575_vm0, %v6790_v17  ;;  %v4800_v17 = vld [vmem:[%s4925_s14 + $0x78] sm:$0xff] }
 0x51d   : > { %v3351_v27 = vmul.f32 %v3254_v10, %v7700_v40  ;;  %3414 = vrot.lane.b32.xlu1 %v3343_v51, %s4839_s24  ;;  %v6893_v40 = vpop.permute.xlu0 %3308  ;;  %v2964_v55 = vmul.f32 %v4800_v17, %v6824_v62  ;;  %v7735_v51 = vld [vmem:[#allocation13_spill] sm:$0xff] }
 0x51e   : > { %v3350_v10 = vmul.f32 %v6785_v1, %v7735_v51  ;;  %v2582_v1 = vmul.f32 %v6599_v23, %v7736_v44  ;;  %v2967_v23 = vmul.f32 %v4803_v5, %v6717_v28  ;;  %v7739_v28 = vld [vmem:[#allocation15_spill] sm:$0xff]  ;;  %v7747_v44 = vld [vmem:[#allocation14_spill] sm:$0xff] }
 0x51f   : > { %3430 = vrot.lane.b32.xlu0 %v3351_v27, %s4839_s24  ;;  %4645 = vmatmul.mubr.msk.f32.gmra.mrb[12].mxu1 %vm575_vm0, %v4799_v8  ;;  %v4805_v27 = vld [vmem:[%s4925_s14 + $0xb8] sm:$0xff] }
 0x520   : > { %4647 = vmatprep.mubr.msk.f32.mxu1 %vm575_vm0, %v6818_v35 }
 0x521   : > { %v2879_v43 = vpop.permute.xlu1 %2878  ;;  %3033 = vrot.lane.b32.xlu1 %v2960_v56, %s4838_s23  ;;  %v6908_v14 = vpop.permute.xlu0 %3323 }
 0x522   : > { %v2968_v20 = vmul.f32 %v4798_v60, %v2879_v43  ;;  %v7737_v43 = vld [vmem:[#allocation51_spill] sm:$0xff] }
 0x523   : > { %2664 = vrot.lane.b32.xlu0 %v2583_v22, %s4836_s20  ;;  %4648 = vmatmul.mubr.msk.f32.gmra.mrb[14].mxu1 %vm575_vm0, %v4800_v17 }
 0x524   : > { %4650 = vmatprep.mubr.msk.f32.mxu1 %vm575_vm0, %v4802_v24  ;;  %v7741_v24 = vld [vmem:[#allocation53_spill] sm:$0xff] }
 0x525   : > { %3418 = vrot.lane.b32.xlu1 %v3345_v42, %s4839_s24  ;;  %v6927_v61 = vpop.permute.xlu0 %3328  ;;  %v3357_v42 = vmul.f32 %v6841_v4, %v7737_v43  ;;  %v4808_v4 = vld [vmem:[%s4925_s14 + $0xc8] sm:$0xff] }
 0x526   : > { %v6903_v29 = vpop.permute.xlu1 %3258 }
 0x527   : > { %3049 = vrot.lane.b32.xlu0 %v2968_v20, %s4838_s23  ;;  %4651 = vmatmul.mubr.msk.f32.gmra.mrb[16].mxu1 %vm575_vm0, %v4796_v26  ;;  %v4804_v26 = vld [vmem:[%s4925_s14 + $0xa0] sm:$0xff]  ;;  %v3352_v30 = vmul.f32 %v6903_v29, %v7739_v28  ;;  %v7751_v28 = vld [vmem:[#allocation50_spill] sm:$0xff] }
 0x528   : > { %4653 = vmatprep.mubr.msk.f32.mxu1 %vm575_vm0, %v4803_v5 }
 0x529   : > { %3037 = vrot.lane.b32.xlu1 %v2962_v34, %s4838_s23  ;;  %v7738_v34 = vld [vmem:[#allocation44_spill] sm:$0xff] }
 0x52b   : > { %v6918_v45 = vpop.permute.xlu1 %2883  ;;  %3434 = vrot.lane.b32.xlu0 %v3353_v11, %s4839_s24  ;;  %4654 = vmatmul.mubr.msk.f32.gmra.mrb[18].mxu1 %vm575_vm0, %v4798_v60  ;;  %v6974_v60 = vld [vmem:[%s4925_s14 + $0xc0] sm:$0xff]  ;;  %v2589_v11 = vmul.f32 %v6628_v52, %v7738_v34  ;;  %v7750_v34 = vld [vmem:[#allocation21_spill] sm:$0xff] }
 0x52c   : > { %4656 = vmatprep.mubr.msk.f32.mxu1 %vm575_vm0, %v4804_v26  ;;  %v7000_v52 = vld [vmem:[%s4925_s14 + $0xe0] sm:$0xff] }
 0x52d   : > { %3422 = vrot.lane.b32.xlu1 %v3347_v18, %s4839_s24  ;;  %v6989_v18 = vld [vmem:[%s4925_s14 + $0xd0] sm:$0xff] }
 0x52f   : > { %v2889_v46 = vpop.permute.xlu1 %2888  ;;  %2668 = vrot.lane.b32.xlu0 %v2585_v19, %s4836_s20  ;;  %4657 = vmatmul.mubr.msk.f32.gmra.mrb[20].mxu1 %vm575_vm0, %v4801_v47 }
 0x530   : > { %v2970_v25 = vmul.f32 %v4801_v47, %v2889_v46  ;;  %4659 = vmatprep.mubr.msk.f32.mxu1 %vm575_vm0, %v4806_v36  ;;  %v7740_v46 = vld [vmem:[#allocation41_spill] sm:$0xff] }
 0x531   : > { %3041 = vrot.lane.b32.xlu1 %v2964_v55, %s4838_s23  ;;  %v4810_v55 = vld [vmem:[%s4925_s14 + $0xd8] sm:$0xff]  ;;  %v2584_v47 = vmul.f32 %v6607_v7, %v7740_v46  ;;  %v7753_v46 = vld [vmem:[#allocation7_spill] sm:$0xff] }
 0x532   : > { %v3016_v35 = vpop.permute.xlu0 %3015  ;;  %v4814_v7 = vld [vmem:[%s4925_s14 + $0xf8] sm:$0xff] }
 0x533   : > { %3053 = vrot.lane.b32.xlu0 %v2970_v25, %s4838_s23  ;;  %3112 = vst.msk [vmem:[#allocation2] sm:$0xff] %vm3111_vm10, %v3016_v35  ;;  %4660 = vmatmul.mubr.msk.f32.gmra.mrb[22].mxu1 %vm575_vm0, %v4805_v27  ;;  %v4812_v25 = vld [vmem:[%s4925_s14 + $0xe8] sm:$0xff] }
 0x534   : > { %v3274_v62 = vpop.permute.xlu1 %3273  ;;  %4662 = vmatprep.mubr.msk.f32.mxu1 %vm575_vm0, %v6974_v60 }
 0x535   : > { %v3355_v2 = vmul.f32 %v3274_v62, %v7733_v37  ;;  %3426 = vrot.lane.b32.xlu1 %v3349_v12, %s4839_s24  ;;  %v7012_v12 = vld [vmem:[%s4925_s14 + $0xf0] sm:$0xff]  ;;  %v2969_v62 = vmul.f32 %v4804_v26, %v6918_v45  ;;  %v7742_v37 = vld [vmem:[#allocation46_spill] sm:$0xff] }
 0x537   : > { %3438 = vrot.lane.b32.xlu0 %v3355_v2, %s4839_s24  ;;  %4663 = vmatmul.mubr.msk.f32.gmra.mrb[24].mxu1 %vm575_vm0, %v4808_v4  ;;  %v2591_v2 = vmul.f32 %v6635_v0, %v7742_v37  ;;  %v7745_v0 = vld [vmem:[#allocation55_spill] sm:$0xff] }
 0x538   : > { %4665 = vmatprep.mubr.msk.f32.mxu1 %vm575_vm0, %v6989_v18 }
 0x539   : > { %v2899_v39 = vpop.permute.xlu1 %2898  ;;  %3043 = vrot.lane.b32.xlu1 %v2965_v54, %s4838_s23  ;;  %v7743_v54 = vld [vmem:[#allocation17_spill] sm:$0xff] }
 0x53a   : > { %v2972_v6 = vmul.f32 %v4805_v27, %v2899_v39  ;;  %v3354_v58 = vmul.f32 %v6831_v16, %v7743_v54  ;;  %v7744_v39 = vld [vmem:[#allocation43_spill] sm:$0xff]  ;;  %v2971_v16 = vmul.f32 %v4806_v36, %v6723_v53  ;;  %v7748_v53 = vld [vmem:[#allocation45_spill] sm:$0xff] }
 0x53b   : > { %2672 = vrot.lane.b32.xlu0 %v2587_v3, %s4836_s20  ;;  %v3401_v9 = vpop.permute.xlu0 %3400  ;;  %4666 = vmatmul.mubr.msk.f32.gmra.mrb[26].mxu1 %vm575_vm0, %v4810_v55  ;;  %v2586_v26 = vmul.f32 %v6615_v59, %v7744_v39  ;;  %v2588_v36 = vmul.f32 %v6623_v41, %v7748_v53  ;;  %v2595_v41 = vmul.f32 %v6650_v33, %v7750_v34  ;;  %v4815_v53 = vld [vmem:[%s4925_s14] sm:$0xff] }
 0x53c   : > { %3497 = vst.msk [vmem:[#allocation2] sm:$0xff] %vm3496_vm11, %v3401_v9  ;;  %4668 = vmatprep.mubr.msk.f32.mxu1 %vm575_vm0, %v7000_v52 }
 0x53d   : > { %3428 = vrot.lane.b32.xlu1 %v3350_v10, %s4839_s24  ;;  %v3361_v10 = vmul.f32 %v6877_v21, %v7745_v0 }
 0x53e   : > { %v6963_v56 = vpop.permute.xlu1 %3278 }
 0x53f   : > { %3057 = vrot.lane.b32.xlu0 %v2972_v6, %s4838_s23  ;;  %4669 = vmatmul.mubr.msk.f32.gmra.mrb[28].mxu1 %vm575_vm0, %v4812_v25  ;;  %v7746_v6 = vld [vmem:[#allocation48_spill] sm:$0xff] }
 0x540   : > { %v3020_v22 = vpop.permute.xlu0 %3019  ;;  %4671 = vmatprep.mubr.msk.f32.mxu1 %vm575_vm0, %v7012_v12  ;;  %v2593_v59 = vmul.f32 %v6642_v50, %v7746_v6 }
 0x541   : > { %3114 = vst.msk [vmem:[#allocation2 + $0x10] sm:$0xff] %vm3111_vm10, %v3020_v22  ;;  %2662 = vrot.lane.b32.xlu1 %v2582_v1, %s4836_s20  ;;  %v3356_v1 = vmul.f32 %v6963_v56, %v7747_v44 }
 0x543   : > { %v6979_v20 = vpop.permute.xlu1 %2903  ;;  %3442 = vrot.lane.b32.xlu0 %v3357_v42, %s4839_s24  ;;  %v3529_v8 = vld [vmem:[#allocation2] sm:$0xff]  ;;  %4672 = vmatmul.mubr.msk.f32.gmra.mrb[30].mxu1 %vm575_vm0, %v4814_v7 }
 0x544   : > { %4576 = vmatprep.mubr.msk.f32.mxu0 %vm3573_vm12, %v3529_v8  ;;  %v2973_v8 = vmul.f32 %v6974_v60, %v6979_v20 }
 0x545   : > { %3047 = vrot.lane.b32.xlu1 %v2967_v23, %s4838_s23  ;;  %v7749_v23 = vld [vmem:[#allocation3_spill] sm:$0xff] }
 0x547   : > { %v2909_v19 = vpop.permute.xlu1 %2908  ;;  %2676 = vrot.lane.b32.xlu0 %v2589_v11, %s4836_s20 }
 0x548   : > { %v2974_v17 = vmul.f32 %v4808_v4, %v2909_v19 }
 0x549   : > { %3432 = vrot.lane.b32.xlu1 %v3352_v30, %s4839_s24  ;;  %v3358_v30 = vmul.f32 %v6863_v57, %v7751_v28  ;;  %v3365_v57 = vmul.f32 %v6908_v14, %v7753_v46 }
 0x54b   : > { %3061 = vrot.lane.b32.xlu0 %v2974_v17, %s4838_s23  ;;  %v7752_v17 = vld [vmem:[#allocation47_spill] sm:$0xff] }
 0x54c   : > { %v3294_v29 = vpop.permute.xlu1 %3293 }
 0x54d   : > { %v3359_v35 = vmul.f32 %v3294_v29, %v7741_v24  ;;  %2666 = vrot.lane.b32.xlu1 %v2584_v47, %s4836_s20  ;;  %v2975_v47 = vmul.f32 %v6989_v18, %v6728_v15  ;;  %v7756_v18 = vld [vmem:[#allocation49_spill] sm:$0xff] }
 0x54e   : > { %v2592_v37 = vmul.f32 %v6638_v32, %v7756_v18  ;;  %v7758_v32 = vld [vmem:[#allocation54_spill] sm:$0xff] }
 0x54f   : > { %3446 = vrot.lane.b32.xlu0 %v3359_v35, %s4839_s24  ;;  %v7755_v35 = vld [vmem:[#allocation52_spill] sm:$0xff] }
 0x551   : > { %v2919_v5 = vpop.permute.xlu1 %2918  ;;  %3051 = vrot.lane.b32.xlu1 %v2969_v62, %s4838_s23 }
 0x552   : > { %v2976_v3 = vmul.f32 %v4810_v55, %v2919_v5  ;;  %v2590_v55 = vmul.f32 %v6630_v63, %v7752_v17  ;;  %v7754_v63 = vld [vmem:[#allocation20_spill] sm:$0xff]  ;;  %v7757_v5 = vld [vmem:[#allocation5_spill] sm:$0xff] }
 0x553   : > { %2680 = vrot.lane.b32.xlu0 %v2591_v2, %s4836_s20  ;;  %v2597_v24 = vmul.f32 %v6659_v38, %v7754_v63 }
 0x555   : > { %3436 = vrot.lane.b32.xlu1 %v3354_v58, %s4839_s24 }
 0x556   : > { %v3299_v45 = vpop.permute.xlu1 %3298 }
 0x557   : > { %3065 = vrot.lane.b32.xlu0 %v2976_v3, %s4838_s23  ;;  %v3405_v51 = vpop.permute.xlu0 %3404  ;;  %v3360_v62 = vmul.f32 %v3299_v45, %v7755_v35  ;;  %v3362_v3 = vmul.f32 %v6893_v40, %v7758_v32  ;;  %v2979_v40 = vmul.f32 %v7012_v12, %v6734_v49  ;;  %v7761_v12 = vld [vmem:[#allocation18_spill] sm:$0xff] }
 0x558   : > { %3499 = vst.msk [vmem:[#allocation2 + $0x10] sm:$0xff] %vm3496_vm11, %v3405_v51  ;;  %v2596_v44 = vmul.f32 %v6654_v48, %v7761_v12 }
 0x559   : > { %2670 = vrot.lane.b32.xlu1 %v2586_v26, %s4836_s20  ;;  %v7759_v26 = vld [vmem:[#allocation19_spill] sm:$0xff] }
 0x55b   : > { %v2924_v9 = vpop.permute.xlu1 %2923  ;;  %3450 = vrot.lane.b32.xlu0 %v3361_v10, %s4839_s24  ;;  %v3024_v27 = vpop.permute.xlu0 %3023 }
 0x55c   : > { %3116 = vst.msk [vmem:[#allocation2 + $0x20] sm:$0xff] %vm3111_vm10, %v3024_v27  ;;  %v2977_v58 = vmul.f32 %v7000_v52, %v2924_v9  ;;  %v2594_v52 = vmul.f32 %v6646_v31, %v7759_v26  ;;  %v7760_v31 = vld [vmem:[#allocation4_spill] sm:$0xff] }
 0x55d   : > { %3055 = vrot.lane.b32.xlu1 %v2971_v16, %s4838_s23 }
 0x55f   : > { %v2929_v22 = vpop.permute.xlu1 %2928  ;;  %2684 = vrot.lane.b32.xlu0 %v2593_v59, %s4836_s20  ;;  %v3409_v21 = vpop.permute.xlu0 %3408  ;;  %v3531_v10 = vld [vmem:[#allocation2 + $0x10] sm:$0xff] }
 0x560   : > { %v2978_v43 = vmul.f32 %v4812_v25, %v2929_v22  ;;  %3501 = vst.msk [vmem:[#allocation2 + $0x20] sm:$0xff] %vm3496_vm11, %v3409_v21 }
 0x561   : > { %3440 = vrot.lane.b32.xlu1 %v3356_v1, %s4839_s24 }
 0x563   : > { %3069 = vrot.lane.b32.xlu0 %v2978_v43, %s4838_s23  ;;  %v3028_v50 = vpop.permute.xlu0 %3027 }
 0x564   : > { %3118 = vst.msk [vmem:[#allocation2 + $0x30] sm:$0xff] %vm3111_vm10, %v3028_v50  ;;  %v3314_v42 = vpop.permute.xlu1 %3313 }
 0x565   : > { %v3363_v56 = vmul.f32 %v3314_v42, %v7749_v23  ;;  %2674 = vrot.lane.b32.xlu1 %v2588_v36, %s4836_s20  ;;  %v7762_v42 = vld [vmem:[#allocation9_spill] sm:$0xff] }
 0x566   : > { %v3366_v23 = vmul.f32 %v6927_v61, %v7762_v42 }
 0x567   : > { %3454 = vrot.lane.b32.xlu0 %v3363_v56, %s4839_s24  ;;  %v3413_v4 = vpop.permute.xlu0 %3412  ;;  %v3533_v43 = vld [vmem:[#allocation2 + $0x20] sm:$0xff] }
 0x568   : > { %3503 = vst.msk [vmem:[#allocation2 + $0x30] sm:$0xff] %vm3496_vm11, %v3413_v4 }
 0x569   : > { %v2939_v11 = vpop.permute.xlu1 %2938  ;;  %3059 = vrot.lane.b32.xlu1 %v2973_v8, %s4838_s23 }
 0x56a   : > { %v2980_v60 = vmul.f32 %v4814_v7, %v2939_v11 }
 0x56b   : > { %2688 = vrot.lane.b32.xlu0 %v2595_v41, %s4836_s20  ;;  %v3032_v19 = vpop.permute.xlu0 %3031 }
 0x56c   : > { %3120 = vst.msk [vmem:[#allocation2 + $0x40] sm:$0xff] %vm3111_vm10, %v3032_v19 }
 0x56d   : > { %3444 = vrot.lane.b32.xlu1 %v3358_v30, %s4839_s24 }
 0x56e   : > { %v3319_v20 = vpop.permute.xlu1 %3318 }
 0x56f   : > { %3073 = vrot.lane.b32.xlu0 %v2980_v60, %s4838_s23  ;;  %v3417_v33 = vpop.permute.xlu0 %3416  ;;  %v3364_v6 = vmul.f32 %v3319_v20, %v7760_v31  ;;  %v3535_v34 = vld [vmem:[#allocation2 + $0x30] sm:$0xff] }
 0x570   : > { %3505 = vst.msk [vmem:[#allocation2 + $0x40] sm:$0xff] %vm3496_vm11, %v3417_v33 }
 0x571   : > { %2678 = vrot.lane.b32.xlu1 %v2590_v55, %s4836_s20 }
 0x573   : > { %v7072_v29 = vpop.permute.xlu1 %2943  ;;  %3458 = vrot.lane.b32.xlu0 %v3365_v57, %s4839_s24  ;;  %v3036_v25 = vpop.permute.xlu0 %3035 }
 0x574   : > { %3122 = vst.msk [vmem:[#allocation2 + $0x50] sm:$0xff] %vm3111_vm10, %v3036_v25  ;;  %v2981_v36 = vmul.f32 %v4815_v53, %v7072_v29 }
 0x575   : > { %3063 = vrot.lane.b32.xlu1 %v2975_v47, %s4838_s23 }
 0x577   : > { %v2949_v14 = vpop.permute.xlu1 %2948  ;;  %2692 = vrot.lane.b32.xlu0 %v2597_v24, %s4836_s20  ;;  %v3421_v7 = vpop.permute.xlu0 %3420  ;;  %v3537_v19 = vld [vmem:[#allocation2 + $0x40] sm:$0xff] }
 0x578   : > { %v2982_v15 = vmul.f32 %v6857_v13, %v2949_v14  ;;  %3507 = vst.msk [vmem:[#allocation2 + $0x50] sm:$0xff] %vm3496_vm11, %v3421_v7 }
 0x579   : > { %3448 = vrot.lane.b32.xlu1 %v3360_v62, %s4839_s24 }
 0x57b   : > { %3077 = vrot.lane.b32.xlu0 %v2982_v15, %s4838_s23  ;;  %v3040_v38 = vpop.permute.xlu0 %3039 }
 0x57c   : > { %3124 = vst.msk [vmem:[#allocation2 + $0x60] sm:$0xff] %vm3111_vm10, %v3040_v38  ;;  %v3334_v2 = vpop.permute.xlu1 %3333 }
 0x57d   : > { %v3367_v54 = vmul.f32 %v3334_v2, %v7757_v5  ;;  %2682 = vrot.lane.b32.xlu1 %v2592_v37, %s4836_s20 }
 0x57f   : > { %3462 = vrot.lane.b32.xlu0 %v3367_v54, %s4839_s24  ;;  %v3539_v46 = vld [vmem:[#allocation2 + $0x50] sm:$0xff] }
 0x580   : > { %v3018_v13 = vpop.permute.xlu1 %3017 }
 0x581   : > { %3113 = vst.msk [vmem:[#allocation2 + $0x8] sm:$0xff] %vm3111_vm10, %v3018_v13  ;;  %3067 = vrot.lane.b32.xlu1 %v2977_v58, %s4838_s23 }
 0x583   : > { %v3425_v45 = vpop.permute.xlu0 %3424 }
 0x584   : > { %3509 = vst.msk [vmem:[#allocation2 + $0x60] sm:$0xff] %vm3496_vm11, %v3425_v45  ;;  %v3403_v39 = vpop.permute.xlu1 %3402 }
 0x585   : > { %3498 = vst.msk [vmem:[#allocation2 + $0x8] sm:$0xff] %vm3496_vm11, %v3403_v39  ;;  %3452 = vrot.lane.b32.xlu1 %v3362_v3, %s4839_s24 }
 0x587   : > { %v2661_v51 = vpop.permute.xlu0 %2660 }
 0x588   : > { %2742 = vst.msk [vmem:[#allocation2 + $0x78] sm:$0xff] %vm2726_vm8, %v2661_v51  ;;  %v3022_v0 = vpop.permute.xlu1 %3021 }
 0x589   : > { %3115 = vst.msk [vmem:[#allocation2 + $0x18] sm:$0xff] %vm3111_vm10, %v3022_v0  ;;  %2686 = vrot.lane.b32.xlu1 %v2594_v52, %s4836_s20 }
 0x58b   : > { %v3541_v24 = vld [vmem:[#allocation2 + $0x60] sm:$0xff] }
 0x58c   : > { %v3407_v16 = vpop.permute.xlu1 %3406  ;;  %v3046_v9 = vpop.permute.xlu0 %3045  ;;  %v3530_v27 = vld [vmem:[#allocation2 + $0x8] sm:$0xff] }
 0x58d   : > { %3500 = vst.msk [vmem:[#allocation2 + $0x18] sm:$0xff] %vm3496_vm11, %v3407_v16  ;;  %3071 = vrot.lane.b32.xlu1 %v2979_v40, %s4838_s23  ;;  %4577 = vmatmul.mubr.msk.f32.vlgmr.msra.gmra.mrb[0].mxu0 %vm3573_vm12, %v3530_v27 }
 0x58e   : > { %3127 = vst.msk [vmem:[#allocation2 + $0x78] sm:$0xff] %vm3111_vm10, %v3046_v9  ;;  %4579 = vmatprep.mubr.msk.f32.mxu0 %vm3573_vm12, %v3531_v10 }
 0x590   : > { %v3026_v59 = vpop.permute.xlu1 %3025 }
 0x591   : > { %3117 = vst.msk [vmem:[#allocation2 + $0x28] sm:$0xff] %vm3111_vm10, %v3026_v59  ;;  %3456 = vrot.lane.b32.xlu1 %v3364_v6, %s4839_s24  ;;  %v3431_v49 = vpop.permute.xlu0 %3430 }
 0x592   : > { %3512 = vst.msk [vmem:[#allocation2 + $0x78] sm:$0xff] %vm3496_vm11, %v3431_v49 }
 0x594   : > { %v3411_v1 = vpop.permute.xlu1 %3410  ;;  %v3532_v22 = vld [vmem:[#allocation2 + $0x18] sm:$0xff] }
 0x595   : > { %3502 = vst.msk [vmem:[#allocation2 + $0x28] sm:$0xff] %vm3496_vm11, %v3411_v1  ;;  %2690 = vrot.lane.b32.xlu1 %v2596_v44, %s4836_s20  ;;  %v2665_v21 = vpop.permute.xlu0 %2664  ;;  %4580 = vmatmul.mubr.msk.f32.gmra.mrb[2].mxu0 %vm3573_vm12, %v3532_v22  ;;  %s7284_s20 = scalar_lea.vmem %s7462_s6, %s4494_s7 }
 0x596   : > { %2744 = vst.msk [vmem:[#allocation2 + $0x88] sm:$0xff] %vm2726_vm8, %v2665_v21  ;;  %4582 = vmatprep.mubr.msk.f32.mxu0 %vm3573_vm12, %v3533_v43 }
 0x598   : > { %v3030_v50 = vpop.permute.xlu1 %3029 }
 0x599   : > { %3119 = vst.msk [vmem:[#allocation2 + $0x38] sm:$0xff] %vm3111_vm10, %v3030_v50  ;;  %3075 = vrot.lane.b32.xlu1 %v2981_v36, %s4838_s23  ;;  %v3050_v48 = vpop.permute.xlu0 %3049  ;;  %v3544_v54 = vld [vmem:[#allocation2 + $0x78] sm:$0xff] }
 0x59a   : > { %3129 = vst.msk [vmem:[#allocation2 + $0x88] sm:$0xff] %vm3111_vm10, %v3050_v48 }
 0x59c   : > { %v3415_v56 = vpop.permute.xlu1 %3414  ;;  %v3534_v8 = vld [vmem:[#allocation2 + $0x28] sm:$0xff] }
 0x59d   : > { %3504 = vst.msk [vmem:[#allocation2 + $0x38] sm:$0xff] %vm3496_vm11, %v3415_v56  ;;  %3460 = vrot.lane.b32.xlu1 %v3366_v23, %s4839_s24  ;;  %v3435_v4 = vpop.permute.xlu0 %3434  ;;  %4583 = vmatmul.mubr.msk.f32.gmra.mrb[4].mxu0 %vm3573_vm12, %v3534_v8 }
 0x59e   : > { %3514 = vst.msk [vmem:[#allocation2 + $0x88] sm:$0xff] %vm3496_vm11, %v3435_v4  ;;  %4585 = vmatprep.mubr.msk.f32.mxu0 %vm3573_vm12, %v3535_v34 }
 0x5a0   : > { %v3034_v41 = vpop.permute.xlu1 %3033 }
 0x5a1   : > { %3121 = vst.msk [vmem:[#allocation2 + $0x48] sm:$0xff] %vm3111_vm10, %v3034_v41  ;;  %v2669_v11 = vpop.permute.xlu0 %2668 }
 0x5a2   : > { %2746 = vst.msk [vmem:[#allocation2 + $0x98] sm:$0xff] %vm2726_vm8, %v2669_v11 }
 0x5a4   : > { %v3419_v61 = vpop.permute.xlu1 %3418  ;;  %v3536_v28 = vld [vmem:[#allocation2 + $0x38] sm:$0xff] }
 0x5a5   : > { %3506 = vst.msk [vmem:[#allocation2 + $0x48] sm:$0xff] %vm3496_vm11, %v3419_v61  ;;  %v3054_v30 = vpop.permute.xlu0 %3053  ;;  %4586 = vmatmul.mubr.msk.f32.gmra.mrb[6].mxu0 %vm3573_vm12, %v3536_v28  ;;  %v3546_v52 = vld [vmem:[#allocation2 + $0x88] sm:$0xff] }
 0x5a6   : > { %3131 = vst.msk [vmem:[#allocation2 + $0x98] sm:$0xff] %vm3111_vm10, %v3054_v30  ;;  %4588 = vmatprep.mubr.msk.f32.mxu0 %vm3573_vm12, %v3537_v19 }
 0x5a8   : > { %v3038_v60 = vpop.permute.xlu1 %3037 }
 0x5a9   : > { %3123 = vst.msk [vmem:[#allocation2 + $0x58] sm:$0xff] %vm3111_vm10, %v3038_v60  ;;  %v3439_v20 = vpop.permute.xlu0 %3438 }
 0x5aa   : > { %3516 = vst.msk [vmem:[#allocation2 + $0x98] sm:$0xff] %vm3496_vm11, %v3439_v20 }
 0x5ac   : > { %v3423_v17 = vpop.permute.xlu1 %3422  ;;  %v3538_v55 = vld [vmem:[#allocation2 + $0x48] sm:$0xff] }
 0x5ad   : > { %3508 = vst.msk [vmem:[#allocation2 + $0x58] sm:$0xff] %vm3496_vm11, %v3423_v17  ;;  %v2673_v33 = vpop.permute.xlu0 %2672  ;;  %4589 = vmatmul.mubr.msk.f32.gmra.mrb[8].mxu0 %vm3573_vm12, %v3538_v55 }
 0x5ae   : > { %2748 = vst.msk [vmem:[#allocation2 + $0xa8] sm:$0xff] %vm2726_vm8, %v2673_v33  ;;  %4591 = vmatprep.mubr.msk.f32.mxu0 %vm3573_vm12, %v3539_v46 }
 0x5b0   : > { %v3042_v57 = vpop.permute.xlu1 %3041 }
 0x5b1   : > { %3125 = vst.msk [vmem:[#allocation2 + $0x68] sm:$0xff] %vm3111_vm10, %v3042_v57  ;;  %v3058_v47 = vpop.permute.xlu0 %3057  ;;  %v3548_v31 = vld [vmem:[#allocation2 + $0x98] sm:$0xff] }
 0x5b2   : > { %3133 = vst.msk [vmem:[#allocation2 + $0xa8] sm:$0xff] %vm3111_vm10, %v3058_v47 }
 0x5b4   : > { %v3427_v29 = vpop.permute.xlu1 %3426  ;;  %v3540_v25 = vld [vmem:[#allocation2 + $0x58] sm:$0xff] }
 0x5b5   : > { %3510 = vst.msk [vmem:[#allocation2 + $0x68] sm:$0xff] %vm3496_vm11, %v3427_v29  ;;  %v3443_v63 = vpop.permute.xlu0 %3442  ;;  %4592 = vmatmul.mubr.msk.f32.gmra.mrb[10].mxu0 %vm3573_vm12, %v3540_v25 }
 0x5b6   : > { %3518 = vst.msk [vmem:[#allocation2 + $0xa8] sm:$0xff] %vm3496_vm11, %v3443_v63  ;;  %4594 = vmatprep.mubr.msk.f32.mxu0 %vm3573_vm12, %v3541_v24 }
 0x5b8   : > { %v3044_v35 = vpop.permute.xlu1 %3043 }
 0x5b9   : > { %3126 = vst.msk [vmem:[#allocation2 + $0x70] sm:$0xff] %vm3111_vm10, %v3044_v35  ;;  %v2677_v62 = vpop.permute.xlu0 %2676 }
 0x5ba   : > { %2750 = vst.msk [vmem:[#allocation2 + $0xb8] sm:$0xff] %vm2726_vm8, %v2677_v62 }
 0x5bc   : > { %v3429_v14 = vpop.permute.xlu1 %3428  ;;  %v3542_v7 = vld [vmem:[#allocation2 + $0x68] sm:$0xff] }
 0x5bd   : > { %3511 = vst.msk [vmem:[#allocation2 + $0x70] sm:$0xff] %vm3496_vm11, %v3429_v14  ;;  %v3062_v15 = vpop.permute.xlu0 %3061  ;;  %4595 = vmatmul.mubr.msk.f32.gmra.mrb[12].mxu0 %vm3573_vm12, %v3542_v7  ;;  %v3550_v53 = vld [vmem:[#allocation2 + $0xa8] sm:$0xff] }
 0x5be   : > { %3135 = vst.msk [vmem:[#allocation2 + $0xb8] sm:$0xff] %vm3111_vm10, %v3062_v15 }
 0x5c0   : > { %v2663_v18 = vpop.permute.xlu1 %2662 }
 0x5c1   : > { %2743 = vst.msk [vmem:[#allocation2 + $0x80] sm:$0xff] %vm2726_vm8, %v2663_v18  ;;  %v3447_v37 = vpop.permute.xlu0 %3446 }
 0x5c2   : > { %3520 = vst.msk [vmem:[#allocation2 + $0xb8] sm:$0xff] %vm3496_vm11, %v3447_v37 }
 0x5c4   : > { %v3048_v38 = vpop.permute.xlu1 %3047  ;;  %v3543_v2 = vld [vmem:[#allocation2 + $0x70] sm:$0xff] }
 0x5c5   : > { %3128 = vst.msk [vmem:[#allocation2 + $0x80] sm:$0xff] %vm3111_vm10, %v3048_v38  ;;  %v2681_v5 = vpop.permute.xlu0 %2680  ;;  %4597 = vmatprep.mubr.msk.f32.mxu0 %vm3573_vm12, %v3543_v2 }
 0x5c6   : > { %2752 = vst.msk [vmem:[#allocation2 + $0xc8] sm:$0xff] %vm2726_vm8, %v2681_v5  ;;  %4598 = vmatmul.mubr.msk.f32.gmra.mrb[14].mxu0 %vm3573_vm12, %v3544_v54 }
 0x5c8   : > { %v3433_v58 = vpop.permute.xlu1 %3432 }
 0x5c9   : > { %3513 = vst.msk [vmem:[#allocation2 + $0x80] sm:$0xff] %vm3496_vm11, %v3433_v58  ;;  %v3066_v13 = vpop.permute.xlu0 %3065  ;;  %v3552_v34 = vld [vmem:[#allocation2 + $0xb8] sm:$0xff] }
 0x5ca   : > { %3137 = vst.msk [vmem:[#allocation2 + $0xc8] sm:$0xff] %vm3111_vm10, %v3066_v13 }
 0x5cc   : > { %v2667_v32 = vpop.permute.xlu1 %2666 }
 0x5cd   : > { %2745 = vst.msk [vmem:[#allocation2 + $0x90] sm:$0xff] %vm2726_vm8, %v2667_v32  ;;  %v3451_v3 = vpop.permute.xlu0 %3450 }
 0x5ce   : > { %3522 = vst.msk [vmem:[#allocation2 + $0xc8] sm:$0xff] %vm3496_vm11, %v3451_v3 }
 0x5d0   : > { %v3052_v45 = vpop.permute.xlu1 %3051  ;;  %v3545_v39 = vld [vmem:[#allocation2 + $0x80] sm:$0xff] }
 0x5d1   : > { %3130 = vst.msk [vmem:[#allocation2 + $0x90] sm:$0xff] %vm3111_vm10, %v3052_v45  ;;  %v2685_v26 = vpop.permute.xlu0 %2684  ;;  %4600 = vmatprep.mubr.msk.f32.mxu0 %vm3573_vm12, %v3545_v39 }
 0x5d2   : > { %2754 = vst.msk [vmem:[#allocation2 + $0xd8] sm:$0xff] %vm2726_vm8, %v2685_v26  ;;  %4601 = vmatmul.mubr.msk.f32.gmra.mrb[16].mxu0 %vm3573_vm12, %v3546_v52 }
 0x5d4   : > { %v3437_v51 = vpop.permute.xlu1 %3436 }
 0x5d5   : > { %3515 = vst.msk [vmem:[#allocation2 + $0x90] sm:$0xff] %vm3496_vm11, %v3437_v51  ;;  %v3070_v0 = vpop.permute.xlu0 %3069  ;;  %v3554_v17 = vld [vmem:[#allocation2 + $0xc8] sm:$0xff] }
 0x5d6   : > { %3139 = vst.msk [vmem:[#allocation2 + $0xd8] sm:$0xff] %vm3111_vm10, %v3070_v0 }
 0x5d8   : > { %v2671_v40 = vpop.permute.xlu1 %2670 }
 0x5d9   : > { %2747 = vst.msk [vmem:[#allocation2 + $0xa0] sm:$0xff] %vm2726_vm8, %v2671_v40  ;;  %v3455_v10 = vpop.permute.xlu0 %3454 }
 0x5da   : > { %3524 = vst.msk [vmem:[#allocation2 + $0xd8] sm:$0xff] %vm3496_vm11, %v3455_v10  ;;  %v7183_v44 = vpop.f32.mrb[0].mxu1  ;;  %v7267_v10 = vld [vmem:[%s7459_s3] ss:$0 sm:$0xff] }
 0x5db   : > { %v7185_v21 = vpop.f32.mrb[1].mxu1 }
 0x5dc   : > { %v3056_v16 = vpop.permute.xlu1 %3055  ;;  %v3547_v9 = vld [vmem:[#allocation2 + $0x90] sm:$0xff] }
 0x5dd   : > { %3132 = vst.msk [vmem:[#allocation2 + $0xa0] sm:$0xff] %vm3111_vm10, %v3056_v16  ;;  %v2689_v27 = vpop.permute.xlu0 %2688  ;;  %4603 = vmatprep.mubr.msk.f32.mxu0 %vm3573_vm12, %v3547_v9 }
 0x5de   : > { %2756 = vst.msk [vmem:[#allocation2 + $0xe8] sm:$0xff] %vm2726_vm8, %v2689_v27  ;;  %4604 = vmatmul.mubr.msk.f32.gmra.mrb[18].mxu0 %vm3573_vm12, %v3548_v31  ;;  %v7192_v48 = vpop.f32.mrb[2].mxu1 }
 0x5df   : > { %v7195_v42 = vpop.f32.mrb[3].mxu1 }
 0x5e0   : > { %v3441_v6 = vpop.permute.xlu1 %3440 }
 0x5e1   : > { %3517 = vst.msk [vmem:[#allocation2 + $0xa0] sm:$0xff] %vm3496_vm11, %v3441_v6  ;;  %v3074_v59 = vpop.permute.xlu0 %3073  ;;  %v3556_v25 = vld [vmem:[#allocation2 + $0xd8] sm:$0xff] }
 0x5e2   : > { %3141 = vst.msk [vmem:[#allocation2 + $0xe8] sm:$0xff] %vm3111_vm10, %v3074_v59  ;;  %v7201_v41 = vpop.f32.mrb[4].mxu1 }
 0x5e3   : > { %v7204_v11 = vpop.f32.mrb[5].mxu1 }
 0x5e4   : > { %v2675_v49 = vpop.permute.xlu1 %2674 }
 0x5e5   : > { %2749 = vst.msk [vmem:[#allocation2 + $0xb0] sm:$0xff] %vm2726_vm8, %v2675_v49  ;;  %v3459_v12 = vpop.permute.xlu0 %3458 }
 0x5e6   : > { %3526 = vst.msk [vmem:[#allocation2 + $0xe8] sm:$0xff] %vm3496_vm11, %v3459_v12  ;;  %v7208_v30 = vpop.f32.mrb[6].mxu1  ;;  %v7274_v12 = vld [vmem:[%s7461_s5] ss:$0 sm:$0xff] }
 0x5e7   : > { %v7210_v19 = vpop.f32.mrb[7].mxu1 }
 0x5e8   : > { %v3060_v1 = vpop.permute.xlu1 %3059  ;;  %v3549_v22 = vld [vmem:[#allocation2 + $0xa0] sm:$0xff] }
 0x5e9   : > { %3134 = vst.msk [vmem:[#allocation2 + $0xb0] sm:$0xff] %vm3111_vm10, %v3060_v1  ;;  %v2693_v43 = vpop.permute.xlu0 %2692  ;;  %4606 = vmatprep.mubr.msk.f32.mxu0 %vm3573_vm12, %v3549_v22 }
 0x5ea   : > { %2758 = vst.msk [vmem:[#allocation2 + $0xf8] sm:$0xff] %vm2726_vm8, %v2693_v43  ;;  %4607 = vmatmul.mubr.msk.f32.gmra.mrb[20].mxu0 %vm3573_vm12, %v3550_v53  ;;  %v7216_v33 = vpop.f32.mrb[8].mxu1 }
 0x5eb   : > { %v7218_v46 = vpop.f32.mrb[9].mxu1 }
 0x5ec   : > { %v3445_v36 = vpop.permute.xlu1 %3444 }
 0x5ed   : > { %3519 = vst.msk [vmem:[#allocation2 + $0xb0] sm:$0xff] %vm3496_vm11, %v3445_v36  ;;  %v3078_v50 = vpop.permute.xlu0 %3077  ;;  %v3558_v37 = vld [vmem:[#allocation2 + $0xe8] sm:$0xff] }
 0x5ee   : > { %3143 = vst.msk [vmem:[#allocation2 + $0xf8] sm:$0xff] %vm3111_vm10, %v3078_v50  ;;  %v7223_v63 = vpop.f32.mrb[10].mxu1 }
 0x5ef   : > { %v7226_v24 = vpop.f32.mrb[11].mxu1 }
 0x5f0   : > { %v2679_v23 = vpop.permute.xlu1 %2678 }
 0x5f1   : > { %2751 = vst.msk [vmem:[#allocation2 + $0xc0] sm:$0xff] %vm2726_vm8, %v2679_v23  ;;  %v3463_v56 = vpop.permute.xlu0 %3462 }
 0x5f2   : > { %3528 = vst.msk [vmem:[#allocation2 + $0xf8] sm:$0xff] %vm3496_vm11, %v3463_v56  ;;  %v7230_v14 = vpop.f32.mrb[12].mxu1 }
 0x5f3   : > { %v7232_v7 = vpop.f32.mrb[13].mxu1 }
 0x5f4   : > { %v3064_v8 = vpop.permute.xlu1 %3063  ;;  %v3551_v4 = vld [vmem:[#allocation2 + $0xb0] sm:$0xff] }
 0x5f5   : > { %3136 = vst.msk [vmem:[#allocation2 + $0xc0] sm:$0xff] %vm3111_vm10, %v3064_v8  ;;  %4609 = vmatprep.mubr.msk.f32.mxu0 %vm3573_vm12, %v3551_v4 }
 0x5f6   : > { %4610 = vmatmul.mubr.msk.f32.gmra.mrb[22].mxu0 %vm3573_vm12, %v3552_v34  ;;  %v7238_v2 = vpop.f32.mrb[14].mxu1 }
 0x5f7   : > { %v7240_v5 = vpop.f32.mrb[15].mxu1 }
 0x5f8   : > { %v3449_v61 = vpop.permute.xlu1 %3448 }
 0x5f9   : > { %3521 = vst.msk [vmem:[#allocation2 + $0xc0] sm:$0xff] %vm3496_vm11, %v3449_v61  ;;  %v3560_v58 = vld [vmem:[#allocation2 + $0xf8] sm:$0xff] }
 0x5fa   : > { %v7244_v13 = vpop.f32.mrb[16].mxu1 }
 0x5fb   : > { %v7246_v32 = vpop.f32.mrb[17].mxu1 }
 0x5fc   : > { %v2683_v28 = vpop.permute.xlu1 %2682 }
 0x5fd   : > { %2753 = vst.msk [vmem:[#allocation2 + $0xd0] sm:$0xff] %vm2726_vm8, %v2683_v28 }
 0x5fe   : > { %v7248_v3 = vpop.f32.mrb[18].mxu1 }
 0x5ff   : > { %v7250_v45 = vpop.f32.mrb[19].mxu1 }
 0x600   : > { %v3068_v60 = vpop.permute.xlu1 %3067  ;;  %v3553_v20 = vld [vmem:[#allocation2 + $0xc0] sm:$0xff] }
 0x601   : > { %3138 = vst.msk [vmem:[#allocation2 + $0xd0] sm:$0xff] %vm3111_vm10, %v3068_v60  ;;  %4612 = vmatprep.mubr.msk.f32.mxu0 %vm3573_vm12, %v3553_v20 }
 0x602   : > { %4613 = vmatmul.mubr.msk.f32.gmra.mrb[24].mxu0 %vm3573_vm12, %v3554_v17  ;;  %v7252_v39 = vpop.f32.mrb[20].mxu1 }
 0x603   : > { %v7254_v26 = vpop.f32.mrb[21].mxu1 }
 0x604   : > { %v3453_v55 = vpop.permute.xlu1 %3452 }
 0x605   : > { %3523 = vst.msk [vmem:[#allocation2 + $0xd0] sm:$0xff] %vm3496_vm11, %v3453_v55 }
 0x606   : > { %v7256_v52 = vpop.f32.mrb[22].mxu1 }
 0x607   : > { %v7258_v51 = vpop.f32.mrb[23].mxu1 }
 0x608   : > { %v2687_v57 = vpop.permute.xlu1 %2686 }
 0x609   : > { %2755 = vst.msk [vmem:[#allocation2 + $0xe0] sm:$0xff] %vm2726_vm8, %v2687_v57 }
 0x60a   : > { %v7260_v0 = vpop.f32.mrb[24].mxu1 }
 0x60b   : > { %v7262_v40 = vpop.f32.mrb[25].mxu1 }
 0x60c   : > { %v3072_v47 = vpop.permute.xlu1 %3071  ;;  %v3555_v29 = vld [vmem:[#allocation2 + $0xd0] sm:$0xff] }
 0x60d   : > { %3140 = vst.msk [vmem:[#allocation2 + $0xe0] sm:$0xff] %vm3111_vm10, %v3072_v47  ;;  %4615 = vmatprep.mubr.msk.f32.mxu0 %vm3573_vm12, %v3555_v29 }
 0x60e   : > { %4616 = vmatmul.mubr.msk.f32.gmra.mrb[26].mxu0 %vm3573_vm12, %v3556_v25  ;;  %v7276_v22 = vpop.f32.mrb[26].mxu1 }
 0x60f   : > { %v7287_v50 = vpop.f32.mrb[27].mxu1 }
 0x610   : > { %v3457_v35 = vpop.permute.xlu1 %3456 }
 0x611   : > { %3525 = vst.msk [vmem:[#allocation2 + $0xe0] sm:$0xff] %vm3496_vm11, %v3457_v35 }
 0x612   : > { %v7303_v35 = vpop.f32.mrb[28].mxu1 }
 0x614   : > { %v2691_v62 = vpop.permute.xlu1 %2690 }
 0x615   : > { %2757 = vst.msk [vmem:[#allocation2 + $0xf0] sm:$0xff] %vm2726_vm8, %v2691_v62 }
 0x618   : > { %v3076_v15 = vpop.permute.xlu1 %3075  ;;  %v3557_v18 = vld [vmem:[#allocation2 + $0xe0] sm:$0xff] }
 0x619   : > { %3142 = vst.msk [vmem:[#allocation2 + $0xf0] sm:$0xff] %vm3111_vm10, %v3076_v15  ;;  %4618 = vmatprep.mubr.msk.f32.mxu0 %vm3573_vm12, %v3557_v18 }
 0x61a   : > { %4619 = vmatmul.mubr.msk.f32.gmra.mrb[28].mxu0 %vm3573_vm12, %v3558_v37 }
 0x61c   : > { %v3461_v38 = vpop.permute.xlu1 %3460 }
 0x61d   : > { %3527 = vst.msk [vmem:[#allocation2 + $0xf0] sm:$0xff] %vm3496_vm11, %v3461_v38 }
 0x624   : > { %v3559_v54 = vld [vmem:[#allocation2 + $0xf0] sm:$0xff] }
 0x625   : > { %4621 = vmatprep.mubr.msk.f32.mxu0 %vm3573_vm12, %v3559_v54 }
 0x626   : > { %4622 = vmatmul.mubr.msk.f32.gmra.mrb[30].mxu0 %vm3573_vm12, %v3560_v58 }
 0x660   : > { %v4578_v16 = vpop.f32.mrb[0].mxu0 }
 0x661   : > { %v3746_v9 = vadd.f32 %v4578_v16, %v7267_v10  ;;  %v3740_v27 = vpop.f32.mrb[1].mxu0 }
 0x662   : > { %v3741_v31 = vadd.f32 %v7267_v10, %v3740_v27 }
 0x663   : > { %v3900_v6 = vmul.f32 0.1, %v3746_v9 }
 0x664   : > { %v3899_v59 = vmul.f32 0.1, %v3741_v31 }
 0x665   : > { %v3932_v49 = vmax.f32 %v3746_v9, %v3900_v6 }
 0x666   : > { %v3931_v1 = vmax.f32 %v3741_v31, %v3899_v59 }
 0x667   : > { %v4257_v43 = vadd.f32 %v7183_v44, %v3932_v49 }
 0x668   : > { %v4256_v53 = vadd.f32 %v7185_v21, %v3931_v1  ;;  %v4581_v36 = vpop.f32.mrb[2].mxu0 }
 0x669   : > { %v4296_v23 = vadd.f32 %v7274_v12, %v4257_v43  ;;  %v3756_v56 = vadd.f32 %v4581_v36, %v7267_v10  ;;  %v3750_v8 = vpop.f32.mrb[3].mxu0 }
 0x66a   : > { %v4295_v44 = vadd.f32 %v7274_v12, %v4256_v53  ;;  %v3751_v4 = vadd.f32 %v7267_v10, %v3750_v8 }
 0x66b   : > { %4329 = vst.msk [vmem:[%s7284_s20 + $0x8] sm:$0xff] %vm4327_vm13, %v4296_v23  ;;  %v3902_v34 = vmul.f32 0.1, %v3756_v56 }
 0x66c   : > { %4328 = vst.msk [vmem:[%s7284_s20] sm:$0xff] %vm4327_vm13, %v4295_v44  ;;  %v3901_v21 = vmul.f32 0.1, %v3751_v4 }
 0x66d   : > { %v3934_v61 = vmax.f32 %v3756_v56, %v3902_v34 }
 0x66e   : > { %v3933_v28 = vmax.f32 %v3751_v4, %v3901_v21 }
 0x66f   : > { %v4259_v60 = vadd.f32 %v7192_v48, %v3934_v61 }
 0x670   : > { %v4258_v20 = vadd.f32 %v7195_v42, %v3933_v28  ;;  %v4584_v17 = vpop.f32.mrb[4].mxu0  ;;  %v7309_v42 = vpop.f32.mrb[29].mxu1 }
 0x671   : > { %v4298_v55 = vadd.f32 %v7274_v12, %v4259_v60  ;;  %v3766_v57 = vadd.f32 %v4584_v17, %v7267_v10  ;;  %v3760_v47 = vpop.f32.mrb[5].mxu0  ;;  %v7321_v49 = vpop.f32.mrb[30].mxu1 }
 0x672   : > { %v4297_v29 = vadd.f32 %v7274_v12, %v4258_v20  ;;  %v3761_v25 = vadd.f32 %v7267_v10, %v3760_v47  ;;  %v7324_v43 = vpop.f32.mrb[31].mxu1 }
 0x673   : > { %4331 = vst.msk [vmem:[%s7284_s20 + $0x18] sm:$0xff] %vm4327_vm13, %v4298_v55  ;;  %v3904_v62 = vmul.f32 0.1, %v3766_v57 }
 0x674   : > { %4330 = vst.msk [vmem:[%s7284_s20 + $0x10] sm:$0xff] %vm4327_vm13, %v4297_v29  ;;  %v3903_v48 = vmul.f32 0.1, %v3761_v25 }
 0x675   : > { %v3936_v15 = vmax.f32 %v3766_v57, %v3904_v62 }
 0x676   : > { %v3935_v18 = vmax.f32 %v3761_v25, %v3903_v48 }
 0x677   : > { %v4261_v37 = vadd.f32 %v7201_v41, %v3936_v15 }
 0x678   : > { %v4260_v38 = vadd.f32 %v7204_v11, %v3935_v18  ;;  %v4587_v54 = vpop.f32.mrb[6].mxu0 }
 0x679   : > { %v4300_v58 = vadd.f32 %v7274_v12, %v4261_v37  ;;  %v3776_v16 = vadd.f32 %v4587_v54, %v7267_v10  ;;  %v3770_v9 = vpop.f32.mrb[7].mxu0 }
 0x67a   : > { %v4299_v27 = vadd.f32 %v7274_v12, %v4260_v38  ;;  %v3771_v31 = vadd.f32 %v7267_v10, %v3770_v9 }
 0x67b   : > { %4333 = vst.msk [vmem:[%s7284_s20 + $0x28] sm:$0xff] %vm4327_vm13, %v4300_v58  ;;  %v3906_v6 = vmul.f32 0.1, %v3776_v16 }
 0x67c   : > { %4332 = vst.msk [vmem:[%s7284_s20 + $0x20] sm:$0xff] %vm4327_vm13, %v4299_v27  ;;  %v3905_v41 = vmul.f32 0.1, %v3771_v31 }
 0x67d   : > { %v3938_v59 = vmax.f32 %v3776_v16, %v3906_v6 }
 0x67e   : > { %v3937_v11 = vmax.f32 %v3771_v31, %v3905_v41 }
 0x67f   : > { %v4263_v1 = vadd.f32 %v7208_v30, %v3938_v59 }
 0x680   : > { %v4262_v53 = vadd.f32 %v7210_v19, %v3937_v11  ;;  %v4590_v36 = vpop.f32.mrb[8].mxu0 }
 0x681   : > { %v4302_v23 = vadd.f32 %v7274_v12, %v4263_v1  ;;  %v3786_v56 = vadd.f32 %v4590_v36, %v7267_v10  ;;  %v3780_v8 = vpop.f32.mrb[9].mxu0 }
 0x682   : > { %v4301_v44 = vadd.f32 %v7274_v12, %v4262_v53  ;;  %v3781_v4 = vadd.f32 %v7267_v10, %v3780_v8 }
 0x683   : > { %4335 = vst.msk [vmem:[%s7284_s20 + $0x38] sm:$0xff] %vm4327_vm13, %v4302_v23  ;;  %v3908_v34 = vmul.f32 0.1, %v3786_v56 }
 0x684   : > { %4334 = vst.msk [vmem:[%s7284_s20 + $0x30] sm:$0xff] %vm4327_vm13, %v4301_v44  ;;  %v3907_v30 = vmul.f32 0.1, %v3781_v4 }
 0x685   : > { %v3940_v21 = vmax.f32 %v3786_v56, %v3908_v34 }
 0x686   : > { %v3939_v19 = vmax.f32 %v3781_v4, %v3907_v30 }
 0x687   : > { %v4265_v61 = vadd.f32 %v7216_v33, %v3940_v21 }
 0x688   : > { %v4264_v28 = vadd.f32 %v7218_v46, %v3939_v19  ;;  %v4593_v60 = vpop.f32.mrb[10].mxu0 }
 0x689   : > { %v4304_v20 = vadd.f32 %v7274_v12, %v4265_v61  ;;  %v3796_v17 = vadd.f32 %v4593_v60, %v7267_v10  ;;  %v3790_v55 = vpop.f32.mrb[11].mxu0 }
 0x68a   : > { %v4303_v57 = vadd.f32 %v7274_v12, %v4264_v28  ;;  %v3791_v47 = vadd.f32 %v7267_v10, %v3790_v55 }
 0x68b   : > { %4337 = vst.msk [vmem:[%s7284_s20 + $0x48] sm:$0xff] %vm4327_vm13, %v4304_v20  ;;  %v3910_v29 = vmul.f32 0.1, %v3796_v17 }
 0x68c   : > { %4336 = vst.msk [vmem:[%s7284_s20 + $0x40] sm:$0xff] %vm4327_vm13, %v4303_v57  ;;  %v3909_v33 = vmul.f32 0.1, %v3791_v47 }
 0x68d   : > { %v3942_v25 = vmax.f32 %v3796_v17, %v3910_v29 }
 0x68e   : > { %v3941_v46 = vmax.f32 %v3791_v47, %v3909_v33 }
 0x68f   : > { %v4267_v62 = vadd.f32 %v7223_v63, %v3942_v25 }
 0x690   : > { %v4266_v48 = vadd.f32 %v7226_v24, %v3941_v46  ;;  %v4596_v15 = vpop.f32.mrb[12].mxu0 }
 0x691   : > { %v4306_v18 = vadd.f32 %v7274_v12, %v4267_v62  ;;  %v3806_v37 = vadd.f32 %v4596_v15, %v7267_v10  ;;  %v3800_v38 = vpop.f32.mrb[13].mxu0 }
 0x692   : > { %v4305_v54 = vadd.f32 %v7274_v12, %v4266_v48  ;;  %v3801_v58 = vadd.f32 %v7267_v10, %v3800_v38 }
 0x693   : > { %4339 = vst.msk [vmem:[%s7284_s20 + $0x58] sm:$0xff] %vm4327_vm13, %v4306_v18  ;;  %v3912_v16 = vmul.f32 0.1, %v3806_v37 }
 0x694   : > { %4338 = vst.msk [vmem:[%s7284_s20 + $0x50] sm:$0xff] %vm4327_vm13, %v4305_v54  ;;  %v3911_v63 = vmul.f32 0.1, %v3801_v58 }
 0x695   : > { %v3944_v9 = vmax.f32 %v3806_v37, %v3912_v16 }
 0x696   : > { %v3943_v24 = vmax.f32 %v3801_v58, %v3911_v63 }
 0x697   : > { %v4269_v27 = vadd.f32 %v7230_v14, %v3944_v9 }
 0x698   : > { %v4268_v31 = vadd.f32 %v7232_v7, %v3943_v24 }
 0x699   : > { %v4308_v6 = vadd.f32 %v7274_v12, %v4269_v27  ;;  %v4599_v41 = vpop.f32.mrb[14].mxu0 }
 0x69a   : > { %v4307_v59 = vadd.f32 %v7274_v12, %v4268_v31  ;;  %v3816_v11 = vadd.f32 %v4599_v41, %v7267_v10  ;;  %v3810_v1 = vpop.f32.mrb[15].mxu0 }
 0x69b   : > { %4341 = vst.msk [vmem:[%s7284_s20 + $0x68] sm:$0xff] %vm4327_vm13, %v4308_v6  ;;  %v3811_v53 = vadd.f32 %v7267_v10, %v3810_v1 }
 0x69c   : > { %4340 = vst.msk [vmem:[%s7284_s20 + $0x60] sm:$0xff] %vm4327_vm13, %v4307_v59  ;;  %v3914_v36 = vmul.f32 0.1, %v3816_v11 }
 0x69d   : > { %v3913_v14 = vmul.f32 0.1, %v3811_v53 }
 0x69e   : > { %v3946_v23 = vmax.f32 %v3816_v11, %v3914_v36 }
 0x69f   : > { %v3945_v7 = vmax.f32 %v3811_v53, %v3913_v14 }
 0x6a0   : > { %v4271_v56 = vadd.f32 %v7238_v2, %v3946_v23 }
 0x6a1   : > { %v4270_v8 = vadd.f32 %v7240_v5, %v3945_v7 }
 0x6a2   : > { %v4310_v44 = vadd.f32 %v7274_v12, %v4271_v56 }
 0x6a3   : > { %v4309_v4 = vadd.f32 %v7274_v12, %v4270_v8 }
 0x6a4   : > { %4343 = vst.msk [vmem:[%s7284_s20 + $0x78] sm:$0xff] %vm4327_vm13, %v4310_v44 }
 0x6a5   : > { %4342 = vst.msk [vmem:[%s7284_s20 + $0x70] sm:$0xff] %vm4327_vm13, %v4309_v4  ;;  %v4602_v34 = vpop.f32.mrb[16].mxu0 }
 0x6a6   : > { %v3826_v30 = vadd.f32 %v4602_v34, %v7267_v10  ;;  %v3820_v21 = vpop.f32.mrb[17].mxu0 }
 0x6a7   : > { %v3821_v19 = vadd.f32 %v7267_v10, %v3820_v21 }
 0x6a8   : > { %v3916_v61 = vmul.f32 0.1, %v3826_v30 }
 0x6a9   : > { %v3915_v2 = vmul.f32 0.1, %v3821_v19 }
 0x6aa   : > { %v3948_v28 = vmax.f32 %v3826_v30, %v3916_v61 }
 0x6ab   : > { %v3947_v5 = vmax.f32 %v3821_v19, %v3915_v2 }
 0x6ac   : > { %v4273_v60 = vadd.f32 %v7244_v13, %v3948_v28 }
 0x6ad   : > { %v4272_v20 = vadd.f32 %v7246_v32, %v3947_v5 }
 0x6ae   : > { %v4312_v17 = vadd.f32 %v7274_v12, %v4273_v60 }
 0x6af   : > { %v4311_v55 = vadd.f32 %v7274_v12, %v4272_v20 }
 0x6b0   : > { %4345 = vst.msk [vmem:[%s7284_s20 + $0x88] sm:$0xff] %vm4327_vm13, %v4312_v17 }
 0x6b1   : > { %4344 = vst.msk [vmem:[%s7284_s20 + $0x80] sm:$0xff] %vm4327_vm13, %v4311_v55  ;;  %v4605_v57 = vpop.f32.mrb[18].mxu0 }
 0x6b2   : > { %v3836_v47 = vadd.f32 %v4605_v57, %v7267_v10  ;;  %v3830_v29 = vpop.f32.mrb[19].mxu0 }
 0x6b3   : > { %v3831_v33 = vadd.f32 %v7267_v10, %v3830_v29 }
 0x6b4   : > { %v3918_v25 = vmul.f32 0.1, %v3836_v47 }
 0x6b5   : > { %v3917_v13 = vmul.f32 0.1, %v3831_v33 }
 0x6b6   : > { %v3950_v46 = vmax.f32 %v3836_v47, %v3918_v25 }
 0x6b7   : > { %v3949_v32 = vmax.f32 %v3831_v33, %v3917_v13 }
 0x6b8   : > { %v4275_v62 = vadd.f32 %v7248_v3, %v3950_v46 }
 0x6b9   : > { %v4274_v48 = vadd.f32 %v7250_v45, %v3949_v32 }
 0x6ba   : > { %v4314_v15 = vadd.f32 %v7274_v12, %v4275_v62 }
 0x6bb   : > { %v4313_v18 = vadd.f32 %v7274_v12, %v4274_v48 }
 0x6bc   : > { %4347 = vst.msk [vmem:[%s7284_s20 + $0x98] sm:$0xff] %vm4327_vm13, %v4314_v15 }
 0x6bd   : > { %4346 = vst.msk [vmem:[%s7284_s20 + $0x90] sm:$0xff] %vm4327_vm13, %v4313_v18  ;;  %v4608_v37 = vpop.f32.mrb[20].mxu0 }
 0x6be   : > { %v3846_v38 = vadd.f32 %v4608_v37, %v7267_v10  ;;  %v3840_v54 = vpop.f32.mrb[21].mxu0 }
 0x6bf   : > { %v3841_v58 = vadd.f32 %v7267_v10, %v3840_v54 }
 0x6c0   : > { %v3920_v16 = vmul.f32 0.1, %v3846_v38 }
 0x6c1   : > { %v3919_v3 = vmul.f32 0.1, %v3841_v58 }
 0x6c2   : > { %v3952_v63 = vmax.f32 %v3846_v38, %v3920_v16 }
 0x6c3   : > { %v3951_v45 = vmax.f32 %v3841_v58, %v3919_v3 }
 0x6c4   : > { %v4277_v9 = vadd.f32 %v7252_v39, %v3952_v63 }
 0x6c5   : > { %v4276_v24 = vadd.f32 %v7254_v26, %v3951_v45 }
 0x6c6   : > { %v4316_v27 = vadd.f32 %v7274_v12, %v4277_v9 }
 0x6c7   : > { %v4315_v31 = vadd.f32 %v7274_v12, %v4276_v24 }
 0x6c8   : > { %4349 = vst.msk [vmem:[%s7284_s20 + $0xa8] sm:$0xff] %vm4327_vm13, %v4316_v27 }
 0x6c9   : > { %4348 = vst.msk [vmem:[%s7284_s20 + $0xa0] sm:$0xff] %vm4327_vm13, %v4315_v31  ;;  %v4611_v6 = vpop.f32.mrb[22].mxu0 }
 0x6ca   : > { %v3856_v41 = vadd.f32 %v4611_v6, %v7267_v10  ;;  %v3850_v59 = vpop.f32.mrb[23].mxu0 }
 0x6cb   : > { %v3851_v11 = vadd.f32 %v7267_v10, %v3850_v59 }
 0x6cc   : > { %v3922_v1 = vmul.f32 0.1, %v3856_v41 }
 0x6cd   : > { %v3921_v39 = vmul.f32 0.1, %v3851_v11 }
 0x6ce   : > { %v3954_v53 = vmax.f32 %v3856_v41, %v3922_v1 }
 0x6cf   : > { %v3953_v26 = vmax.f32 %v3851_v11, %v3921_v39 }
 0x6d0   : > { %v4279_v36 = vadd.f32 %v7256_v52, %v3954_v53 }
 0x6d1   : > { %v4278_v14 = vadd.f32 %v7258_v51, %v3953_v26 }
 0x6d2   : > { %v4318_v23 = vadd.f32 %v7274_v12, %v4279_v36 }
 0x6d3   : > { %v4317_v7 = vadd.f32 %v7274_v12, %v4278_v14 }
 0x6d4   : > { %4351 = vst.msk [vmem:[%s7284_s20 + $0xb8] sm:$0xff] %vm4327_vm13, %v4318_v23 }
 0x6d5   : > { %4350 = vst.msk [vmem:[%s7284_s20 + $0xb0] sm:$0xff] %vm4327_vm13, %v4317_v7  ;;  %v4614_v56 = vpop.f32.mrb[24].mxu0 }
 0x6d6   : > { %v3866_v8 = vadd.f32 %v4614_v56, %v7267_v10  ;;  %v3860_v44 = vpop.f32.mrb[25].mxu0 }
 0x6d7   : > { %v3861_v4 = vadd.f32 %v7267_v10, %v3860_v44 }
 0x6d8   : > { %v3924_v34 = vmul.f32 0.1, %v3866_v8 }
 0x6d9   : > { %v3923_v52 = vmul.f32 0.1, %v3861_v4 }
 0x6da   : > { %v3956_v30 = vmax.f32 %v3866_v8, %v3924_v34 }
 0x6db   : > { %v3955_v51 = vmax.f32 %v3861_v4, %v3923_v52 }
 0x6dc   : > { %v4281_v21 = vadd.f32 %v7260_v0, %v3956_v30 }
 0x6dd   : > { %v4280_v19 = vadd.f32 %v7262_v40, %v3955_v51 }
 0x6de   : > { %v4320_v61 = vadd.f32 %v7274_v12, %v4281_v21 }
 0x6df   : > { %v4319_v2 = vadd.f32 %v7274_v12, %v4280_v19 }
 0x6e0   : > { %4353 = vst.msk [vmem:[%s7284_s20 + $0xc8] sm:$0xff] %vm4327_vm13, %v4320_v61 }
 0x6e1   : > { %4352 = vst.msk [vmem:[%s7284_s20 + $0xc0] sm:$0xff] %vm4327_vm13, %v4319_v2  ;;  %v4617_v28 = vpop.f32.mrb[26].mxu0 }
 0x6e2   : > { %v3876_v5 = vadd.f32 %v4617_v28, %v7267_v10  ;;  %v3870_v60 = vpop.f32.mrb[27].mxu0 }
 0x6e3   : > { %v3871_v20 = vadd.f32 %v7267_v10, %v3870_v60 }
 0x6e4   : > { %v3926_v17 = vmul.f32 0.1, %v3876_v5 }
 0x6e5   : > { %v3925_v0 = vmul.f32 0.1, %v3871_v20 }
 0x6e6   : > { %v3958_v55 = vmax.f32 %v3876_v5, %v3926_v17 }
 0x6e7   : > { %v3957_v40 = vmax.f32 %v3871_v20, %v3925_v0 }
 0x6e8   : > { %v4283_v57 = vadd.f32 %v7276_v22, %v3958_v55 }
 0x6e9   : > { %v4282_v47 = vadd.f32 %v7287_v50, %v3957_v40 }
 0x6ea   : > { %v4322_v29 = vadd.f32 %v7274_v12, %v4283_v57 }
 0x6eb   : > { %v4321_v33 = vadd.f32 %v7274_v12, %v4282_v47 }
 0x6ec   : > { %4355 = vst.msk [vmem:[%s7284_s20 + $0xd8] sm:$0xff] %vm4327_vm13, %v4322_v29 }
 0x6ed   : > { %4354 = vst.msk [vmem:[%s7284_s20 + $0xd0] sm:$0xff] %vm4327_vm13, %v4321_v33  ;;  %v4620_v25 = vpop.f32.mrb[28].mxu0 }
 0x6ee   : > { %v3886_v13 = vadd.f32 %v4620_v25, %v7267_v10  ;;  %v3880_v46 = vpop.f32.mrb[29].mxu0 }
 0x6ef   : > { %v3881_v32 = vadd.f32 %v7267_v10, %v3880_v46 }
 0x6f0   : > { %v3928_v62 = vmul.f32 0.1, %v3886_v13 }
 0x6f1   : > { %v3927_v22 = vmul.f32 0.1, %v3881_v32 }
 0x6f2   : > { %v3960_v48 = vmax.f32 %v3886_v13, %v3928_v62 }
 0x6f3   : > { %v3959_v50 = vmax.f32 %v3881_v32, %v3927_v22 }
 0x6f4   : > { %v4285_v15 = vadd.f32 %v7303_v35, %v3960_v48 }
 0x6f5   : > { %v4284_v18 = vadd.f32 %v7309_v42, %v3959_v50 }
 0x6f6   : > { %v4324_v37 = vadd.f32 %v7274_v12, %v4285_v15 }
 0x6f7   : > { %v4323_v38 = vadd.f32 %v7274_v12, %v4284_v18 }
 0x6f8   : > { %4357 = vst.msk [vmem:[%s7284_s20 + $0xe8] sm:$0xff] %vm4327_vm13, %v4324_v37 }
 0x6f9   : > { %4356 = vst.msk [vmem:[%s7284_s20 + $0xe0] sm:$0xff] %vm4327_vm13, %v4323_v38  ;;  %v4623_v54 = vpop.f32.mrb[30].mxu0 }
 0x6fa   : > { %v3896_v58 = vadd.f32 %v4623_v54, %v7267_v10  ;;  %v3890_v16 = vpop.f32.mrb[31].mxu0 }
 0x6fb   : > { %v3891_v3 = vadd.f32 %v7267_v10, %v3890_v16 }
 0x6fc   : > { %v3930_v63 = vmul.f32 0.1, %v3896_v58 }
 0x6fd   : > { %v3929_v35 = vmul.f32 0.1, %v3891_v3 }
 0x6fe   : > { %v3962_v45 = vmax.f32 %v3896_v58, %v3930_v63 }
 0x6ff   : > { %v3961_v42 = vmax.f32 %v3891_v3, %v3929_v35 }
 0x700   : > { %v4287_v9 = vadd.f32 %v7321_v49, %v3962_v45 }
 0x701   : > { %v4286_v24 = vadd.f32 %v7324_v43, %v3961_v42 }
 0x702   : > { %v4326_v27 = vadd.f32 %v7274_v12, %v4287_v9 }
 0x703   : > { %v4325_v31 = vadd.f32 %v7274_v12, %v4286_v24 }
 0x704   : > { %4359 = vst.msk [vmem:[%s7284_s20 + $0xf8] sm:$0xff] %vm4327_vm13, %v4326_v27 }
 0x705   : > { %4358 = vst.msk [vmem:[%s7284_s20 + $0xf0] sm:$0xff] %vm4327_vm13, %v4325_v31 }
 0x706 PF: > { %s16_s21 = sadd.s32 1, %s4822_s21  }
 0x707   : > { %p13_p4 = scmp.ge.s32.totalorder %s16_s21, 4  }
 0x709   :  { %15 = sbr.rel (!%p13_p4) target bundleno = 1 (0x1), region = 74 }

</bundles_post_ra>
